<compile_context>
chip_gen: v6e
topology: v6e:2x2x1
jax: 0.10.0
libtpu: 0.0.40
codegen_flags: <defaults>
</compile_context>

<pallas_src>
import functools
import numpy as np
import jax
import jax.numpy as jnp
from jax import lax
from jax.experimental import pallas as pl
from jax.experimental.pallas import tpu as pltpu

EPS = 1e-5        # PyTorch LayerNorm default eps
NEG_BIG = -1e30   # large finite negative bias (NaN-safe vs -inf)
CONV_PAD = 16     # left/right zero-pad rows in the conv scratch (bf16-sublane aligned)


def _layer_norm(x, g, b):
    mu = jnp.mean(x, axis=-1, keepdims=True)
    var = jnp.mean((x - mu) ** 2, axis=-1, keepdims=True)
    return (x - mu) * lax.rsqrt(var + EPS) * g + b


def fft_block_kernel(n_head, d_k, d_v, k1, k2, with_attn,
                     x_ref, mbias_ref, mcol_ref,
                     wqkv_ref, bqkv_ref, wo_ref, bo_ref,
                     g1_ref, be1_ref,
                     w1_ref, b1_ref, w2_ref, b2_ref,
                     g2_ref, be2_ref,
                     *out_and_scratch):
    if with_attn:
        out_ref, attn_ref, ctx_ref, xpad_ref = out_and_scratch
    else:
        out_ref, ctx_ref, xpad_ref = out_and_scratch
        attn_ref = None

    x = x_ref[0]                       # (T, D) f32
    T, D = x.shape
    H, dk, dv = n_head, d_k, d_v
    neg_bias = mbias_ref[0]            # (1, T) f32: 0 keep / NEG_BIG padded key
    keep_col = mcol_ref[0]             # (T, 1) f32: 1 keep / 0 padded row

    # ---- Multi-head self-attention (bf16 MXU operands, f32 accumulation) ----
    # Q weights/bias were pre-scaled by 1/sqrt(d_k) in the wrapper.
    x16 = x.astype(jnp.bfloat16)
    qkv = jnp.dot(x16, wqkv_ref[...], preferred_element_type=jnp.float32)
    qkv = (qkv + bqkv_ref[...]).astype(jnp.bfloat16)
    q = qkv[:, :H * dk]
    k = qkv[:, H * dk:2 * H * dk]
    v = qkv[:, 2 * H * dk:]

    for h in range(H):
        qh = q[:, h * dk:(h + 1) * dk]
        kh = k[:, h * dk:(h + 1) * dk]
        vh = v[:, h * dv:(h + 1) * dv]
        # Contract last dims directly (no explicit kh.T transpose).
        s = lax.dot_general(qh, kh, (((1,), (1,)), ((), ())),
                            preferred_element_type=jnp.float32) + neg_bias
        m = jnp.max(s, axis=-1, keepdims=True)
        p = jnp.exp(s - m)
        p = p * pl.reciprocal(jnp.sum(p, axis=-1, keepdims=True), approx=True)
        p16 = p.astype(jnp.bfloat16)   # MXU-ready; also the stored attn dtype
        if attn_ref is not None:
            attn_ref[h, 0] = p16
        ctx_ref[:, h * dv:(h + 1) * dv] = jnp.dot(
            p16, vh, preferred_element_type=jnp.float32).astype(jnp.bfloat16)

    o = jnp.dot(ctx_ref[...], wo_ref[...],
                preferred_element_type=jnp.float32) + bo_ref[...]
    o = _layer_norm(o + x, g1_ref[...], be1_ref[...])
    o = o * keep_col                                   # masked_fill(mask, 0)

    # ---- Position-wise FFN: Conv1d(k1) -> ReLU -> Conv1d(k2) ----------------
    res = o
    pad1 = (k1 - 1) // 2
    # Zero-padded bf16 scratch; per-tap shifted windows read with pl.ds.
    xpad_ref[...] = jnp.zeros_like(xpad_ref)
    xpad_ref[pl.ds(CONV_PAD, T), :] = o.astype(jnp.bfloat16)
    hid = None
    for t in range(k1):
        xt = xpad_ref[pl.ds(CONV_PAD - pad1 + t, T), :]            # (T, D) bf16
        part = jnp.dot(xt, w1_ref[t], preferred_element_type=jnp.float32)
        hid = part if hid is None else hid + part
    hid = jnp.maximum(hid + b1_ref[...], 0.0)                      # (T, d_inner) f32
    hid16 = hid.astype(jnp.bfloat16)

    d_inner = hid.shape[1]
    if k2 == 1:
        y = jnp.dot(hid16, w2_ref[0], preferred_element_type=jnp.float32)
    else:
        pad2 = (k2 - 1) // 2
        zp = jnp.zeros((pad2, d_inner), jnp.bfloat16)
        hp = jnp.concatenate([zp, hid16, zp], axis=0)
        y = None
        for t in range(k2):
            part = jnp.dot(hp[t:t + T, :], w2_ref[t],
                           preferred_element_type=jnp.float32)
            y = part if y is None else y + part
    y = y + b2_ref[...]
    y = _layer_norm(y + res, g2_ref[...], be2_ref[...])
    out_ref[0] = y * keep_col                                      # masked_fill(mask, 0)


def _vmem_limit_bytes():
    # v7x has 64 MiB VMEM per TensorCore -> request ~48 MiB (headroom for
    # compiler scratch / double buffers); v4/v5e/v6e have 128 MiB -> ~100 MiB.
    try:
        kind = jax.devices()[0].device_kind.lower()
    except Exception:
        kind = ""
    if any(t in kind for t in ("v4", "v5", "v6")):
        return 100 * 1024 * 1024
    return 48 * 1024 * 1024


def fft_block(x, mask, p, *, n_head, d_k, d_v, k1, k2, return_attn=True):
    B, T, D = x.shape
    H = n_head
    assert (k1 - 1) // 2 <= CONV_PAD and (k2 - 1) // 2 <= CONV_PAD

    # Mask streams (precomputed for free): lane-dense additive key bias and
    # lane-sparse row-keep column.
    mbias = jnp.where(mask, NEG_BIG, 0.0).astype(jnp.float32).reshape(B, 1, T)
    mcol = (1.0 - mask.astype(jnp.float32)).reshape(B, T, 1)

    # Wrapper-level weight prep: fold softmax temperature into Q, fuse QKV,
    # cast MXU weights to bf16 (biases / LN params stay f32).
    inv_temp = jnp.float32(1.0 / float(np.sqrt(d_k)))
    wqkv = jnp.concatenate([p['wq'] * inv_temp, p['wk'], p['wv']],
                           axis=1).astype(jnp.bfloat16)
    bqkv = jnp.concatenate([p['bq'] * inv_temp, p['bk'], p['bv']], axis=1)
    weights = (wqkv, bqkv,
               p['wo'].astype(jnp.bfloat16), p['bo'], p['g1'], p['be1'],
               p['w1'].astype(jnp.bfloat16), p['b1'],
               p['w2'].astype(jnp.bfloat16), p['b2'], p['g2'], p['be2'])

    def run(single_buffer_weights):
        def const_spec(shape):
            idx = lambda b: (0,) * len(shape)
            if single_buffer_weights:
                # Weights are revisited every grid step -> single-buffer them.
                return pl.BlockSpec(shape, idx, pipeline_mode=pl.Buffered(1))
            return pl.BlockSpec(shape, idx)

        in_specs = ([pl.BlockSpec((1, T, D), lambda b: (b, 0, 0)),    # x
                     pl.BlockSpec((1, 1, T), lambda b: (b, 0, 0)),    # key-mask bias
                     pl.BlockSpec((1, T, 1), lambda b: (b, 0, 0))]    # row-keep col
                    + [const_spec(w.shape) for w in weights])
        out_specs = [pl.BlockSpec((1, T, D), lambda b: (b, 0, 0))]
        out_shapes = [jax.ShapeDtypeStruct((B, T, D), jnp.float32)]
        if return_attn:
            out_specs.append(pl.BlockSpec((H, 1, T, T), lambda b: (0, b, 0, 0)))
            out_shapes.append(jax.ShapeDtypeStruct((H, B, T, T), jnp.bfloat16))

        kern = functools.partial(fft_block_kernel, H, d_k, d_v, k1, k2,
                                 return_attn)
        res = pl.pallas_call(
            kern,
            out_shape=tuple(out_shapes),
            grid_spec=pltpu.PrefetchScalarGridSpec(
                num_scalar_prefetch=0, grid=(B,),
                in_specs=in_specs, out_specs=out_specs,
                scratch_shapes=[
                    pltpu.VMEM((T, H * d_v), jnp.bfloat16),            # ctx
                    pltpu.VMEM((T + 2 * CONV_PAD, D), jnp.bfloat16)]), # conv pad
            compiler_params=pltpu.CompilerParams(
                dimension_semantics=("parallel",),      # batch -> megacore
                vmem_limit_bytes=_vmem_limit_bytes()),
        )(x, mbias, mcol, *weights)
        return jax.block_until_ready(res)

    try:
        res = run(True)
    except Exception:
        # pl.Buffered(1) not supported by this jax version -> default buffering.
        res = run(False)

    if return_attn:
        out, attn = res
        # PyTorch returns attn as (n_head * B, T, T), head-major ordering.
        return out, attn.reshape(H * B, T, T)
    (out,) = res
    return out


def reference(x, mask, p, *, n_head, d_k, d_v, k1, k2):
    """Pure-JAX f32 reference mirroring the PyTorch forward semantics."""
    B, T, D = x.shape
    H = n_head
    q = (x @ p['wq'] + p['bq']).reshape(B, T, H, d_k).transpose(2, 0, 1, 3)
    k = (x @ p['wk'] + p['bk']).reshape(B, T, H, d_k).transpose(2, 0, 1, 3)
    v = (x @ p['wv'] + p['bv']).reshape(B, T, H, d_v).transpose(2, 0, 1, 3)
    s = jnp.einsum('hbqd,hbkd->hbqk', q, k) / float(np.sqrt(d_k))
    s = jnp.where(mask[None, :, None, :], -jnp.inf, s)
    attn = jax.nn.softmax(s, axis=-1)
    o = jnp.einsum('hbqk,hbkd->hbqd', attn, v).transpose(1, 2, 0, 3)
    o = o.reshape(B, T, H * d_v) @ p['wo'] + p['bo']
    o = _layer_norm(o + x, p['g1'], p['be1'])
    o = jnp.where(mask[..., None], 0.0, o)
    res = o
    pad1 = (k1 - 1) // 2
    xp = jnp.pad(o, ((0, 0), (pad1, pad1), (0, 0)))
    d_inner = p['w1'].shape[2]
    h = jnp.zeros((B, T, d_inner), jnp.float32)
    for t in range(k1):
        h = h + xp[:, t:t + T, :] @ p['w1'][t]
    h = jax.nn.relu(h + p['b1'])
    pad2 = (k2 - 1) // 2
    hp = jnp.pad(h, ((0, 0), (pad2, pad2), (0, 0)))
    y = jnp.zeros((B, T, D), jnp.float32)
    for t in range(k2):
        y = y + hp[:, t:t + T, :] @ p['w2'][t]
    y = y + p['b2']
    y = _layer_norm(y + res, p['g2'], p['be2'])
    y = jnp.where(mask[..., None], 0.0, y)
    return y, attn.reshape(H * B, T, T)


def make_params(key, d_model, n_head, d_k, d_v, d_inner, k1, k2):
    ks = jax.random.split(key, 10)

    def init(k, shape, scale=0.05):
        return (scale * jax.random.normal(k, shape)).astype(jnp.float32)

    return dict(
        wq=init(ks[0], (d_model, n_head * d_k)), bq=init(ks[1], (1, n_head * d_k)),
        wk=init(ks[2], (d_model, n_head * d_k)), bk=init(ks[3], (1, n_head * d_k)),
        wv=init(ks[4], (d_model, n_head * d_v)), bv=init(ks[5], (1, n_head * d_v)),
        wo=init(ks[6], (n_head * d_v, d_model)), bo=init(ks[7], (1, d_model)),
        g1=jnp.ones((1, d_model), jnp.float32), be1=jnp.zeros((1, d_model), jnp.float32),
        w1=init(ks[8], (k1, d_model, d_inner)), b1=jnp.zeros((1, d_inner), jnp.float32),
        w2=init(ks[9], (k2, d_inner, d_model)), b2=jnp.zeros((1, d_model), jnp.float32),
        g2=jnp.ones((1, d_model), jnp.float32), be2=jnp.zeros((1, d_model), jnp.float32),
    )


if __name__ == "__main__":
    # Small, module-consistent shapes.
    B, T = 2, 16
    d_model, n_head, d_k, d_v, d_inner = 32, 2, 16, 16, 64
    k1, k2 = 9, 1            # FastSpeech2 default fft_conv1d_kernel_size = [9, 1]

    key = jax.random.PRNGKey(0)
    kx, kp = jax.random.split(key)
    x = jax.random.normal(kx, (B, T, d_model), dtype=jnp.float32)

    # Padding mask: True => padded position (lengths [16, 12]).
    lengths = jnp.array([16, 12], dtype=jnp.int32)
    mask = jnp.arange(T)[None, :] >= lengths[:, None]      # (B, T) bool

    params = make_params(kp, d_model, n_head, d_k, d_v, d_inner, k1, k2)

    out, attn = fft_block(x, mask, params,
                          n_head=n_head, d_k=d_k, d_v=d_v, k1=k1, k2=k2)
    out = jax.block_until_ready(out)
    attn = jax.block_until_ready(attn)

    # Also exercise the no-attn fast path (review: skip the (H,B,T,T) stream).
    out_noattn = jax.block_until_ready(
        fft_block(x, mask, params, n_head=n_head, d_k=d_k, d_v=d_v,
                  k1=k1, k2=k2, return_attn=False))

    ref_out, ref_attn = reference(x, mask, params,
                                  n_head=n_head, d_k=d_k, d_v=d_v, k1=k1, k2=k2)
    assert out.shape == (B, T, d_model)
    assert attn.shape == (n_head * B, T, T)
    # Tolerances cover bf16 MXU operands (f32 accumulation), bf16-stored attn,
    # and pl.reciprocal(approx=True) in the softmax denominator.
    np.testing.assert_allclose(np.asarray(out), np.asarray(ref_out),
                               rtol=5e-2, atol=5e-2)
    np.testing.assert_allclose(np.asarray(out_noattn), np.asarray(ref_out),
                               rtol=5e-2, atol=5e-2)
    np.testing.assert_allclose(np.asarray(attn.astype(jnp.float32)),
                               np.asarray(ref_attn), rtol=2e-2, atol=2e-2)
    print("KERNEL_OK")
</pallas_src>

<mosaic_0001>
module attributes {stable_mosaic.version = 11 : i64} {
  func.func @fft_block_kernel(%arg0: i32, %arg1: memref<1x16x32xf32, #tpu.memory_space<vmem>>, %arg2: memref<1x1x16xf32, #tpu.memory_space<vmem>>, %arg3: memref<1x16x1xf32, #tpu.memory_space<vmem>>, %arg4: memref<32x96xbf16, #tpu.memory_space<vmem>>, %arg5: memref<1x96xf32, #tpu.memory_space<vmem>>, %arg6: memref<32x32xbf16, #tpu.memory_space<vmem>>, %arg7: memref<1x32xf32, #tpu.memory_space<vmem>>, %arg8: memref<1x32xf32, #tpu.memory_space<vmem>>, %arg9: memref<1x32xf32, #tpu.memory_space<vmem>>, %arg10: memref<9x32x64xbf16, #tpu.memory_space<vmem>>, %arg11: memref<1x64xf32, #tpu.memory_space<vmem>>, %arg12: memref<1x64x32xbf16, #tpu.memory_space<vmem>>, %arg13: memref<1x32xf32, #tpu.memory_space<vmem>>, %arg14: memref<1x32xf32, #tpu.memory_space<vmem>>, %arg15: memref<1x32xf32, #tpu.memory_space<vmem>>, %arg16: memref<1x16x32xf32, #tpu.memory_space<vmem>>, %arg17: memref<2x1x16x16xbf16, #tpu.memory_space<vmem>>, %arg18: memref<16x32xbf16, #tpu.memory_space<vmem>>, %arg19: memref<48x32xbf16, #tpu.memory_space<vmem>>) attributes {dimension_semantics = [#tpu.dimension_semantics<parallel>], iteration_bounds = array<i64: 2>, scalar_prefetch = 0 : i64, scratch_operands = 2 : i64, tpu.core_type = #tpu.core_type<tc>, window_params = [{transform_indices = @transform_0, window_bounds = array<i64: 1, 16, 32>}, {transform_indices = @transform_1, window_bounds = array<i64: 1, 1, 16>}, {transform_indices = @transform_2, window_bounds = array<i64: 1, 16, 1>}, {pipeline_mode = #tpu.pipeline_mode<synchronous>, transform_indices = @transform_3, window_bounds = array<i64: 32, 96>}, {pipeline_mode = #tpu.pipeline_mode<synchronous>, transform_indices = @transform_4, window_bounds = array<i64: 1, 96>}, {pipeline_mode = #tpu.pipeline_mode<synchronous>, transform_indices = @transform_5, window_bounds = array<i64: 32, 32>}, {pipeline_mode = #tpu.pipeline_mode<synchronous>, transform_indices = @transform_6, window_bounds = array<i64: 1, 32>}, {pipeline_mode = #tpu.pipeline_mode<synchronous>, transform_indices = @transform_7, window_bounds = array<i64: 1, 32>}, {pipeline_mode = #tpu.pipeline_mode<synchronous>, transform_indices = @transform_8, window_bounds = array<i64: 1, 32>}, {pipeline_mode = #tpu.pipeline_mode<synchronous>, transform_indices = @transform_9, window_bounds = array<i64: 9, 32, 64>}, {pipeline_mode = #tpu.pipeline_mode<synchronous>, transform_indices = @transform_10, window_bounds = array<i64: 1, 64>}, {pipeline_mode = #tpu.pipeline_mode<synchronous>, transform_indices = @transform_11, window_bounds = array<i64: 1, 64, 32>}, {pipeline_mode = #tpu.pipeline_mode<synchronous>, transform_indices = @transform_12, window_bounds = array<i64: 1, 32>}, {pipeline_mode = #tpu.pipeline_mode<synchronous>, transform_indices = @transform_13, window_bounds = array<i64: 1, 32>}, {pipeline_mode = #tpu.pipeline_mode<synchronous>, transform_indices = @transform_14, window_bounds = array<i64: 1, 32>}, {transform_indices = @transform_15, window_bounds = array<i64: 1, 16, 32>}, {transform_indices = @transform_16, window_bounds = array<i64: 2, 1, 16, 16>}]} {
    %c0 = arith.constant 0 : index
    %c0_0 = arith.constant 0 : index
    %c0_1 = arith.constant 0 : index
    %0 = vector.load %arg1[%c0, %c0_0, %c0_1] : memref<1x16x32xf32, #tpu.memory_space<vmem>>, vector<1x16x32xf32>
    %1 = vector.shape_cast %0 : vector<1x16x32xf32> to vector<16x32xf32>
    %c0_2 = arith.constant 0 : index
    %c0_3 = arith.constant 0 : index
    %c0_4 = arith.constant 0 : index
    %2 = vector.load %arg2[%c0_2, %c0_3, %c0_4] : memref<1x1x16xf32, #tpu.memory_space<vmem>>, vector<1x1x16xf32>
    %3 = vector.shape_cast %2 : vector<1x1x16xf32> to vector<1x16xf32>
    %c0_5 = arith.constant 0 : index
    %c0_6 = arith.constant 0 : index
    %c0_7 = arith.constant 0 : index
    %4 = vector.load %arg3[%c0_5, %c0_6, %c0_7] : memref<1x16x1xf32, #tpu.memory_space<vmem>>, vector<1x16x1xf32>
    %5 = vector.shape_cast %4 : vector<1x16x1xf32> to vector<16x1xf32>
    %6 = arith.truncf %1 : vector<16x32xf32> to vector<16x32xbf16>
    %c0_8 = arith.constant 0 : index
    %c0_9 = arith.constant 0 : index
    %7 = vector.load %arg4[%c0_8, %c0_9] : memref<32x96xbf16, #tpu.memory_space<vmem>>, vector<32x96xbf16>
    %cst = arith.constant dense<0.000000e+00> : vector<16x96xf32>
    %8 = tpu.matmul %6, %7, %cst {dimension_numbers = #tpu.dot_dimension_numbers<[1], [0], [0], [1], [0, 0, 1, 1], [], []>} : vector<16x32xbf16>, vector<32x96xbf16>, vector<16x96xf32> -> vector<16x96xf32>
    %c0_10 = arith.constant 0 : index
    %c0_11 = arith.constant 0 : index
    %9 = vector.load %arg5[%c0_10, %c0_11] : memref<1x96xf32, #tpu.memory_space<vmem>>, vector<1x96xf32>
    %10 = vector.broadcast %9 : vector<1x96xf32> to vector<16x96xf32>
    %11 = arith.addf %8, %10 : vector<16x96xf32>
    %12 = arith.truncf %11 : vector<16x96xf32> to vector<16x96xbf16>
    %13 = vector.extract_strided_slice %12 {offsets = [0, 0], sizes = [16, 32], strides = [1, 1]} : vector<16x96xbf16> to vector<16x32xbf16>
    %14 = vector.extract_strided_slice %12 {offsets = [0, 32], sizes = [16, 32], strides = [1, 1]} : vector<16x96xbf16> to vector<16x32xbf16>
    %15 = vector.extract_strided_slice %12 {offsets = [0, 64], sizes = [16, 32], strides = [1, 1]} : vector<16x96xbf16> to vector<16x32xbf16>
    %16 = vector.extract_strided_slice %13 {offsets = [0, 0], sizes = [16, 16], strides = [1, 1]} : vector<16x32xbf16> to vector<16x16xbf16>
    %17 = vector.extract_strided_slice %14 {offsets = [0, 0], sizes = [16, 16], strides = [1, 1]} : vector<16x32xbf16> to vector<16x16xbf16>
    %18 = vector.extract_strided_slice %15 {offsets = [0, 0], sizes = [16, 16], strides = [1, 1]} : vector<16x32xbf16> to vector<16x16xbf16>
    %cst_12 = arith.constant dense<0.000000e+00> : vector<16x16xf32>
    %19 = tpu.matmul %16, %17, %cst_12 {dimension_numbers = #tpu.dot_dimension_numbers<[1], [1], [0], [0], [0, 0, 1, 0], [], []>} : vector<16x16xbf16>, vector<16x16xbf16>, vector<16x16xf32> -> vector<16x16xf32>
    %20 = vector.broadcast %3 : vector<1x16xf32> to vector<16x16xf32>
    %21 = arith.addf %19, %20 : vector<16x16xf32>
    %cst_13 = arith.constant dense<0xFF800000> : vector<16xf32>
    %22 = vector.multi_reduction <maximumf>, %21, %cst_13 [1] : vector<16x16xf32> to vector<16xf32>
    %23 = vector.shape_cast %22 : vector<16xf32> to vector<16x1xf32>
    %24 = vector.broadcast %23 : vector<16x1xf32> to vector<16x16xf32>
    %25 = arith.subf %21, %24 : vector<16x16xf32>
    %26 = math.exp %25 : vector<16x16xf32>
    %cst_14 = arith.constant dense<0.000000e+00> : vector<16xf32>
    %27 = vector.multi_reduction <add>, %26, %cst_14 [1] : vector<16x16xf32> to vector<16xf32>
    %28 = vector.shape_cast %27 : vector<16xf32> to vector<16x1xf32>
    %29 = tpu.reciprocal %28 {approx = true} : vector<16x1xf32> -> vector<16x1xf32>
    %30 = vector.broadcast %29 : vector<16x1xf32> to vector<16x16xf32>
    %31 = arith.mulf %26, %30 : vector<16x16xf32>
    %32 = arith.truncf %31 : vector<16x16xf32> to vector<16x16xbf16>
    %c0_15 = arith.constant 0 : index
    %c0_16 = arith.constant 0 : index
    %c0_17 = arith.constant 0 : index
    %c0_18 = arith.constant 0 : index
    %33 = vector.load %arg17[%c0_15, %c0_16, %c0_17, %c0_18] : memref<2x1x16x16xbf16, #tpu.memory_space<vmem>>, vector<1x1x16x16xbf16>
    %34 = vector.shape_cast %33 : vector<1x1x16x16xbf16> to vector<16x16xbf16>
    %35 = vector.shape_cast %32 : vector<16x16xbf16> to vector<1x1x16x16xbf16>
    tpu.vector_store %arg17[%c0_15, %c0_16, %c0_17, %c0_18], %35 {strides = array<i32>} : memref<2x1x16x16xbf16, #tpu.memory_space<vmem>>, vector<1x1x16x16xbf16>,
    %cst_19 = arith.constant dense<0.000000e+00> : vector<16x16xf32>
    %36 = tpu.matmul %32, %18, %cst_19 {dimension_numbers = #tpu.dot_dimension_numbers<[1], [0], [0], [1], [0, 0, 1, 1], [], []>} : vector<16x16xbf16>, vector<16x16xbf16>, vector<16x16xf32> -> vector<16x16xf32>
    %37 = arith.truncf %36 : vector<16x16xf32> to vector<16x16xbf16>
    %c0_20 = arith.constant 0 : index
    %c0_21 = arith.constant 0 : index
    %38 = vector.load %arg18[%c0_20, %c0_21] : memref<16x32xbf16, #tpu.memory_space<vmem>>, vector<16x16xbf16>
    tpu.vector_store %arg18[%c0_20, %c0_21], %37 {strides = array<i32>} : memref<16x32xbf16, #tpu.memory_space<vmem>>, vector<16x16xbf16>,
    %39 = vector.extract_strided_slice %13 {offsets = [0, 16], sizes = [16, 16], strides = [1, 1]} : vector<16x32xbf16> to vector<16x16xbf16>
    %40 = vector.extract_strided_slice %14 {offsets = [0, 16], sizes = [16, 16], strides = [1, 1]} : vector<16x32xbf16> to vector<16x16xbf16>
    %41 = vector.extract_strided_slice %15 {offsets = [0, 16], sizes = [16, 16], strides = [1, 1]} : vector<16x32xbf16> to vector<16x16xbf16>
    %cst_22 = arith.constant dense<0.000000e+00> : vector<16x16xf32>
    %42 = tpu.matmul %39, %40, %cst_22 {dimension_numbers = #tpu.dot_dimension_numbers<[1], [1], [0], [0], [0, 0, 1, 0], [], []>} : vector<16x16xbf16>, vector<16x16xbf16>, vector<16x16xf32> -> vector<16x16xf32>
    %43 = vector.broadcast %3 : vector<1x16xf32> to vector<16x16xf32>
    %44 = arith.addf %42, %43 : vector<16x16xf32>
    %cst_23 = arith.constant dense<0xFF800000> : vector<16xf32>
    %45 = vector.multi_reduction <maximumf>, %44, %cst_23 [1] : vector<16x16xf32> to vector<16xf32>
    %46 = vector.shape_cast %45 : vector<16xf32> to vector<16x1xf32>
    %47 = vector.broadcast %46 : vector<16x1xf32> to vector<16x16xf32>
    %48 = arith.subf %44, %47 : vector<16x16xf32>
    %49 = math.exp %48 : vector<16x16xf32>
    %cst_24 = arith.constant dense<0.000000e+00> : vector<16xf32>
    %50 = vector.multi_reduction <add>, %49, %cst_24 [1] : vector<16x16xf32> to vector<16xf32>
    %51 = vector.shape_cast %50 : vector<16xf32> to vector<16x1xf32>
    %52 = tpu.reciprocal %51 {approx = true} : vector<16x1xf32> -> vector<16x1xf32>
    %53 = vector.broadcast %52 : vector<16x1xf32> to vector<16x16xf32>
    %54 = arith.mulf %49, %53 : vector<16x16xf32>
    %55 = arith.truncf %54 : vector<16x16xf32> to vector<16x16xbf16>
    %c1 = arith.constant 1 : index
    %c0_25 = arith.constant 0 : index
    %c0_26 = arith.constant 0 : index
    %c0_27 = arith.constant 0 : index
    %56 = vector.load %arg17[%c1, %c0_25, %c0_26, %c0_27] : memref<2x1x16x16xbf16, #tpu.memory_space<vmem>>, vector<1x1x16x16xbf16>
    %57 = vector.shape_cast %56 : vector<1x1x16x16xbf16> to vector<16x16xbf16>
    %58 = vector.shape_cast %55 : vector<16x16xbf16> to vector<1x1x16x16xbf16>
    tpu.vector_store %arg17[%c1, %c0_25, %c0_26, %c0_27], %58 {strides = array<i32>} : memref<2x1x16x16xbf16, #tpu.memory_space<vmem>>, vector<1x1x16x16xbf16>,
    %cst_28 = arith.constant dense<0.000000e+00> : vector<16x16xf32>
    %59 = tpu.matmul %55, %41, %cst_28 {dimension_numbers = #tpu.dot_dimension_numbers<[1], [0], [0], [1], [0, 0, 1, 1], [], []>} : vector<16x16xbf16>, vector<16x16xbf16>, vector<16x16xf32> -> vector<16x16xf32>
    %60 = arith.truncf %59 : vector<16x16xf32> to vector<16x16xbf16>
    %c0_29 = arith.constant 0 : index
    %c16 = arith.constant 16 : index
    %61 = vector.load %arg18[%c0_29, %c16] : memref<16x32xbf16, #tpu.memory_space<vmem>>, vector<16x16xbf16>
    tpu.vector_store %arg18[%c0_29, %c16], %60 {strides = array<i32>} : memref<16x32xbf16, #tpu.memory_space<vmem>>, vector<16x16xbf16>,
    %c0_30 = arith.constant 0 : index
    %c0_31 = arith.constant 0 : index
    %62 = vector.load %arg18[%c0_30, %c0_31] : memref<16x32xbf16, #tpu.memory_space<vmem>>, vector<16x32xbf16>
    %c0_32 = arith.constant 0 : index
    %c0_33 = arith.constant 0 : index
    %63 = vector.load %arg6[%c0_32, %c0_33] : memref<32x32xbf16, #tpu.memory_space<vmem>>, vector<32x32xbf16>
    %cst_34 = arith.constant dense<0.000000e+00> : vector<16x32xf32>
    %64 = tpu.matmul %62, %63, %cst_34 {dimension_numbers = #tpu.dot_dimension_numbers<[1], [0], [0], [1], [0, 0, 1, 1], [], []>} : vector<16x32xbf16>, vector<32x32xbf16>, vector<16x32xf32> -> vector<16x32xf32>
    %c0_35 = arith.constant 0 : index
    %c0_36 = arith.constant 0 : index
    %65 = vector.load %arg7[%c0_35, %c0_36] : memref<1x32xf32, #tpu.memory_space<vmem>>, vector<1x32xf32>
    %66 = vector.broadcast %65 : vector<1x32xf32> to vector<16x32xf32>
    %67 = arith.addf %64, %66 : vector<16x32xf32>
    %68 = arith.addf %67, %1 : vector<16x32xf32>
    %c0_37 = arith.constant 0 : index
    %c0_38 = arith.constant 0 : index
    %69 = vector.load %arg8[%c0_37, %c0_38] : memref<1x32xf32, #tpu.memory_space<vmem>>, vector<1x32xf32>
    %c0_39 = arith.constant 0 : index
    %c0_40 = arith.constant 0 : index
    %70 = vector.load %arg9[%c0_39, %c0_40] : memref<1x32xf32, #tpu.memory_space<vmem>>, vector<1x32xf32>
    %cst_41 = arith.constant dense<0.000000e+00> : vector<16xf32>
    %71 = vector.multi_reduction <add>, %68, %cst_41 [1] : vector<16x32xf32> to vector<16xf32>
    %72 = vector.shape_cast %71 : vector<16xf32> to vector<16x1xf32>
    %cst_42 = arith.constant 3.200000e+01 : f32
    %73 = vector.broadcast %cst_42 : f32 to vector<16x1xf32>
    %74 = arith.divf %72, %73 : vector<16x1xf32>
    %75 = vector.broadcast %74 : vector<16x1xf32> to vector<16x32xf32>
    %76 = arith.subf %68, %75 : vector<16x32xf32>
    %77 = arith.mulf %76, %76 : vector<16x32xf32>
    %cst_43 = arith.constant dense<0.000000e+00> : vector<16xf32>
    %78 = vector.multi_reduction <add>, %77, %cst_43 [1] : vector<16x32xf32> to vector<16xf32>
    %79 = vector.shape_cast %78 : vector<16xf32> to vector<16x1xf32>
    %cst_44 = arith.constant 3.200000e+01 : f32
    %80 = vector.broadcast %cst_44 : f32 to vector<16x1xf32>
    %81 = arith.divf %79, %80 : vector<16x1xf32>
    %82 = vector.broadcast %74 : vector<16x1xf32> to vector<16x32xf32>
    %83 = arith.subf %68, %82 : vector<16x32xf32>
    %cst_45 = arith.constant 9.99999974E-6 : f32
    %84 = vector.broadcast %cst_45 : f32 to vector<16x1xf32>
    %85 = arith.addf %81, %84 : vector<16x1xf32>
    %86 = math.rsqrt %85 : vector<16x1xf32>
    %87 = vector.broadcast %86 : vector<16x1xf32> to vector<16x32xf32>
    %88 = arith.mulf %83, %87 : vector<16x32xf32>
    %89 = vector.broadcast %69 : vector<1x32xf32> to vector<16x32xf32>
    %90 = arith.mulf %88, %89 : vector<16x32xf32>
    %91 = vector.broadcast %70 : vector<1x32xf32> to vector<16x32xf32>
    %92 = arith.addf %90, %91 : vector<16x32xf32>
    %93 = vector.broadcast %5 : vector<16x1xf32> to vector<16x32xf32>
    %94 = arith.mulf %92, %93 : vector<16x32xf32>
    %cst_46 = arith.constant 0.000000e+00 : bf16
    %95 = vector.broadcast %cst_46 : bf16 to vector<48x32xbf16>
    %c0_47 = arith.constant 0 : index
    %c0_48 = arith.constant 0 : index
    %96 = vector.load %arg19[%c0_47, %c0_48] : memref<48x32xbf16, #tpu.memory_space<vmem>>, vector<48x32xbf16>
    tpu.vector_store %arg19[%c0_47, %c0_48], %95 {strides = array<i32>} : memref<48x32xbf16, #tpu.memory_space<vmem>>, vector<48x32xbf16>,
    %97 = arith.truncf %94 : vector<16x32xf32> to vector<16x32xbf16>
    %c16_49 = arith.constant 16 : index
    %c0_50 = arith.constant 0 : index
    %98 = vector.load %arg19[%c16_49, %c0_50] : memref<48x32xbf16, #tpu.memory_space<vmem>>, vector<16x32xbf16>
    tpu.vector_store %arg19[%c16_49, %c0_50], %97 {strides = array<i32>} : memref<48x32xbf16, #tpu.memory_space<vmem>>, vector<16x32xbf16>,
    %c12 = arith.constant 12 : index
    %c0_51 = arith.constant 0 : index
    %99 = vector.load %arg19[%c12, %c0_51] : memref<48x32xbf16, #tpu.memory_space<vmem>>, vector<16x32xbf16>
    %c0_52 = arith.constant 0 : index
    %c0_53 = arith.constant 0 : index
    %c0_54 = arith.constant 0 : index
    %100 = vector.load %arg10[%c0_52, %c0_53, %c0_54] : memref<9x32x64xbf16, #tpu.memory_space<vmem>>, vector<1x32x64xbf16>
    %101 = vector.shape_cast %100 : vector<1x32x64xbf16> to vector<32x64xbf16>
    %cst_55 = arith.constant dense<0.000000e+00> : vector<16x64xf32>
    %102 = tpu.matmul %99, %101, %cst_55 {dimension_numbers = #tpu.dot_dimension_numbers<[1], [0], [0], [1], [0, 0, 1, 1], [], []>} : vector<16x32xbf16>, vector<32x64xbf16>, vector<16x64xf32> -> vector<16x64xf32>
    %c13 = arith.constant 13 : index
    %c0_56 = arith.constant 0 : index
    %103 = vector.load %arg19[%c13, %c0_56] : memref<48x32xbf16, #tpu.memory_space<vmem>>, vector<16x32xbf16>
    %c1_57 = arith.constant 1 : index
    %c0_58 = arith.constant 0 : index
    %c0_59 = arith.constant 0 : index
    %104 = vector.load %arg10[%c1_57, %c0_58, %c0_59] : memref<9x32x64xbf16, #tpu.memory_space<vmem>>, vector<1x32x64xbf16>
    %105 = vector.shape_cast %104 : vector<1x32x64xbf16> to vector<32x64xbf16>
    %cst_60 = arith.constant dense<0.000000e+00> : vector<16x64xf32>
    %106 = tpu.matmul %103, %105, %cst_60 {dimension_numbers = #tpu.dot_dimension_numbers<[1], [0], [0], [1], [0, 0, 1, 1], [], []>} : vector<16x32xbf16>, vector<32x64xbf16>, vector<16x64xf32> -> vector<16x64xf32>
    %107 = arith.addf %102, %106 : vector<16x64xf32>
    %c14 = arith.constant 14 : index
    %c0_61 = arith.constant 0 : index
    %108 = vector.load %arg19[%c14, %c0_61] : memref<48x32xbf16, #tpu.memory_space<vmem>>, vector<16x32xbf16>
    %c2 = arith.constant 2 : index
    %c0_62 = arith.constant 0 : index
    %c0_63 = arith.constant 0 : index
    %109 = vector.load %arg10[%c2, %c0_62, %c0_63] : memref<9x32x64xbf16, #tpu.memory_space<vmem>>, vector<1x32x64xbf16>
    %110 = vector.shape_cast %109 : vector<1x32x64xbf16> to vector<32x64xbf16>
    %cst_64 = arith.constant dense<0.000000e+00> : vector<16x64xf32>
    %111 = tpu.matmul %108, %110, %cst_64 {dimension_numbers = #tpu.dot_dimension_numbers<[1], [0], [0], [1], [0, 0, 1, 1], [], []>} : vector<16x32xbf16>, vector<32x64xbf16>, vector<16x64xf32> -> vector<16x64xf32>
    %112 = arith.addf %107, %111 : vector<16x64xf32>
    %c15 = arith.constant 15 : index
    %c0_65 = arith.constant 0 : index
    %113 = vector.load %arg19[%c15, %c0_65] : memref<48x32xbf16, #tpu.memory_space<vmem>>, vector<16x32xbf16>
    %c3 = arith.constant 3 : index
    %c0_66 = arith.constant 0 : index
    %c0_67 = arith.constant 0 : index
    %114 = vector.load %arg10[%c3, %c0_66, %c0_67] : memref<9x32x64xbf16, #tpu.memory_space<vmem>>, vector<1x32x64xbf16>
    %115 = vector.shape_cast %114 : vector<1x32x64xbf16> to vector<32x64xbf16>
    %cst_68 = arith.constant dense<0.000000e+00> : vector<16x64xf32>
    %116 = tpu.matmul %113, %115, %cst_68 {dimension_numbers = #tpu.dot_dimension_numbers<[1], [0], [0], [1], [0, 0, 1, 1], [], []>} : vector<16x32xbf16>, vector<32x64xbf16>, vector<16x64xf32> -> vector<16x64xf32>
    %117 = arith.addf %112, %116 : vector<16x64xf32>
    %c16_69 = arith.constant 16 : index
    %c0_70 = arith.constant 0 : index
    %118 = vector.load %arg19[%c16_69, %c0_70] : memref<48x32xbf16, #tpu.memory_space<vmem>>, vector<16x32xbf16>
    %c4 = arith.constant 4 : index
    %c0_71 = arith.constant 0 : index
    %c0_72 = arith.constant 0 : index
    %119 = vector.load %arg10[%c4, %c0_71, %c0_72] : memref<9x32x64xbf16, #tpu.memory_space<vmem>>, vector<1x32x64xbf16>
    %120 = vector.shape_cast %119 : vector<1x32x64xbf16> to vector<32x64xbf16>
    %cst_73 = arith.constant dense<0.000000e+00> : vector<16x64xf32>
    %121 = tpu.matmul %118, %120, %cst_73 {dimension_numbers = #tpu.dot_dimension_numbers<[1], [0], [0], [1], [0, 0, 1, 1], [], []>} : vector<16x32xbf16>, vector<32x64xbf16>, vector<16x64xf32> -> vector<16x64xf32>
    %122 = arith.addf %117, %121 : vector<16x64xf32>
    %c17 = arith.constant 17 : index
    %c0_74 = arith.constant 0 : index
    %123 = vector.load %arg19[%c17, %c0_74] : memref<48x32xbf16, #tpu.memory_space<vmem>>, vector<16x32xbf16>
    %c5 = arith.constant 5 : index
    %c0_75 = arith.constant 0 : index
    %c0_76 = arith.constant 0 : index
    %124 = vector.load %arg10[%c5, %c0_75, %c0_76] : memref<9x32x64xbf16, #tpu.memory_space<vmem>>, vector<1x32x64xbf16>
    %125 = vector.shape_cast %124 : vector<1x32x64xbf16> to vector<32x64xbf16>
    %cst_77 = arith.constant dense<0.000000e+00> : vector<16x64xf32>
    %126 = tpu.matmul %123, %125, %cst_77 {dimension_numbers = #tpu.dot_dimension_numbers<[1], [0], [0], [1], [0, 0, 1, 1], [], []>} : vector<16x32xbf16>, vector<32x64xbf16>, vector<16x64xf32> -> vector<16x64xf32>
    %127 = arith.addf %122, %126 : vector<16x64xf32>
    %c18 = arith.constant 18 : index
    %c0_78 = arith.constant 0 : index
    %128 = vector.load %arg19[%c18, %c0_78] : memref<48x32xbf16, #tpu.memory_space<vmem>>, vector<16x32xbf16>
    %c6 = arith.constant 6 : index
    %c0_79 = arith.constant 0 : index
    %c0_80 = arith.constant 0 : index
    %129 = vector.load %arg10[%c6, %c0_79, %c0_80] : memref<9x32x64xbf16, #tpu.memory_space<vmem>>, vector<1x32x64xbf16>
    %130 = vector.shape_cast %129 : vector<1x32x64xbf16> to vector<32x64xbf16>
    %cst_81 = arith.constant dense<0.000000e+00> : vector<16x64xf32>
    %131 = tpu.matmul %128, %130, %cst_81 {dimension_numbers = #tpu.dot_dimension_numbers<[1], [0], [0], [1], [0, 0, 1, 1], [], []>} : vector<16x32xbf16>, vector<32x64xbf16>, vector<16x64xf32> -> vector<16x64xf32>
    %132 = arith.addf %127, %131 : vector<16x64xf32>
    %c19 = arith.constant 19 : index
    %c0_82 = arith.constant 0 : index
    %133 = vector.load %arg19[%c19, %c0_82] : memref<48x32xbf16, #tpu.memory_space<vmem>>, vector<16x32xbf16>
    %c7 = arith.constant 7 : index
    %c0_83 = arith.constant 0 : index
    %c0_84 = arith.constant 0 : index
    %134 = vector.load %arg10[%c7, %c0_83, %c0_84] : memref<9x32x64xbf16, #tpu.memory_space<vmem>>, vector<1x32x64xbf16>
    %135 = vector.shape_cast %134 : vector<1x32x64xbf16> to vector<32x64xbf16>
    %cst_85 = arith.constant dense<0.000000e+00> : vector<16x64xf32>
    %136 = tpu.matmul %133, %135, %cst_85 {dimension_numbers = #tpu.dot_dimension_numbers<[1], [0], [0], [1], [0, 0, 1, 1], [], []>} : vector<16x32xbf16>, vector<32x64xbf16>, vector<16x64xf32> -> vector<16x64xf32>
    %137 = arith.addf %132, %136 : vector<16x64xf32>
    %c20 = arith.constant 20 : index
    %c0_86 = arith.constant 0 : index
    %138 = vector.load %arg19[%c20, %c0_86] : memref<48x32xbf16, #tpu.memory_space<vmem>>, vector<16x32xbf16>
    %c8 = arith.constant 8 : index
    %c0_87 = arith.constant 0 : index
    %c0_88 = arith.constant 0 : index
    %139 = vector.load %arg10[%c8, %c0_87, %c0_88] : memref<9x32x64xbf16, #tpu.memory_space<vmem>>, vector<1x32x64xbf16>
    %140 = vector.shape_cast %139 : vector<1x32x64xbf16> to vector<32x64xbf16>
    %cst_89 = arith.constant dense<0.000000e+00> : vector<16x64xf32>
    %141 = tpu.matmul %138, %140, %cst_89 {dimension_numbers = #tpu.dot_dimension_numbers<[1], [0], [0], [1], [0, 0, 1, 1], [], []>} : vector<16x32xbf16>, vector<32x64xbf16>, vector<16x64xf32> -> vector<16x64xf32>
    %142 = arith.addf %137, %141 : vector<16x64xf32>
    %c0_90 = arith.constant 0 : index
    %c0_91 = arith.constant 0 : index
    %143 = vector.load %arg11[%c0_90, %c0_91] : memref<1x64xf32, #tpu.memory_space<vmem>>, vector<1x64xf32>
    %144 = vector.broadcast %143 : vector<1x64xf32> to vector<16x64xf32>
    %145 = arith.addf %142, %144 : vector<16x64xf32>
    %cst_92 = arith.constant 0.000000e+00 : f32
    %146 = vector.broadcast %cst_92 : f32 to vector<16x64xf32>
    %147 = arith.maximumf %145, %146 : vector<16x64xf32>
    %148 = arith.truncf %147 : vector<16x64xf32> to vector<16x64xbf16>
    %c0_93 = arith.constant 0 : index
    %c0_94 = arith.constant 0 : index
    %c0_95 = arith.constant 0 : index
    %149 = vector.load %arg12[%c0_93, %c0_94, %c0_95] : memref<1x64x32xbf16, #tpu.memory_space<vmem>>, vector<1x64x32xbf16>
    %150 = vector.shape_cast %149 : vector<1x64x32xbf16> to vector<64x32xbf16>
    %cst_96 = arith.constant dense<0.000000e+00> : vector<16x32xf32>
    %151 = tpu.matmul %148, %150, %cst_96 {dimension_numbers = #tpu.dot_dimension_numbers<[1], [0], [0], [1], [0, 0, 1, 1], [], []>} : vector<16x64xbf16>, vector<64x32xbf16>, vector<16x32xf32> -> vector<16x32xf32>
    %c0_97 = arith.constant 0 : index
    %c0_98 = arith.constant 0 : index
    %152 = vector.load %arg13[%c0_97, %c0_98] : memref<1x32xf32, #tpu.memory_space<vmem>>, vector<1x32xf32>
    %153 = vector.broadcast %152 : vector<1x32xf32> to vector<16x32xf32>
    %154 = arith.addf %151, %153 : vector<16x32xf32>
    %155 = arith.addf %154, %94 : vector<16x32xf32>
    %c0_99 = arith.constant 0 : index
    %c0_100 = arith.constant 0 : index
    %156 = vector.load %arg14[%c0_99, %c0_100] : memref<1x32xf32, #tpu.memory_space<vmem>>, vector<1x32xf32>
    %c0_101 = arith.constant 0 : index
    %c0_102 = arith.constant 0 : index
    %157 = vector.load %arg15[%c0_101, %c0_102] : memref<1x32xf32, #tpu.memory_space<vmem>>, vector<1x32xf32>
    %cst_103 = arith.constant dense<0.000000e+00> : vector<16xf32>
    %158 = vector.multi_reduction <add>, %155, %cst_103 [1] : vector<16x32xf32> to vector<16xf32>
    %159 = vector.shape_cast %158 : vector<16xf32> to vector<16x1xf32>
    %cst_104 = arith.constant 3.200000e+01 : f32
    %160 = vector.broadcast %cst_104 : f32 to vector<16x1xf32>
    %161 = arith.divf %159, %160 : vector<16x1xf32>
    %162 = vector.broadcast %161 : vector<16x1xf32> to vector<16x32xf32>
    %163 = arith.subf %155, %162 : vector<16x32xf32>
    %164 = arith.mulf %163, %163 : vector<16x32xf32>
    %cst_105 = arith.constant dense<0.000000e+00> : vector<16xf32>
    %165 = vector.multi_reduction <add>, %164, %cst_105 [1] : vector<16x32xf32> to vector<16xf32>
    %166 = vector.shape_cast %165 : vector<16xf32> to vector<16x1xf32>
    %cst_106 = arith.constant 3.200000e+01 : f32
    %167 = vector.broadcast %cst_106 : f32 to vector<16x1xf32>
    %168 = arith.divf %166, %167 : vector<16x1xf32>
    %169 = vector.broadcast %161 : vector<16x1xf32> to vector<16x32xf32>
    %170 = arith.subf %155, %169 : vector<16x32xf32>
    %cst_107 = arith.constant 9.99999974E-6 : f32
    %171 = vector.broadcast %cst_107 : f32 to vector<16x1xf32>
    %172 = arith.addf %168, %171 : vector<16x1xf32>
    %173 = math.rsqrt %172 : vector<16x1xf32>
    %174 = vector.broadcast %173 : vector<16x1xf32> to vector<16x32xf32>
    %175 = arith.mulf %170, %174 : vector<16x32xf32>
    %176 = vector.broadcast %156 : vector<1x32xf32> to vector<16x32xf32>
    %177 = arith.mulf %175, %176 : vector<16x32xf32>
    %178 = vector.broadcast %157 : vector<1x32xf32> to vector<16x32xf32>
    %179 = arith.addf %177, %178 : vector<16x32xf32>
    %180 = vector.broadcast %5 : vector<16x1xf32> to vector<16x32xf32>
    %181 = arith.mulf %179, %180 : vector<16x32xf32>
    %c0_108 = arith.constant 0 : index
    %c0_109 = arith.constant 0 : index
    %c0_110 = arith.constant 0 : index
    %182 = vector.load %arg16[%c0_108, %c0_109, %c0_110] : memref<1x16x32xf32, #tpu.memory_space<vmem>>, vector<1x16x32xf32>
    %183 = vector.shape_cast %182 : vector<1x16x32xf32> to vector<16x32xf32>
    %184 = vector.shape_cast %181 : vector<16x32xf32> to vector<1x16x32xf32>
    tpu.vector_store %arg16[%c0_108, %c0_109, %c0_110], %184 {strides = array<i32>} : memref<1x16x32xf32, #tpu.memory_space<vmem>>, vector<1x16x32xf32>,
    return
  }
  func.func @transform_0(%arg0: i32) -> (i32, i32, i32) {
    %c0_i32 = arith.constant 0 : i32
    %c0_i32_0 = arith.constant 0 : i32
    %c0_i32_1 = arith.constant 0 : i32
    return %arg0, %c0_i32, %c0_i32_0 : i32, i32, i32
  }
  func.func @transform_1(%arg0: i32) -> (i32, i32, i32) {
    %c0_i32 = arith.constant 0 : i32
    %c0_i32_0 = arith.constant 0 : i32
    %c0_i32_1 = arith.constant 0 : i32
    return %arg0, %c0_i32, %c0_i32_0 : i32, i32, i32
  }
  func.func @transform_2(%arg0: i32) -> (i32, i32, i32) {
    %c0_i32 = arith.constant 0 : i32
    %c0_i32_0 = arith.constant 0 : i32
    %c0_i32_1 = arith.constant 0 : i32
    return %arg0, %c0_i32, %c0_i32_0 : i32, i32, i32
  }
  func.func @transform_3(%arg0: i32) -> (i32, i32) {
    %c0_i32 = arith.constant 0 : i32
    %c0_i32_0 = arith.constant 0 : i32
    %c0_i32_1 = arith.constant 0 : i32
    return %c0_i32, %c0_i32_0 : i32, i32
  }
  func.func @transform_4(%arg0: i32) -> (i32, i32) {
    %c0_i32 = arith.constant 0 : i32
    %c0_i32_0 = arith.constant 0 : i32
    %c0_i32_1 = arith.constant 0 : i32
    return %c0_i32, %c0_i32_0 : i32, i32
  }
  func.func @transform_5(%arg0: i32) -> (i32, i32) {
    %c0_i32 = arith.constant 0 : i32
    %c0_i32_0 = arith.constant 0 : i32
    %c0_i32_1 = arith.constant 0 : i32
    return %c0_i32, %c0_i32_0 : i32, i32
  }
  func.func @transform_6(%arg0: i32) -> (i32, i32) {
    %c0_i32 = arith.constant 0 : i32
    %c0_i32_0 = arith.constant 0 : i32
    %c0_i32_1 = arith.constant 0 : i32
    return %c0_i32, %c0_i32_0 : i32, i32
  }
  func.func @transform_7(%arg0: i32) -> (i32, i32) {
    %c0_i32 = arith.constant 0 : i32
    %c0_i32_0 = arith.constant 0 : i32
    %c0_i32_1 = arith.constant 0 : i32
    return %c0_i32, %c0_i32_0 : i32, i32
  }
  func.func @transform_8(%arg0: i32) -> (i32, i32) {
    %c0_i32 = arith.constant 0 : i32
    %c0_i32_0 = arith.constant 0 : i32
    %c0_i32_1 = arith.constant 0 : i32
    return %c0_i32, %c0_i32_0 : i32, i32
  }
  func.func @transform_9(%arg0: i32) -> (i32, i32, i32) {
    %c0_i32 = arith.constant 0 : i32
    %c0_i32_0 = arith.constant 0 : i32
    %c0_i32_1 = arith.constant 0 : i32
    %c0_i32_2 = arith.constant 0 : i32
    return %c0_i32, %c0_i32_0, %c0_i32_1 : i32, i32, i32
  }
  func.func @transform_10(%arg0: i32) -> (i32, i32) {
    %c0_i32 = arith.constant 0 : i32
    %c0_i32_0 = arith.constant 0 : i32
    %c0_i32_1 = arith.constant 0 : i32
    return %c0_i32, %c0_i32_0 : i32, i32
  }
  func.func @transform_11(%arg0: i32) -> (i32, i32, i32) {
    %c0_i32 = arith.constant 0 : i32
    %c0_i32_0 = arith.constant 0 : i32
    %c0_i32_1 = arith.constant 0 : i32
    %c0_i32_2 = arith.constant 0 : i32
    return %c0_i32, %c0_i32_0, %c0_i32_1 : i32, i32, i32
  }
  func.func @transform_12(%arg0: i32) -> (i32, i32) {
    %c0_i32 = arith.constant 0 : i32
    %c0_i32_0 = arith.constant 0 : i32
    %c0_i32_1 = arith.constant 0 : i32
    return %c0_i32, %c0_i32_0 : i32, i32
  }
  func.func @transform_13(%arg0: i32) -> (i32, i32) {
    %c0_i32 = arith.constant 0 : i32
    %c0_i32_0 = arith.constant 0 : i32
    %c0_i32_1 = arith.constant 0 : i32
    return %c0_i32, %c0_i32_0 : i32, i32
  }
  func.func @transform_14(%arg0: i32) -> (i32, i32) {
    %c0_i32 = arith.constant 0 : i32
    %c0_i32_0 = arith.constant 0 : i32
    %c0_i32_1 = arith.constant 0 : i32
    return %c0_i32, %c0_i32_0 : i32, i32
  }
  func.func @transform_15(%arg0: i32) -> (i32, i32, i32) {
    %c0_i32 = arith.constant 0 : i32
    %c0_i32_0 = arith.constant 0 : i32
    %c0_i32_1 = arith.constant 0 : i32
    return %arg0, %c0_i32, %c0_i32_0 : i32, i32, i32
  }
  func.func @transform_16(%arg0: i32) -> (i32, i32, i32, i32) {
    %c0_i32 = arith.constant 0 : i32
    %c0_i32_0 = arith.constant 0 : i32
    %c0_i32_1 = arith.constant 0 : i32
    %c0_i32_2 = arith.constant 0 : i32
    return %c0_i32, %arg0, %c0_i32_0, %c0_i32_1 : i32, i32, i32, i32
  }
}

module attributes {stable_mosaic.version = 11 : i64} {
  func.func @fft_block_kernel(%arg0: i32, %arg1: memref<1x16x32xf32, #tpu.memory_space<vmem>>, %arg2: memref<1x1x16xf32, #tpu.memory_space<vmem>>, %arg3: memref<1x16x1xf32, #tpu.memory_space<vmem>>, %arg4: memref<32x96xbf16, #tpu.memory_space<vmem>>, %arg5: memref<1x96xf32, #tpu.memory_space<vmem>>, %arg6: memref<32x32xbf16, #tpu.memory_space<vmem>>, %arg7: memref<1x32xf32, #tpu.memory_space<vmem>>, %arg8: memref<1x32xf32, #tpu.memory_space<vmem>>, %arg9: memref<1x32xf32, #tpu.memory_space<vmem>>, %arg10: memref<9x32x64xbf16, #tpu.memory_space<vmem>>, %arg11: memref<1x64xf32, #tpu.memory_space<vmem>>, %arg12: memref<1x64x32xbf16, #tpu.memory_space<vmem>>, %arg13: memref<1x32xf32, #tpu.memory_space<vmem>>, %arg14: memref<1x32xf32, #tpu.memory_space<vmem>>, %arg15: memref<1x32xf32, #tpu.memory_space<vmem>>, %arg16: memref<1x16x32xf32, #tpu.memory_space<vmem>>, %arg17: memref<2x1x16x16xbf16, #tpu.memory_space<vmem>>, %arg18: memref<16x32xbf16, #tpu.memory_space<vmem>>, %arg19: memref<48x32xbf16, #tpu.memory_space<vmem>>) attributes {dimension_semantics = [#tpu.dimension_semantics<parallel>], iteration_bounds = array<i64: 2>, scalar_prefetch = 0 : i64, scratch_operands = 2 : i64, tpu.core_type = #tpu.core_type<tc>, window_params = [{transform_indices = @transform_0, window_bounds = array<i64: 1, 16, 32>}, {transform_indices = @transform_1, window_bounds = array<i64: 1, 1, 16>}, {transform_indices = @transform_2, window_bounds = array<i64: 1, 16, 1>}, {pipeline_mode = #tpu.pipeline_mode<synchronous>, transform_indices = @transform_3, window_bounds = array<i64: 32, 96>}, {pipeline_mode = #tpu.pipeline_mode<synchronous>, transform_indices = @transform_4, window_bounds = array<i64: 1, 96>}, {pipeline_mode = #tpu.pipeline_mode<synchronous>, transform_indices = @transform_5, window_bounds = array<i64: 32, 32>}, {pipeline_mode = #tpu.pipeline_mode<synchronous>, transform_indices = @transform_6, window_bounds = array<i64: 1, 32>}, {pipeline_mode = #tpu.pipeline_mode<synchronous>, transform_indices = @transform_7, window_bounds = array<i64: 1, 32>}, {pipeline_mode = #tpu.pipeline_mode<synchronous>, transform_indices = @transform_8, window_bounds = array<i64: 1, 32>}, {pipeline_mode = #tpu.pipeline_mode<synchronous>, transform_indices = @transform_9, window_bounds = array<i64: 9, 32, 64>}, {pipeline_mode = #tpu.pipeline_mode<synchronous>, transform_indices = @transform_10, window_bounds = array<i64: 1, 64>}, {pipeline_mode = #tpu.pipeline_mode<synchronous>, transform_indices = @transform_11, window_bounds = array<i64: 1, 64, 32>}, {pipeline_mode = #tpu.pipeline_mode<synchronous>, transform_indices = @transform_12, window_bounds = array<i64: 1, 32>}, {pipeline_mode = #tpu.pipeline_mode<synchronous>, transform_indices = @transform_13, window_bounds = array<i64: 1, 32>}, {pipeline_mode = #tpu.pipeline_mode<synchronous>, transform_indices = @transform_14, window_bounds = array<i64: 1, 32>}, {transform_indices = @transform_15, window_bounds = array<i64: 1, 16, 32>}, {transform_indices = @transform_16, window_bounds = array<i64: 2, 1, 16, 16>}]} {
    %c0 = arith.constant 0 : index
    %c0_0 = arith.constant 0 : index
    %c0_1 = arith.constant 0 : index
    %0 = vector.load %arg1[%c0, %c0_0, %c0_1] : memref<1x16x32xf32, #tpu.memory_space<vmem>>, vector<1x16x32xf32>
    %1 = vector.shape_cast %0 : vector<1x16x32xf32> to vector<16x32xf32>
    %c0_2 = arith.constant 0 : index
    %c0_3 = arith.constant 0 : index
    %c0_4 = arith.constant 0 : index
    %2 = vector.load %arg2[%c0_2, %c0_3, %c0_4] : memref<1x1x16xf32, #tpu.memory_space<vmem>>, vector<1x1x16xf32>
    %3 = vector.shape_cast %2 : vector<1x1x16xf32> to vector<1x16xf32>
    %c0_5 = arith.constant 0 : index
    %c0_6 = arith.constant 0 : index
    %c0_7 = arith.constant 0 : index
    %4 = vector.load %arg3[%c0_5, %c0_6, %c0_7] : memref<1x16x1xf32, #tpu.memory_space<vmem>>, vector<1x16x1xf32>
    %5 = vector.shape_cast %4 : vector<1x16x1xf32> to vector<16x1xf32>
    %6 = arith.truncf %1 : vector<16x32xf32> to vector<16x32xbf16>
    %c0_8 = arith.constant 0 : index
    %c0_9 = arith.constant 0 : index
    %7 = vector.load %arg4[%c0_8, %c0_9] : memref<32x96xbf16, #tpu.memory_space<vmem>>, vector<32x96xbf16>
    %cst = arith.constant dense<0.000000e+00> : vector<16x96xf32>
    %8 = tpu.matmul %6, %7, %cst {dimension_numbers = #tpu.dot_dimension_numbers<[1], [0], [0], [1], [0, 0, 1, 1], [], []>} : vector<16x32xbf16>, vector<32x96xbf16>, vector<16x96xf32> -> vector<16x96xf32>
    %c0_10 = arith.constant 0 : index
    %c0_11 = arith.constant 0 : index
    %9 = vector.load %arg5[%c0_10, %c0_11] : memref<1x96xf32, #tpu.memory_space<vmem>>, vector<1x96xf32>
    %10 = vector.broadcast %9 : vector<1x96xf32> to vector<16x96xf32>
    %11 = arith.addf %8, %10 : vector<16x96xf32>
    %12 = arith.truncf %11 : vector<16x96xf32> to vector<16x96xbf16>
    %13 = vector.extract_strided_slice %12 {offsets = [0, 0], sizes = [16, 32], strides = [1, 1]} : vector<16x96xbf16> to vector<16x32xbf16>
    %14 = vector.extract_strided_slice %12 {offsets = [0, 32], sizes = [16, 32], strides = [1, 1]} : vector<16x96xbf16> to vector<16x32xbf16>
    %15 = vector.extract_strided_slice %12 {offsets = [0, 64], sizes = [16, 32], strides = [1, 1]} : vector<16x96xbf16> to vector<16x32xbf16>
    %16 = vector.extract_strided_slice %13 {offsets = [0, 0], sizes = [16, 16], strides = [1, 1]} : vector<16x32xbf16> to vector<16x16xbf16>
    %17 = vector.extract_strided_slice %14 {offsets = [0, 0], sizes = [16, 16], strides = [1, 1]} : vector<16x32xbf16> to vector<16x16xbf16>
    %18 = vector.extract_strided_slice %15 {offsets = [0, 0], sizes = [16, 16], strides = [1, 1]} : vector<16x32xbf16> to vector<16x16xbf16>
    %cst_12 = arith.constant dense<0.000000e+00> : vector<16x16xf32>
    %19 = tpu.matmul %16, %17, %cst_12 {dimension_numbers = #tpu.dot_dimension_numbers<[1], [1], [0], [0], [0, 0, 1, 0], [], []>} : vector<16x16xbf16>, vector<16x16xbf16>, vector<16x16xf32> -> vector<16x16xf32>
    %20 = vector.broadcast %3 : vector<1x16xf32> to vector<16x16xf32>
    %21 = arith.addf %19, %20 : vector<16x16xf32>
    %cst_13 = arith.constant dense<0xFF800000> : vector<16xf32>
    %22 = vector.multi_reduction <maximumf>, %21, %cst_13 [1] : vector<16x16xf32> to vector<16xf32>
    %23 = vector.shape_cast %22 : vector<16xf32> to vector<16x1xf32>
    %24 = vector.broadcast %23 : vector<16x1xf32> to vector<16x16xf32>
    %25 = arith.subf %21, %24 : vector<16x16xf32>
    %26 = math.exp %25 : vector<16x16xf32>
    %cst_14 = arith.constant dense<0.000000e+00> : vector<16xf32>
    %27 = vector.multi_reduction <add>, %26, %cst_14 [1] : vector<16x16xf32> to vector<16xf32>
    %28 = vector.shape_cast %27 : vector<16xf32> to vector<16x1xf32>
    %29 = tpu.reciprocal %28 {approx = true} : vector<16x1xf32> -> vector<16x1xf32>
    %30 = vector.broadcast %29 : vector<16x1xf32> to vector<16x16xf32>
    %31 = arith.mulf %26, %30 : vector<16x16xf32>
    %32 = arith.truncf %31 : vector<16x16xf32> to vector<16x16xbf16>
    %c0_15 = arith.constant 0 : index
    %c0_16 = arith.constant 0 : index
    %c0_17 = arith.constant 0 : index
    %c0_18 = arith.constant 0 : index
    %33 = vector.load %arg17[%c0_15, %c0_16, %c0_17, %c0_18] : memref<2x1x16x16xbf16, #tpu.memory_space<vmem>>, vector<1x1x16x16xbf16>
    %34 = vector.shape_cast %33 : vector<1x1x16x16xbf16> to vector<16x16xbf16>
    %35 = vector.shape_cast %32 : vector<16x16xbf16> to vector<1x1x16x16xbf16>
    tpu.vector_store %arg17[%c0_15, %c0_16, %c0_17, %c0_18], %35 {strides = array<i32>} : memref<2x1x16x16xbf16, #tpu.memory_space<vmem>>, vector<1x1x16x16xbf16>,
    %cst_19 = arith.constant dense<0.000000e+00> : vector<16x16xf32>
    %36 = tpu.matmul %32, %18, %cst_19 {dimension_numbers = #tpu.dot_dimension_numbers<[1], [0], [0], [1], [0, 0, 1, 1], [], []>} : vector<16x16xbf16>, vector<16x16xbf16>, vector<16x16xf32> -> vector<16x16xf32>
    %37 = arith.truncf %36 : vector<16x16xf32> to vector<16x16xbf16>
    %c0_20 = arith.constant 0 : index
    %c0_21 = arith.constant 0 : index
    %38 = vector.load %arg18[%c0_20, %c0_21] : memref<16x32xbf16, #tpu.memory_space<vmem>>, vector<16x16xbf16>
    tpu.vector_store %arg18[%c0_20, %c0_21], %37 {strides = array<i32>} : memref<16x32xbf16, #tpu.memory_space<vmem>>, vector<16x16xbf16>,
    %39 = vector.extract_strided_slice %13 {offsets = [0, 16], sizes = [16, 16], strides = [1, 1]} : vector<16x32xbf16> to vector<16x16xbf16>
    %40 = vector.extract_strided_slice %14 {offsets = [0, 16], sizes = [16, 16], strides = [1, 1]} : vector<16x32xbf16> to vector<16x16xbf16>
    %41 = vector.extract_strided_slice %15 {offsets = [0, 16], sizes = [16, 16], strides = [1, 1]} : vector<16x32xbf16> to vector<16x16xbf16>
    %cst_22 = arith.constant dense<0.000000e+00> : vector<16x16xf32>
    %42 = tpu.matmul %39, %40, %cst_22 {dimension_numbers = #tpu.dot_dimension_numbers<[1], [1], [0], [0], [0, 0, 1, 0], [], []>} : vector<16x16xbf16>, vector<16x16xbf16>, vector<16x16xf32> -> vector<16x16xf32>
    %43 = vector.broadcast %3 : vector<1x16xf32> to vector<16x16xf32>
    %44 = arith.addf %42, %43 : vector<16x16xf32>
    %cst_23 = arith.constant dense<0xFF800000> : vector<16xf32>
    %45 = vector.multi_reduction <maximumf>, %44, %cst_23 [1] : vector<16x16xf32> to vector<16xf32>
    %46 = vector.shape_cast %45 : vector<16xf32> to vector<16x1xf32>
    %47 = vector.broadcast %46 : vector<16x1xf32> to vector<16x16xf32>
    %48 = arith.subf %44, %47 : vector<16x16xf32>
    %49 = math.exp %48 : vector<16x16xf32>
    %cst_24 = arith.constant dense<0.000000e+00> : vector<16xf32>
    %50 = vector.multi_reduction <add>, %49, %cst_24 [1] : vector<16x16xf32> to vector<16xf32>
    %51 = vector.shape_cast %50 : vector<16xf32> to vector<16x1xf32>
    %52 = tpu.reciprocal %51 {approx = true} : vector<16x1xf32> -> vector<16x1xf32>
    %53 = vector.broadcast %52 : vector<16x1xf32> to vector<16x16xf32>
    %54 = arith.mulf %49, %53 : vector<16x16xf32>
    %55 = arith.truncf %54 : vector<16x16xf32> to vector<16x16xbf16>
    %c1 = arith.constant 1 : index
    %c0_25 = arith.constant 0 : index
    %c0_26 = arith.constant 0 : index
    %c0_27 = arith.constant 0 : index
    %56 = vector.load %arg17[%c1, %c0_25, %c0_26, %c0_27] : memref<2x1x16x16xbf16, #tpu.memory_space<vmem>>, vector<1x1x16x16xbf16>
    %57 = vector.shape_cast %56 : vector<1x1x16x16xbf16> to vector<16x16xbf16>
    %58 = vector.shape_cast %55 : vector<16x16xbf16> to vector<1x1x16x16xbf16>
    tpu.vector_store %arg17[%c1, %c0_25, %c0_26, %c0_27], %58 {strides = array<i32>} : memref<2x1x16x16xbf16, #tpu.memory_space<vmem>>, vector<1x1x16x16xbf16>,
    %cst_28 = arith.constant dense<0.000000e+00> : vector<16x16xf32>
    %59 = tpu.matmul %55, %41, %cst_28 {dimension_numbers = #tpu.dot_dimension_numbers<[1], [0], [0], [1], [0, 0, 1, 1], [], []>} : vector<16x16xbf16>, vector<16x16xbf16>, vector<16x16xf32> -> vector<16x16xf32>
    %60 = arith.truncf %59 : vector<16x16xf32> to vector<16x16xbf16>
    %c0_29 = arith.constant 0 : index
    %c16 = arith.constant 16 : index
    %61 = vector.load %arg18[%c0_29, %c16] : memref<16x32xbf16, #tpu.memory_space<vmem>>, vector<16x16xbf16>
    tpu.vector_store %arg18[%c0_29, %c16], %60 {strides = array<i32>} : memref<16x32xbf16, #tpu.memory_space<vmem>>, vector<16x16xbf16>,
    %c0_30 = arith.constant 0 : index
    %c0_31 = arith.constant 0 : index
    %62 = vector.load %arg18[%c0_30, %c0_31] : memref<16x32xbf16, #tpu.memory_space<vmem>>, vector<16x32xbf16>
    %c0_32 = arith.constant 0 : index
    %c0_33 = arith.constant 0 : index
    %63 = vector.load %arg6[%c0_32, %c0_33] : memref<32x32xbf16, #tpu.memory_space<vmem>>, vector<32x32xbf16>
    %cst_34 = arith.constant dense<0.000000e+00> : vector<16x32xf32>
    %64 = tpu.matmul %62, %63, %cst_34 {dimension_numbers = #tpu.dot_dimension_numbers<[1], [0], [0], [1], [0, 0, 1, 1], [], []>} : vector<16x32xbf16>, vector<32x32xbf16>, vector<16x32xf32> -> vector<16x32xf32>
    %c0_35 = arith.constant 0 : index
    %c0_36 = arith.constant 0 : index
    %65 = vector.load %arg7[%c0_35, %c0_36] : memref<1x32xf32, #tpu.memory_space<vmem>>, vector<1x32xf32>
    %66 = vector.broadcast %65 : vector<1x32xf32> to vector<16x32xf32>
    %67 = arith.addf %64, %66 : vector<16x32xf32>
    %68 = arith.addf %67, %1 : vector<16x32xf32>
    %c0_37 = arith.constant 0 : index
    %c0_38 = arith.constant 0 : index
    %69 = vector.load %arg8[%c0_37, %c0_38] : memref<1x32xf32, #tpu.memory_space<vmem>>, vector<1x32xf32>
    %c0_39 = arith.constant 0 : index
    %c0_40 = arith.constant 0 : index
    %70 = vector.load %arg9[%c0_39, %c0_40] : memref<1x32xf32, #tpu.memory_space<vmem>>, vector<1x32xf32>
    %cst_41 = arith.constant dense<0.000000e+00> : vector<16xf32>
    %71 = vector.multi_reduction <add>, %68, %cst_41 [1] : vector<16x32xf32> to vector<16xf32>
    %72 = vector.shape_cast %71 : vector<16xf32> to vector<16x1xf32>
    %cst_42 = arith.constant 3.200000e+01 : f32
    %73 = vector.broadcast %cst_42 : f32 to vector<16x1xf32>
    %74 = arith.divf %72, %73 : vector<16x1xf32>
    %75 = vector.broadcast %74 : vector<16x1xf32> to vector<16x32xf32>
    %76 = arith.subf %68, %75 : vector<16x32xf32>
    %77 = arith.mulf %76, %76 : vector<16x32xf32>
    %cst_43 = arith.constant dense<0.000000e+00> : vector<16xf32>
    %78 = vector.multi_reduction <add>, %77, %cst_43 [1] : vector<16x32xf32> to vector<16xf32>
    %79 = vector.shape_cast %78 : vector<16xf32> to vector<16x1xf32>
    %cst_44 = arith.constant 3.200000e+01 : f32
    %80 = vector.broadcast %cst_44 : f32 to vector<16x1xf32>
    %81 = arith.divf %79, %80 : vector<16x1xf32>
    %82 = vector.broadcast %74 : vector<16x1xf32> to vector<16x32xf32>
    %83 = arith.subf %68, %82 : vector<16x32xf32>
    %cst_45 = arith.constant 9.99999974E-6 : f32
    %84 = vector.broadcast %cst_45 : f32 to vector<16x1xf32>
    %85 = arith.addf %81, %84 : vector<16x1xf32>
    %86 = math.rsqrt %85 : vector<16x1xf32>
    %87 = vector.broadcast %86 : vector<16x1xf32> to vector<16x32xf32>
    %88 = arith.mulf %83, %87 : vector<16x32xf32>
    %89 = vector.broadcast %69 : vector<1x32xf32> to vector<16x32xf32>
    %90 = arith.mulf %88, %89 : vector<16x32xf32>
    %91 = vector.broadcast %70 : vector<1x32xf32> to vector<16x32xf32>
    %92 = arith.addf %90, %91 : vector<16x32xf32>
    %93 = vector.broadcast %5 : vector<16x1xf32> to vector<16x32xf32>
    %94 = arith.mulf %92, %93 : vector<16x32xf32>
    %cst_46 = arith.constant 0.000000e+00 : bf16
    %95 = vector.broadcast %cst_46 : bf16 to vector<48x32xbf16>
    %c0_47 = arith.constant 0 : index
    %c0_48 = arith.constant 0 : index
    %96 = vector.load %arg19[%c0_47, %c0_48] : memref<48x32xbf16, #tpu.memory_space<vmem>>, vector<48x32xbf16>
    tpu.vector_store %arg19[%c0_47, %c0_48], %95 {strides = array<i32>} : memref<48x32xbf16, #tpu.memory_space<vmem>>, vector<48x32xbf16>,
    %97 = arith.truncf %94 : vector<16x32xf32> to vector<16x32xbf16>
    %c16_49 = arith.constant 16 : index
    %c0_50 = arith.constant 0 : index
    %98 = vector.load %arg19[%c16_49, %c0_50] : memref<48x32xbf16, #tpu.memory_space<vmem>>, vector<16x32xbf16>
    tpu.vector_store %arg19[%c16_49, %c0_50], %97 {strides = array<i32>} : memref<48x32xbf16, #tpu.memory_space<vmem>>, vector<16x32xbf16>,
    %c12 = arith.constant 12 : index
    %c0_51 = arith.constant 0 : index
    %99 = vector.load %arg19[%c12, %c0_51] : memref<48x32xbf16, #tpu.memory_space<vmem>>, vector<16x32xbf16>
    %c0_52 = arith.constant 0 : index
    %c0_53 = arith.constant 0 : index
    %c0_54 = arith.constant 0 : index
    %100 = vector.load %arg10[%c0_52, %c0_53, %c0_54] : memref<9x32x64xbf16, #tpu.memory_space<vmem>>, vector<1x32x64xbf16>
    %101 = vector.shape_cast %100 : vector<1x32x64xbf16> to vector<32x64xbf16>
    %cst_55 = arith.constant dense<0.000000e+00> : vector<16x64xf32>
    %102 = tpu.matmul %99, %101, %cst_55 {dimension_numbers = #tpu.dot_dimension_numbers<[1], [0], [0], [1], [0, 0, 1, 1], [], []>} : vector<16x32xbf16>, vector<32x64xbf16>, vector<16x64xf32> -> vector<16x64xf32>
    %c13 = arith.constant 13 : index
    %c0_56 = arith.constant 0 : index
    %103 = vector.load %arg19[%c13, %c0_56] : memref<48x32xbf16, #tpu.memory_space<vmem>>, vector<16x32xbf16>
    %c1_57 = arith.constant 1 : index
    %c0_58 = arith.constant 0 : index
    %c0_59 = arith.constant 0 : index
    %104 = vector.load %arg10[%c1_57, %c0_58, %c0_59] : memref<9x32x64xbf16, #tpu.memory_space<vmem>>, vector<1x32x64xbf16>
    %105 = vector.shape_cast %104 : vector<1x32x64xbf16> to vector<32x64xbf16>
    %cst_60 = arith.constant dense<0.000000e+00> : vector<16x64xf32>
    %106 = tpu.matmul %103, %105, %cst_60 {dimension_numbers = #tpu.dot_dimension_numbers<[1], [0], [0], [1], [0, 0, 1, 1], [], []>} : vector<16x32xbf16>, vector<32x64xbf16>, vector<16x64xf32> -> vector<16x64xf32>
    %107 = arith.addf %102, %106 : vector<16x64xf32>
    %c14 = arith.constant 14 : index
    %c0_61 = arith.constant 0 : index
    %108 = vector.load %arg19[%c14, %c0_61] : memref<48x32xbf16, #tpu.memory_space<vmem>>, vector<16x32xbf16>
    %c2 = arith.constant 2 : index
    %c0_62 = arith.constant 0 : index
    %c0_63 = arith.constant 0 : index
    %109 = vector.load %arg10[%c2, %c0_62, %c0_63] : memref<9x32x64xbf16, #tpu.memory_space<vmem>>, vector<1x32x64xbf16>
    %110 = vector.shape_cast %109 : vector<1x32x64xbf16> to vector<32x64xbf16>
    %cst_64 = arith.constant dense<0.000000e+00> : vector<16x64xf32>
    %111 = tpu.matmul %108, %110, %cst_64 {dimension_numbers = #tpu.dot_dimension_numbers<[1], [0], [0], [1], [0, 0, 1, 1], [], []>} : vector<16x32xbf16>, vector<32x64xbf16>, vector<16x64xf32> -> vector<16x64xf32>
    %112 = arith.addf %107, %111 : vector<16x64xf32>
    %c15 = arith.constant 15 : index
    %c0_65 = arith.constant 0 : index
    %113 = vector.load %arg19[%c15, %c0_65] : memref<48x32xbf16, #tpu.memory_space<vmem>>, vector<16x32xbf16>
    %c3 = arith.constant 3 : index
    %c0_66 = arith.constant 0 : index
    %c0_67 = arith.constant 0 : index
    %114 = vector.load %arg10[%c3, %c0_66, %c0_67] : memref<9x32x64xbf16, #tpu.memory_space<vmem>>, vector<1x32x64xbf16>
    %115 = vector.shape_cast %114 : vector<1x32x64xbf16> to vector<32x64xbf16>
    %cst_68 = arith.constant dense<0.000000e+00> : vector<16x64xf32>
    %116 = tpu.matmul %113, %115, %cst_68 {dimension_numbers = #tpu.dot_dimension_numbers<[1], [0], [0], [1], [0, 0, 1, 1], [], []>} : vector<16x32xbf16>, vector<32x64xbf16>, vector<16x64xf32> -> vector<16x64xf32>
    %117 = arith.addf %112, %116 : vector<16x64xf32>
    %c16_69 = arith.constant 16 : index
    %c0_70 = arith.constant 0 : index
    %118 = vector.load %arg19[%c16_69, %c0_70] : memref<48x32xbf16, #tpu.memory_space<vmem>>, vector<16x32xbf16>
    %c4 = arith.constant 4 : index
    %c0_71 = arith.constant 0 : index
    %c0_72 = arith.constant 0 : index
    %119 = vector.load %arg10[%c4, %c0_71, %c0_72] : memref<9x32x64xbf16, #tpu.memory_space<vmem>>, vector<1x32x64xbf16>
    %120 = vector.shape_cast %119 : vector<1x32x64xbf16> to vector<32x64xbf16>
    %cst_73 = arith.constant dense<0.000000e+00> : vector<16x64xf32>
    %121 = tpu.matmul %118, %120, %cst_73 {dimension_numbers = #tpu.dot_dimension_numbers<[1], [0], [0], [1], [0, 0, 1, 1], [], []>} : vector<16x32xbf16>, vector<32x64xbf16>, vector<16x64xf32> -> vector<16x64xf32>
    %122 = arith.addf %117, %121 : vector<16x64xf32>
    %c17 = arith.constant 17 : index
    %c0_74 = arith.constant 0 : index
    %123 = vector.load %arg19[%c17, %c0_74] : memref<48x32xbf16, #tpu.memory_space<vmem>>, vector<16x32xbf16>
    %c5 = arith.constant 5 : index
    %c0_75 = arith.constant 0 : index
    %c0_76 = arith.constant 0 : index
    %124 = vector.load %arg10[%c5, %c0_75, %c0_76] : memref<9x32x64xbf16, #tpu.memory_space<vmem>>, vector<1x32x64xbf16>
    %125 = vector.shape_cast %124 : vector<1x32x64xbf16> to vector<32x64xbf16>
    %cst_77 = arith.constant dense<0.000000e+00> : vector<16x64xf32>
    %126 = tpu.matmul %123, %125, %cst_77 {dimension_numbers = #tpu.dot_dimension_numbers<[1], [0], [0], [1], [0, 0, 1, 1], [], []>} : vector<16x32xbf16>, vector<32x64xbf16>, vector<16x64xf32> -> vector<16x64xf32>
    %127 = arith.addf %122, %126 : vector<16x64xf32>
    %c18 = arith.constant 18 : index
    %c0_78 = arith.constant 0 : index
    %128 = vector.load %arg19[%c18, %c0_78] : memref<48x32xbf16, #tpu.memory_space<vmem>>, vector<16x32xbf16>
    %c6 = arith.constant 6 : index
    %c0_79 = arith.constant 0 : index
    %c0_80 = arith.constant 0 : index
    %129 = vector.load %arg10[%c6, %c0_79, %c0_80] : memref<9x32x64xbf16, #tpu.memory_space<vmem>>, vector<1x32x64xbf16>
    %130 = vector.shape_cast %129 : vector<1x32x64xbf16> to vector<32x64xbf16>
    %cst_81 = arith.constant dense<0.000000e+00> : vector<16x64xf32>
    %131 = tpu.matmul %128, %130, %cst_81 {dimension_numbers = #tpu.dot_dimension_numbers<[1], [0], [0], [1], [0, 0, 1, 1], [], []>} : vector<16x32xbf16>, vector<32x64xbf16>, vector<16x64xf32> -> vector<16x64xf32>
    %132 = arith.addf %127, %131 : vector<16x64xf32>
    %c19 = arith.constant 19 : index
    %c0_82 = arith.constant 0 : index
    %133 = vector.load %arg19[%c19, %c0_82] : memref<48x32xbf16, #tpu.memory_space<vmem>>, vector<16x32xbf16>
    %c7 = arith.constant 7 : index
    %c0_83 = arith.constant 0 : index
    %c0_84 = arith.constant 0 : index
    %134 = vector.load %arg10[%c7, %c0_83, %c0_84] : memref<9x32x64xbf16, #tpu.memory_space<vmem>>, vector<1x32x64xbf16>
    %135 = vector.shape_cast %134 : vector<1x32x64xbf16> to vector<32x64xbf16>
    %cst_85 = arith.constant dense<0.000000e+00> : vector<16x64xf32>
    %136 = tpu.matmul %133, %135, %cst_85 {dimension_numbers = #tpu.dot_dimension_numbers<[1], [0], [0], [1], [0, 0, 1, 1], [], []>} : vector<16x32xbf16>, vector<32x64xbf16>, vector<16x64xf32> -> vector<16x64xf32>
    %137 = arith.addf %132, %136 : vector<16x64xf32>
    %c20 = arith.constant 20 : index
    %c0_86 = arith.constant 0 : index
    %138 = vector.load %arg19[%c20, %c0_86] : memref<48x32xbf16, #tpu.memory_space<vmem>>, vector<16x32xbf16>
    %c8 = arith.constant 8 : index
    %c0_87 = arith.constant 0 : index
    %c0_88 = arith.constant 0 : index
    %139 = vector.load %arg10[%c8, %c0_87, %c0_88] : memref<9x32x64xbf16, #tpu.memory_space<vmem>>, vector<1x32x64xbf16>
    %140 = vector.shape_cast %139 : vector<1x32x64xbf16> to vector<32x64xbf16>
    %cst_89 = arith.constant dense<0.000000e+00> : vector<16x64xf32>
    %141 = tpu.matmul %138, %140, %cst_89 {dimension_numbers = #tpu.dot_dimension_numbers<[1], [0], [0], [1], [0, 0, 1, 1], [], []>} : vector<16x32xbf16>, vector<32x64xbf16>, vector<16x64xf32> -> vector<16x64xf32>
    %142 = arith.addf %137, %141 : vector<16x64xf32>
    %c0_90 = arith.constant 0 : index
    %c0_91 = arith.constant 0 : index
    %143 = vector.load %arg11[%c0_90, %c0_91] : memref<1x64xf32, #tpu.memory_space<vmem>>, vector<1x64xf32>
    %144 = vector.broadcast %143 : vector<1x64xf32> to vector<16x64xf32>
    %145 = arith.addf %142, %144 : vector<16x64xf32>
    %cst_92 = arith.constant 0.000000e+00 : f32
    %146 = vector.broadcast %cst_92 : f32 to vector<16x64xf32>
    %147 = arith.maximumf %145, %146 : vector<16x64xf32>
    %148 = arith.truncf %147 : vector<16x64xf32> to vector<16x64xbf16>
    %c0_93 = arith.constant 0 : index
    %c0_94 = arith.constant 0 : index
    %c0_95 = arith.constant 0 : index
    %149 = vector.load %arg12[%c0_93, %c0_94, %c0_95] : memref<1x64x32xbf16, #tpu.memory_space<vmem>>, vector<1x64x32xbf16>
    %150 = vector.shape_cast %149 : vector<1x64x32xbf16> to vector<64x32xbf16>
    %cst_96 = arith.constant dense<0.000000e+00> : vector<16x32xf32>
    %151 = tpu.matmul %148, %150, %cst_96 {dimension_numbers = #tpu.dot_dimension_numbers<[1], [0], [0], [1], [0, 0, 1, 1], [], []>} : vector<16x64xbf16>, vector<64x32xbf16>, vector<16x32xf32> -> vector<16x32xf32>
    %c0_97 = arith.constant 0 : index
    %c0_98 = arith.constant 0 : index
    %152 = vector.load %arg13[%c0_97, %c0_98] : memref<1x32xf32, #tpu.memory_space<vmem>>, vector<1x32xf32>
    %153 = vector.broadcast %152 : vector<1x32xf32> to vector<16x32xf32>
    %154 = arith.addf %151, %153 : vector<16x32xf32>
    %155 = arith.addf %154, %94 : vector<16x32xf32>
    %c0_99 = arith.constant 0 : index
    %c0_100 = arith.constant 0 : index
    %156 = vector.load %arg14[%c0_99, %c0_100] : memref<1x32xf32, #tpu.memory_space<vmem>>, vector<1x32xf32>
    %c0_101 = arith.constant 0 : index
    %c0_102 = arith.constant 0 : index
    %157 = vector.load %arg15[%c0_101, %c0_102] : memref<1x32xf32, #tpu.memory_space<vmem>>, vector<1x32xf32>
    %cst_103 = arith.constant dense<0.000000e+00> : vector<16xf32>
    %158 = vector.multi_reduction <add>, %155, %cst_103 [1] : vector<16x32xf32> to vector<16xf32>
    %159 = vector.shape_cast %158 : vector<16xf32> to vector<16x1xf32>
    %cst_104 = arith.constant 3.200000e+01 : f32
    %160 = vector.broadcast %cst_104 : f32 to vector<16x1xf32>
    %161 = arith.divf %159, %160 : vector<16x1xf32>
    %162 = vector.broadcast %161 : vector<16x1xf32> to vector<16x32xf32>
    %163 = arith.subf %155, %162 : vector<16x32xf32>
    %164 = arith.mulf %163, %163 : vector<16x32xf32>
    %cst_105 = arith.constant dense<0.000000e+00> : vector<16xf32>
    %165 = vector.multi_reduction <add>, %164, %cst_105 [1] : vector<16x32xf32> to vector<16xf32>
    %166 = vector.shape_cast %165 : vector<16xf32> to vector<16x1xf32>
    %cst_106 = arith.constant 3.200000e+01 : f32
    %167 = vector.broadcast %cst_106 : f32 to vector<16x1xf32>
    %168 = arith.divf %166, %167 : vector<16x1xf32>
    %169 = vector.broadcast %161 : vector<16x1xf32> to vector<16x32xf32>
    %170 = arith.subf %155, %169 : vector<16x32xf32>
    %cst_107 = arith.constant 9.99999974E-6 : f32
    %171 = vector.broadcast %cst_107 : f32 to vector<16x1xf32>
    %172 = arith.addf %168, %171 : vector<16x1xf32>
    %173 = math.rsqrt %172 : vector<16x1xf32>
    %174 = vector.broadcast %173 : vector<16x1xf32> to vector<16x32xf32>
    %175 = arith.mulf %170, %174 : vector<16x32xf32>
    %176 = vector.broadcast %156 : vector<1x32xf32> to vector<16x32xf32>
    %177 = arith.mulf %175, %176 : vector<16x32xf32>
    %178 = vector.broadcast %157 : vector<1x32xf32> to vector<16x32xf32>
    %179 = arith.addf %177, %178 : vector<16x32xf32>
    %180 = vector.broadcast %5 : vector<16x1xf32> to vector<16x32xf32>
    %181 = arith.mulf %179, %180 : vector<16x32xf32>
    %c0_108 = arith.constant 0 : index
    %c0_109 = arith.constant 0 : index
    %c0_110 = arith.constant 0 : index
    %182 = vector.load %arg16[%c0_108, %c0_109, %c0_110] : memref<1x16x32xf32, #tpu.memory_space<vmem>>, vector<1x16x32xf32>
    %183 = vector.shape_cast %182 : vector<1x16x32xf32> to vector<16x32xf32>
    %184 = vector.shape_cast %181 : vector<16x32xf32> to vector<1x16x32xf32>
    tpu.vector_store %arg16[%c0_108, %c0_109, %c0_110], %184 {strides = array<i32>} : memref<1x16x32xf32, #tpu.memory_space<vmem>>, vector<1x16x32xf32>,
    return
  }
  func.func @transform_0(%arg0: i32) -> (i32, i32, i32) {
    %c0_i32 = arith.constant 0 : i32
    %c0_i32_0 = arith.constant 0 : i32
    %c0_i32_1 = arith.constant 0 : i32
    return %arg0, %c0_i32, %c0_i32_0 : i32, i32, i32
  }
  func.func @transform_1(%arg0: i32) -> (i32, i32, i32) {
    %c0_i32 = arith.constant 0 : i32
    %c0_i32_0 = arith.constant 0 : i32
    %c0_i32_1 = arith.constant 0 : i32
    return %arg0, %c0_i32, %c0_i32_0 : i32, i32, i32
  }
  func.func @transform_2(%arg0: i32) -> (i32, i32, i32) {
    %c0_i32 = arith.constant 0 : i32
    %c0_i32_0 = arith.constant 0 : i32
    %c0_i32_1 = arith.constant 0 : i32
    return %arg0, %c0_i32, %c0_i32_0 : i32, i32, i32
  }
  func.func @transform_3(%arg0: i32) -> (i32, i32) {
    %c0_i32 = arith.constant 0 : i32
    %c0_i32_0 = arith.constant 0 : i32
    %c0_i32_1 = arith.constant 0 : i32
    return %c0_i32, %c0_i32_0 : i32, i32
  }
  func.func @transform_4(%arg0: i32) -> (i32, i32) {
    %c0_i32 = arith.constant 0 : i32
    %c0_i32_0 = arith.constant 0 : i32
    %c0_i32_1 = arith.constant 0 : i32
    return %c0_i32, %c0_i32_0 : i32, i32
  }
  func.func @transform_5(%arg0: i32) -> (i32, i32) {
    %c0_i32 = arith.constant 0 : i32
    %c0_i32_0 = arith.constant 0 : i32
    %c0_i32_1 = arith.constant 0 : i32
    return %c0_i32, %c0_i32_0 : i32, i32
  }
  func.func @transform_6(%arg0: i32) -> (i32, i32) {
    %c0_i32 = arith.constant 0 : i32
    %c0_i32_0 = arith.constant 0 : i32
    %c0_i32_1 = arith.constant 0 : i32
    return %c0_i32, %c0_i32_0 : i32, i32
  }
  func.func @transform_7(%arg0: i32) -> (i32, i32) {
    %c0_i32 = arith.constant 0 : i32
    %c0_i32_0 = arith.constant 0 : i32
    %c0_i32_1 = arith.constant 0 : i32
    return %c0_i32, %c0_i32_0 : i32, i32
  }
  func.func @transform_8(%arg0: i32) -> (i32, i32) {
    %c0_i32 = arith.constant 0 : i32
    %c0_i32_0 = arith.constant 0 : i32
    %c0_i32_1 = arith.constant 0 : i32
    return %c0_i32, %c0_i32_0 : i32, i32
  }
  func.func @transform_9(%arg0: i32) -> (i32, i32, i32) {
    %c0_i32 = arith.constant 0 : i32
    %c0_i32_0 = arith.constant 0 : i32
    %c0_i32_1 = arith.constant 0 : i32
    %c0_i32_2 = arith.constant 0 : i32
    return %c0_i32, %c0_i32_0, %c0_i32_1 : i32, i32, i32
  }
  func.func @transform_10(%arg0: i32) -> (i32, i32) {
    %c0_i32 = arith.constant 0 : i32
    %c0_i32_0 = arith.constant 0 : i32
    %c0_i32_1 = arith.constant 0 : i32
    return %c0_i32, %c0_i32_0 : i32, i32
  }
  func.func @transform_11(%arg0: i32) -> (i32, i32, i32) {
    %c0_i32 = arith.constant 0 : i32
    %c0_i32_0 = arith.constant 0 : i32
    %c0_i32_1 = arith.constant 0 : i32
    %c0_i32_2 = arith.constant 0 : i32
    return %c0_i32, %c0_i32_0, %c0_i32_1 : i32, i32, i32
  }
  func.func @transform_12(%arg0: i32) -> (i32, i32) {
    %c0_i32 = arith.constant 0 : i32
    %c0_i32_0 = arith.constant 0 : i32
    %c0_i32_1 = arith.constant 0 : i32
    return %c0_i32, %c0_i32_0 : i32, i32
  }
  func.func @transform_13(%arg0: i32) -> (i32, i32) {
    %c0_i32 = arith.constant 0 : i32
    %c0_i32_0 = arith.constant 0 : i32
    %c0_i32_1 = arith.constant 0 : i32
    return %c0_i32, %c0_i32_0 : i32, i32
  }
  func.func @transform_14(%arg0: i32) -> (i32, i32) {
    %c0_i32 = arith.constant 0 : i32
    %c0_i32_0 = arith.constant 0 : i32
    %c0_i32_1 = arith.constant 0 : i32
    return %c0_i32, %c0_i32_0 : i32, i32
  }
  func.func @transform_15(%arg0: i32) -> (i32, i32, i32) {
    %c0_i32 = arith.constant 0 : i32
    %c0_i32_0 = arith.constant 0 : i32
    %c0_i32_1 = arith.constant 0 : i32
    return %arg0, %c0_i32, %c0_i32_0 : i32, i32, i32
  }
  func.func @transform_16(%arg0: i32) -> (i32, i32, i32, i32) {
    %c0_i32 = arith.constant 0 : i32
    %c0_i32_0 = arith.constant 0 : i32
    %c0_i32_1 = arith.constant 0 : i32
    %c0_i32_2 = arith.constant 0 : i32
    return %c0_i32, %arg0, %c0_i32_0, %c0_i32_1 : i32, i32, i32, i32
  }
}

</mosaic_0001>

<bundles_post_ra>
// kernel: tpu_custom_call.1
= control target key start
LH: loop header
LB: loop body
LE: loop exit
PB: predicated region body
PF: predicated region fallthrough
CT: control target
= control target key end

     0   :  { %s3147_s0 = inlined_call_operand.vmem [shape: f32[2,16,32], index: 0, kind: input, shape index: {}]   ;;  %s3148_s1 = inlined_call_operand.vmem [shape: f32[2,1,16], index: 1, kind: input, shape index: {}]   ;;  %s3149_s2 = inlined_call_operand.vmem [shape: f32[2,16,1], index: 2, kind: input, shape index: {}]   ;;  %s3150_s3 = inlined_call_operand.vmem [shape: bf16[32,96], index: 3, kind: input, shape index: {}]   ;;  %s3151_s4 = inlined_call_operand.vmem [shape: f32[1,96], index: 4, kind: input, shape index: {}]   ;;  %s3152_s5 = inlined_call_operand.vmem [shape: bf16[32,32], index: 5, kind: input, shape index: {}]   ;;  %s3153_s6 = inlined_call_operand.vmem [shape: f32[1,32], index: 6, kind: input, shape index: {}]   ;;  %s3154_s7 = inlined_call_operand.vmem [shape: f32[1,32], index: 7, kind: input, shape index: {}]   ;;  %s3155_s8 = inlined_call_operand.vmem [shape: f32[1,32], index: 8, kind: input, shape index: {}]   ;;  %s3156_s9 = inlined_call_operand.hbm [shape: bf16[9,32,64], index: 9, kind: input, shape index: {}]   ;;  %s3157_s10 = inlined_call_operand.vmem [shape: f32[1,64], index: 10, kind: input, shape index: {}]   ;;  %s3158_s11 = inlined_call_operand.vmem [shape: bf16[1,64,32], index: 11, kind: input, shape index: {}]   ;;  %s3159_s12 = inlined_call_operand.vmem [shape: f32[1,32], index: 12, kind: input, shape index: {}]   ;;  %s3160_s13 = inlined_call_operand.vmem [shape: f32[1,32], index: 13, kind: input, shape index: {}]   ;;  %s3161_s14 = inlined_call_operand.vmem [shape: f32[1,32], index: 14, kind: input, shape index: {}]   ;;  %s3162_s15 = inlined_call_operand.hbm [shape: f32[2,16,32], index: 15, kind: output, shape index: {0}]   ;;  %s3163_s16 = inlined_call_operand.hbm [shape: bf16[2,2,16,16], index: 16, kind: output, shape index: {1}]  }
   0x1   :  { %3168 = sst [smem:[#allocation18_spill]] %s3147_s0 }
   0x2   :  { %3169 = sst [smem:[#allocation19_spill]] %s3148_s1 }
   0x3   :  { %3170 = sst [smem:[#allocation20_spill]] %s3149_s2 }
   0x4   :  { %3171 = sst [smem:[#allocation21_spill]] %s3150_s3 }
   0x5   :  { %3172 = sst [smem:[#allocation22_spill]] %s3151_s4 }
   0x6   :  { %3173 = sst [smem:[#allocation23_spill]] %s3156_s9 }
   0x7   :  { %22 = vsyncpa [#allocation5], 0 }
   0x8   :  { %23 = vsyncpa [#allocation6], 0 }
   0x9   :  { %25 = vsyncpa [#allocation6 + $0x1], 0 }
   0xa   :  { %26 = vsyncpa [#allocation9], 0 }
   0xb   :  { %28 = vsyncpa [#allocation9 + $0x1], 0  ;;  %s2748_s21 = smov 0   ;;  %s2750_s22 = smov 0  }
   0xc   :  { %s2752_s23 = smov 0   ;;  %s2754_s24 = smov 0  }
   0xd LB: > { %3174 = sst [smem:[#allocation15_spill]] %s2635_s23  ;;  %s2769_s25 = sadd.s32 4294967295, %s2639_s24   ;;  %s2639_s24 = sphi %s2754_s24, %s3189_s24   ;;  %s2635_s23 = sphi %s2752_s23, %s3191_s23   ;;  %s2631_s22 = sphi %s2750_s22, %s3193_s22   ;;  %s2627_s21 = sphi %s2748_s21, %s3192_s21  }
   0xe   : > { %s2121_s26 = sadd.s32 4294967294, %s2639_s24   ;;  %s2773_s27 = sadd.s32 1, %s2639_s24  }
   0xf   : > { %3175 = sst [smem:[#allocation16_spill]] %s2773_s27  ;;  %s371_s28 = sadd.s32 1, %s2635_s23 }
  0x10   : > { %s368_s29 = ssub.s32 %s2639_s24, %s2773_s27  ;;  %p381_p0 = scmp.ne.s32.totalorder %s2635_s23, %s2631_s22 }
  0x11   : > { %p369_p1 = scmp.eq.s32.totalorder %s368_s29, 0  ;;  %p382_p2 = scmp.eq.s32.totalorder %s2769_s25, 1 }
  0x12   : > { %p387_p3 = scmp.ne.s32.totalorder %s2631_s22, %s2627_s21  ;;  %p388_p4 = scmp.eq.s32.totalorder %s2121_s26, 1 }
  0x13   : > { %s2784_s30 = scalar_select %p369_p1, %s2635_s23, %s371_s28  }
  0x14   : > { %p2786_p5 = por %p382_p2, %p381_p0  ;;  %p2790_p6 = por %p388_p4, %p387_p3 }
  0x15   : > { %3176 = sst [smem:[#allocation17_spill]] %s2784_s30  ;;  %p2122_p7 = scmp.ge.s32.totalorder %s2639_s24, 1 }
  0x16   : > { %s3178_s17 = scalar_select %p2790_p6, 1, 0 }
  0x17   : > { %p421_p8 = scmp.lt.s32.totalorder %s2639_s24, 3  ;;  %p2425_p9 = scmp.eq.s32.totalorder %s2769_s25, 0 }
  0x18   : > { %s2641_s19 = smov [#allocation4]  }
  0x19   : > { %p2797_p10 = pnand %p2122_p7, %p421_p8  ;;  %s451_s20 = sshll.u32 %s2641_s19, 4  ;;  %s452_s20 = int_to_ptr.vmem [resolvable:$true] %s451_s20 }
  0x1a   : > { %s2556_s26 = scalar_lea.vmem %s452_s20, 2304  ;;  %p2564_p3 = scmp.lt.s32.totalorder %s452_s20, %s452_s20 }
  0x1b   : > { %p2414_p11 = pneg %p2797_p10  ;;  %p2557_p0 = scmp.ne.s32.totalorder %s452_s20, %s2556_s26 }
  0x1c   : > { %p2565_p4 = scmp.lt.s32.totalorder %s2556_s26, %s2556_s26 }
  0x1d   : > { %p2415_p12 = pnand %p2425_p9, %p2414_p11 }
  0x1e   : > { %p2566_p6 = por %p2565_p4, %p2564_p3 }
  0x1f   : > { %p2547_p13 = pneg %p2415_p12 }
  0x21   : > { %p2559_p1 = pnand %p2557_p0, %p2547_p13 }
  0x23   : > { %p2560_p2 = pneg %p2559_p1 }
  0x25   : > { %p2567_p7 = pnand %p2566_p6, %p2560_p2 }
  0x27   : > { %2570 = shalt.err (!%p2567_p7)
}
  0x28   : > { %s2642_s28 = smov 64   ;;  %s2643_s29 = smov 4  }
  0x29   : > { %s3180_s9 = sld [smem:[#allocation23_spill]] }
  0x2b   : > { %504 = sbr.rel (%p2797_p10) target bundleno = 2532 (0x9e4), region = 80 }
  0x2f   : > { %2417 = dma.hbm_to_vmem [thread:$0]  (!%p2415_p12), %s3180_s9, 2304, %s452_s20, [#allocation5], %s2642_s28, %s2642_s28, %s2643_s29  }
  0x30   : > { %2614 = dma.done.wait (%p2425_p9), [#allocation5], 2304  }
  0x31   : > { %2616 = vsyncadd (%p2425_p9), [#allocation5], 4294964992  ;;  %p567_p8 = scmp.lt.s32.totalorder %s2769_s25, 1  ;;  %v2644_v0 = vmov 0.0   ;;  %vm2645_vm0 = vmmov 0   ;;  %s3181_s20 = sld [smem:[#allocation18_spill]] }
  0x32   : > { %2276 = vmatprep.subr.bf16.mxu0 %v2644_v0  ;;  %2280 = vmatprep.mubr.msk.bf16.mxu0 %vm2645_vm0, %v2644_v0  ;;  %s3182_s3 = sld [smem:[#allocation21_spill]]  ;;  %vm610_vm1 = vcmask 261120   ;;  %s2646_s18 = smov 112   ;;  %vm665_vm2 = vcmask 130048   ;;  %vm743_vm3 = vcmask 125952   ;;  %vm946_vm4 = vcmask 257152  }
  0x33   : > { %s2819_s23 = scalar_select %p567_p8, %s2769_s25, 1  ;;  %2284 = vmatprep.subr.bf16.mxu1 %v2644_v0  ;;  %2286 = vmatprep.mubr.msk.bf16.mxu1 %vm2645_vm0, %v2644_v0  ;;  %vm1082_vm5 = vcmask 257024   ;;  %vm1197_vm6 = vcmask 1045504   ;;  %vm1120_vm7 = vsmask.f32 5376  ;;  %vm1266_vm9 = vcmask 1044480  }
  0x34   : > { %s3183_s4 = sld [smem:[#allocation22_spill]]  ;;  %s2647_s19 = smov 96   ;;  %vm1337_vm8 = vsmask.f32 4352  ;;  %vm1493_vm10 = vsmask.f32 7424 }
  0x35   : > { %s2216_s30 = sshll.u32 %s2819_s23, 4  ;;  %s3184_s1 = sld [smem:[#allocation19_spill]]  ;;  %vm1644_vm11 = vsmask.f32 6400  ;;  %vm1573_vm12 = vcmask 1046528   ;;  %vm1841_vm13 = vcmask 523264  }
  0x36   : > { %s2649_s9 = smov 48   ;;  %s2650_s27 = smov 64  }
  0x37   : > { %s571_s26 = scalar_lea.vmem %s3181_s20, %s2216_s30  ;;  %s2648_s20 = smov 80  }
  0x38   : > { %v2483_v1 = vld [vmem:[%s3182_s3 + $0x8] sm:$0xff]   ;;  %v2484_v2 = vld [vmem:[%s3182_s3] sm:$0xff]   ;;  %s3185_s2 = sld [smem:[#allocation20_spill]] }
  0x39   : > { %2277 = vmatpush3.bf16.msra.mxu0 %v2483_v1  ;;  %v2836_v3 = vld [vmem:[%s571_s26] sm:$0xff]  ;;  %v2838_v4 = vld [vmem:[%s571_s26 + $0x8] sm:$0xff] }
  0x3a   : > { %2278 = vmatprep.subr.bf16.mxu0 %v2644_v0  ;;  %v586_v5 = vpack.c.bf16 %v2838_v4, %v2836_v3  ;;  %v2133_v7 = vld [vmem:[%s3183_s4] ss:$0 sm:$0xff] }
  0x3b   : > { %s574_s29 = scalar_lea.vmem %s3184_s1, %s2819_s23  ;;  %s2653_s1 = smov [#allocation7]  }
  0x3c   : > { %v2137_v19 = vld [vmem:[%s574_s29] ss:$0 sm:$0xff] }
  0x3d   : > { %2279 = vmatpush3.bf16.msra.mxu0 %v2484_v2 }
  0x3e   : > { %2290 = vmatprep.subr.bf16.mxu0 %v2644_v0 }
  0x40   : > { %2281 = vmatmul.mubr.msk.bf16.vlgmr.msra.gmra.mxu0 %vm610_vm1, %v586_v5 }
  0x41   : > { %2292 = vmatprep.mubr.msk.bf16.mxu0 %vm2645_vm0, %v2644_v0 }
 0x100   : > { %v648_v6 = vpop.f32.mrf.mxu0 }
 0x101   : > { %v649_v10 = vadd.f32 %v2133_v7, %v648_v6 }
 0x102   : > { %v2282_v8 = vpop.f32.mrf.mxu0 }
 0x104   : > { %v651_v9 = vpop.f32.mrf.mxu0 }
 0x105   : > { %v652_v11 = vadd.f32 %v2133_v7, %v651_v9 }
 0x106   : > { %v2283_v12 = vpop.f32.mrf.mxu0 }
 0x107   : > { %v2850_v13 = vpack.c.bf16 %v652_v11, %v649_v10 }
 0x109   : > { %803 = vrot.lane.b32.xlu1 %v2850_v13, %s2646_s18  ;;  %663 = vrot.lane.b32.xlu0 %v2850_v13, %s2647_s19  ;;  %s2881_s18 = sand.u32 1, %s2631_s22  }
 0x10a   : > { %s3167_s19 = sshll.u32 %s2881_s18, 4  ;;  %s3186_s29 = sshll.u32 %s2881_s18, 4 }
 0x10d   : > { %805 = vrot.lane.b32.xlu0 %v2850_v13, %s2648_s20  ;;  %s2887_s20 = scalar_lea.vmem [#allocation8], %s3167_s19  ;;  %s2228_s19 = sshll.u32 %s2769_s25, 8 }
 0x10e   : > { %s3081_s26 = scalar_lea.hbm %s3162_s15, %s2228_s19 }
 0x17b   : > { %v664_v14 = vpop.permute.xlu0 %663  ;;  %v804_v18 = vpop.permute.xlu1 %803 }
 0x17c   : > { %v670_v15 = vsel %vm665_vm2, %v664_v14, 0 }
 0x17d   : > { %2285 = vmatpush3.bf16.xpose.msra.mxu1 %v670_v15 }
 0x17e   : > { %2296 = vmatprep.subr.bf16.mxu1 %v2644_v0 }
 0x17f   : > { %v806_v16 = vpop.permute.xlu0 %805 }
 0x180   : > { %v811_v17 = vsel %vm665_vm2, %v806_v16, 0 }
 0x184   : > { %2287 = vmatmul.mubr.msk.bf16.vlgmr.msra.gmra.mxu1 %vm665_vm2, %v2850_v13 }
 0x185   : > { %2297 = vmatpush3.bf16.xpose.msra.mxu1 %v811_v17  ;;  %2298 = vmatprep.mubr.msk.bf16.mxu1 %vm2645_vm0, %v2644_v0 }
 0x186   : > { %2308 = vmatprep.subr.bf16.mxu1 %v2644_v0 }
 0x18c   : > { %2299 = vmatmul.mubr.msk.bf16.vlgmr.msra.gmra.mxu1 %vm665_vm2, %v804_v18  ;;  %v2485_v18 = vld [vmem:[%s3152_s5 + $0x8] sm:$0xff]  }
 0x18d   : > { %2312 = vmatprep.mubr.msk.bf16.mxu1 %vm2645_vm0, %v2644_v0  ;;  %2309 = vmatpush3.bf16.msra.mxu1 %v2485_v18 }
 0x18e   : > { %2310 = vmatprep.subr.bf16.mxu1 %v2644_v0 }
 0x244   : > { %v706_v20 = vpop.f32.mrf.mxu1 }
 0x245   : > { %v707_v21 = vadd.f32 %v2137_v19, %v706_v20  ;;  %v2486_v20 = vld [vmem:[%s3152_s5] sm:$0xff]  }
 0x246   : > { %v2288_v22 = vpop.f32.mrf.mxu1  ;;  %2311 = vmatpush3.bf16.msra.mxu1 %v2486_v20 }
 0x247   : > { %v713_v23 = vsel %vm665_vm2, %v707_v21, -inf  ;;  %2324 = vmatprep.subr.bf16.mxu1 %v2644_v0 }
 0x248   : > { %714 = vmax.xlane.f32.xlu1 %v713_v23  ;;  %v709_v24 = vpop.f32.mrf.mxu1 }
 0x249   : > { %v710_v25 = vadd.f32 %v2137_v19, %v709_v24 }
 0x24a   : > { %v2289_v26 = vpop.f32.mrf.mxu1 }
 0x24b   : > { %v716_v27 = vsel %vm665_vm2, %v710_v25, -inf }
 0x24c   : > { %717 = vmax.xlane.f32.xlu0 %v716_v27  ;;  %v847_v28 = vpop.f32.mrf.mxu1 }
 0x24d   : > { %v848_v29 = vadd.f32 %v2137_v19, %v847_v28 }
 0x24e   : > { %v2300_v30 = vpop.f32.mrf.mxu1 }
 0x24f   : > { %v854_v31 = vsel %vm665_vm2, %v848_v29, -inf }
 0x250   : > { %855 = vmax.xlane.f32.xlu0 %v854_v31  ;;  %v850_v32 = vpop.f32.mrf.mxu1 }
 0x251   : > { %v851_v33 = vadd.f32 %v2137_v19, %v850_v32  ;;  %v2152_v32 = vld [vmem:[%s3153_s6] ss:$0 sm:$0xff] }
 0x252   : > { %v2301_v34 = vpop.f32.mrf.mxu1 }
 0x253   : > { %v857_v35 = vsel %vm665_vm2, %v851_v33, -inf }
 0x254   : > { %858 = vmax.xlane.f32.xlu1 %v857_v35 }
 0x2d1   : > { %v715_v36 = vpop.xlane.xlu1 %714 }
 0x2d2   : > { %v719_v37 = vsub.f32 %v707_v21, %v715_v36 }
 0x2d4   : > { %v721_v38 = vmul.f32 1.442695, %v719_v37 }
 0x2d5   : > { %v718_v39 = vpop.xlane.xlu0 %717 }
 0x2d6   : > { %2521 = vpow2.f32 %v721_v38  ;;  %v720_v40 = vsub.f32 %v710_v25, %v718_v39 }
 0x2d8   : > { %v723_v41 = vmul.f32 1.442695, %v720_v40 }
 0x2d9   : > { %v856_v42 = vpop.xlane.xlu0 %855 }
 0x2da   : > { %2523 = vpow2.f32 %v723_v41  ;;  %v860_v43 = vsub.f32 %v848_v29, %v856_v42 }
 0x2dc   : > { %v862_v44 = vmul.f32 1.442695, %v860_v43  ;;  %v2652_v43 = vmov 0  }
 0x2dd   : > { %v859_v45 = vpop.xlane.xlu1 %858  ;;  %2481 = vset.pattern.permute.xlu0 %v2652_v43  ;;  %2482 = vset.pattern.permute.xlu1 %v2652_v43  ;;  %1084 = vst.msk [vmem:[#allocation3 + $0x4] sm:$0xf] %vm1082_vm5, %v2652_v43  ;;  %1085 = vst.msk [vmem:[#allocation3 + $0x8] sm:$0xf] %vm1082_vm5, %v2652_v43 }
 0x2de   : > { %2525 = vpow2.f32 %v862_v44  ;;  %v861_v46 = vsub.f32 %v851_v33, %v859_v45  ;;  %1087 = vst.msk [vmem:[#allocation3 + $0x10] sm:$0xf] %vm1082_vm5, %v2652_v43  ;;  %1086 = vst.msk [vmem:[#allocation3 + $0xc] sm:$0xf] %vm1082_vm5, %v2652_v43 }
 0x2e0   : > { %v864_v47 = vmul.f32 1.442695, %v861_v46 }
 0x2e2   : > { %2527 = vpow2.f32 %v864_v47 }
 0x2e3   : > { %v2522_v48 = vpop.eup %2521 }
 0x2e4   : > { %v725_v49 = vsel %vm665_vm2, %v2522_v48, 0.0  ;;  %v1257_v20 = vld [vmem:[#allocation3 + $0x4] sm:$0x8] }
 0x2e5   : > { %726 = vadd.xlane.f32.xlu0 %v725_v49 }
 0x2e7   : > { %v2524_v50 = vpop.eup %2523 }
 0x2e8   : > { %v728_v51 = vsel %vm665_vm2, %v2524_v50, 0.0 }
 0x2e9   : > { %729 = vadd.xlane.f32.xlu1 %v728_v51 }
 0x2eb   : > { %v2526_v52 = vpop.eup %2525 }
 0x2ec   : > { %v866_v53 = vsel %vm665_vm2, %v2526_v52, 0.0 }
 0x2ed   : > { %867 = vadd.xlane.f32.xlu0 %v866_v53 }
 0x2ef   : > { %v2528_v54 = vpop.eup %2527 }
 0x2f0   : > { %v869_v55 = vsel %vm665_vm2, %v2528_v54, 0.0 }
 0x2f1   : > { %870 = vadd.xlane.f32.xlu1 %v869_v55  ;;  %v2489_v55 = vld [vmem:[#allocation4 + $0x18] sm:$0xff]  }
 0x302   : > { %887 = vrot.lane.b32.xlu1 %v2850_v13, %s2649_s9  ;;  %s559_s9 = scalar_lea.vmem [#allocation7], %s3186_s29 }
 0x303   : > { %746 = vrot.lane.b32.xlu0 %v2850_v13, %s2650_s27  ;;  %s2651_s27 = smov 16  }
 0x36e   : > { %v727_v56 = vpop.xlane.xlu0 %726 }
 0x36f   : > { %2529 = vrcp.f32 %v727_v56  ;;  %v2490_v56 = vld [vmem:[#allocation4] sm:$0xff]  }
 0x372   : > { %v730_v57 = vpop.xlane.xlu1 %729 }
 0x373   : > { %2531 = vrcp.f32 %v730_v57  ;;  %v2493_v57 = vld [vmem:[#allocation4 + $0x10] sm:$0xff]  }
 0x376   : > { %v868_v58 = vpop.xlane.xlu0 %867 }
 0x377   : > { %2533 = vrcp.f32 %v868_v58 }
 0x37a   : > { %v871_v59 = vpop.xlane.xlu1 %870  ;;  %v747_v60 = vpop.permute.xlu0 %746 }
 0x37b   : > { %2535 = vrcp.f32 %v871_v59  ;;  %2291 = vmatpush3.bf16.msra.mxu0 %v747_v60 }
 0x37c   : > { %v2530_v61 = vpop.eup %2529  ;;  %2302 = vmatprep.subr.bf16.mxu0 %v2644_v0 }
 0x37d   : > { %v733_v62 = vmul.f32 %v2530_v61, %v2522_v48 }
 0x37e   : > { %v888_v8 = vpop.permute.xlu1 %887 }
 0x37f   : > { %v2218_v63 = vpack.c.bf16 %v733_v62, %v733_v62 }
 0x380   : > { %v2532_v1 = vpop.eup %2531 }
 0x381   : > { %v734_v2 = vmul.f32 %v2532_v1, %v2524_v50  ;;  %744 = vst.msk [vmem:[%s2887_s20] sm:$0xf] %vm743_vm3, %v2218_v63 }
 0x383   : > { %v735_v5 = vpack.c.bf16 %v734_v2, %v733_v62  ;;  %v2219_v6 = vpack.c.bf16 %v734_v2, %v734_v2  ;;  %v2157_v2 = vld [vmem:[%s3154_s7] ss:$0 sm:$0xff] }
 0x384   : > { %v2534_v7 = vpop.eup %2533 }
 0x385   : > { %2293 = vmatmul.mubr.msk.bf16.vlgmr.msra.gmra.mxu0 %vm665_vm2, %v735_v5  ;;  %v874_v9 = vmul.f32 %v2534_v7, %v2526_v52  ;;  %745 = vst.msk [vmem:[%s2887_s20 + $0x4] sm:$0xf] %vm743_vm3, %v2219_v6  ;;  %v2158_v6 = vld [vmem:[%s3155_s8] ss:$0 sm:$0xff] }
 0x386   : > { %2303 = vmatpush3.bf16.msra.mxu0 %v888_v8  ;;  %2304 = vmatprep.mubr.msk.bf16.mxu0 %vm2645_vm0, %v2644_v0 }
 0x387   : > { %v2222_v10 = vpack.c.bf16 %v874_v9, %v874_v9  ;;  %2316 = vmatprep.subr.bf16.mxu0 %v2644_v0 }
 0x388   : > { %v2536_v11 = vpop.eup %2535 }
 0x389   : > { %v875_v12 = vmul.f32 %v2536_v11, %v2528_v54  ;;  %2147 = vst.msk [vmem:[%s2887_s20 + $0x8] sm:$0xf] %vm743_vm3, %v2222_v10  ;;  %v2488_v54 = vld [vmem:[#allocation4 + $0x8] sm:$0xff]  }
 0x38b   : > { %v876_v13 = vpack.c.bf16 %v875_v12, %v874_v9  ;;  %v2223_v14 = vpack.c.bf16 %v875_v12, %v875_v12 }
 0x38d   : > { %2305 = vmatmul.mubr.msk.bf16.vlgmr.msra.gmra.mxu0 %vm665_vm2, %v876_v13  ;;  %2148 = vst.msk [vmem:[%s2887_s20 + $0xc] sm:$0xf] %vm743_vm3, %v2223_v14 }
 0x38e   : > { %2320 = vmatprep.mubr.msk.bf16.mxu0 %vm2645_vm0, %v2644_v0  ;;  %2317 = vmatpush3.bf16.msra.mxu0 %v2489_v55 }
 0x38f   : > { %2318 = vmatprep.subr.bf16.mxu0 %v2644_v0 }
 0x392   : > { %2319 = vmatpush3.bf16.msra.mxu0 %v2493_v57  ;;  %v2501_v57 = vld [vmem:[#allocation4 + $0x58] sm:$0xff]  }
 0x393   : > { %2332 = vmatprep.subr.bf16.mxu0 %v2644_v0 }
 0x445   : > { %v786_v15 = vpop.f32.mrf.mxu0 }
 0x446   : > { %v2220_v16 = vpack.c.bf16 %v786_v15, %v786_v15 }
 0x447   : > { %v2294_v17 = vpop.f32.mrf.mxu0 }
 0x448   : > { %801 = vst.msk [vmem:[#allocation2] sm:$0xf] %vm743_vm3, %v2220_v16 }
 0x449   : > { %v789_v19 = vpop.f32.mrf.mxu0 }
 0x44a   : > { %v2221_v21 = vpack.c.bf16 %v789_v19, %v789_v19  ;;  %v1099_v19 = vld [vmem:[#allocation3 + $0x4] sm:$0xc] }
 0x44b   : > { %v2295_v22 = vpop.f32.mrf.mxu0 }
 0x44c   : > { %802 = vst.msk [vmem:[#allocation2 + $0x4] sm:$0xf] %vm743_vm3, %v2221_v21 }
 0x44d   : > { %v927_v23 = vpop.f32.mrf.mxu0 }
 0x44e   : > { %v2224_v24 = vpack.c.bf16 %v927_v23, %v927_v23 }
 0x44f   : > { %v2306_v25 = vpop.f32.mrf.mxu0 }
 0x450   : > { %940 = vrot.lane.b32.xlu1 %v2224_v24, %s2651_s27 }
 0x451   : > { %v930_v26 = vpop.f32.mrf.mxu0 }
 0x452   : > { %v2225_v27 = vpack.c.bf16 %v930_v26, %v930_v26 }
 0x453   : > { %v2307_v28 = vpop.f32.mrf.mxu0 }
 0x454   : > { %942 = vrot.lane.b32.xlu0 %v2225_v27, %s2651_s27  ;;  %s579_s27 = scalar_lea.vmem %s3185_s2, %s2216_s30  ;;  %v2494_v27 = vld [vmem:[#allocation4 + $0x38] sm:$0xff]   ;;  %s2575_s2 = sshll.u32 %s2653_s1, 4  ;;  %s2576_s2 = int_to_ptr.vmem [resolvable:$false] %s2575_s2 }
 0x455   : > { %v585_v52 = vld [vmem:[%s579_s27 + $0x8] sm:$0xff]  ;;  %v584_v53 = vld [vmem:[%s579_s27] sm:$0xff]  ;;  %s1955_s27 = sshll.u32 %s559_s9, 4  ;;  %s2577_s19 = scalar_lea.vmem %s2576_s2, 512  ;;  %s3083_s27 = int_to_ptr.vmem [resolvable:$true] %s1955_s27 }
 0x456   : > { %s2571_s29 = scalar_lea.vmem %s3083_s27, 256  ;;  %p2578_p11 = scmp.lt.s32.totalorder %s3083_s27, %s2576_s2 }
 0x457   : > { %p2572_p6 = scmp.ne.s32.totalorder %s3083_s27, %s2571_s29  ;;  %p2579_p12 = scmp.lt.s32.totalorder %s2577_s19, %s2571_s29 }
 0x459   : > { %p2573_p9 = pnand %p2572_p6, %p2786_p5  ;;  %p2580_p13 = por %p2579_p12, %p2578_p11 }
 0x45b   : > { %p2574_p10 = pneg %p2573_p9 }
 0x45d   : > { %p2581_p0 = pnand %p2580_p13, %p2574_p10 }
 0x4c2   : > { %v941_v29 = vpop.permute.xlu1 %940 }
 0x4c3   : > { %947 = vst.msk [vmem:[#allocation2] sm:$0xf] %vm946_vm4, %v941_v29 }
 0x4c6   : > { %v943_v30 = vpop.permute.xlu0 %942 }
 0x4c7   : > { %948 = vst.msk [vmem:[#allocation2 + $0x4] sm:$0xf] %vm946_vm4, %v943_v30 }
 0x4ce   : > { %v2487_v31 = vld [vmem:[#allocation2] sm:$0xff]  }
 0x4cf   : > { %2313 = vmatmul.mubr.msk.bf16.vlgmr.msra.gmra.mxu1 %vm610_vm1, %v2487_v31 }
 0x4d0   : > { %2328 = vmatprep.mubr.msk.bf16.mxu1 %vm2645_vm0, %v2644_v0  ;;  %2325 = vmatpush3.bf16.msra.mxu1 %v2488_v54 }
 0x4d1   : > { %2326 = vmatprep.subr.bf16.mxu1 %v2644_v0 }
 0x4d4   : > { %2327 = vmatpush3.bf16.msra.mxu1 %v2490_v56 }
 0x4d5   : > { %2340 = vmatprep.subr.bf16.mxu1 %v2644_v0 }
 0x58f   : > { %v1016_v33 = vpop.f32.mrf.mxu1 }
 0x590   : > { %v1017_v34 = vadd.f32 %v2152_v32, %v1016_v33 }
 0x591   : > { %v2314_v35 = vpop.f32.mrf.mxu1 }
 0x592   : > { %v1023_v36 = vadd.f32 %v1017_v34, %v2836_v3 }
 0x593   : > { %v1019_v37 = vpop.f32.mrf.mxu1 }
 0x594   : > { %v1020_v38 = vadd.f32 %v2152_v32, %v1019_v37  ;;  %v1027_v39 = vsel %vm610_vm1, %v1023_v36, 0.0 }
 0x595   : > { %1028 = vadd.xlane.f32.xlu1 %v1027_v39  ;;  %v2315_v40 = vpop.f32.mrf.mxu1 }
 0x596   : > { %v1024_v41 = vadd.f32 %v1020_v38, %v2838_v4 }
 0x598   : > { %v1030_v42 = vsel %vm610_vm1, %v1024_v41, 0.0 }
 0x599   : > { %1031 = vadd.xlane.f32.xlu0 %v1030_v42 }
 0x61e   : > { %v1029_v44 = vpop.xlane.xlu1 %1028 }
 0x61f   : > { %v1034_v45 = vmul.f32 0.03125, %v1029_v44 }
 0x621   : > { %v1036_v46 = vsub.f32 %v1023_v36, %v1034_v45 }
 0x622   : > { %v1032_v47 = vpop.xlane.xlu0 %1031 }
 0x623   : > { %v1035_v3 = vmul.f32 0.03125, %v1032_v47  ;;  %v1038_v48 = vmul.f32 %v1036_v46, %v1036_v46 }
 0x625   : > { %v1037_v49 = vsub.f32 %v1024_v41, %v1035_v3  ;;  %v1040_v50 = vsel %vm610_vm1, %v1038_v48, 0.0 }
 0x626   : > { %1041 = vadd.xlane.f32.xlu0 %v1040_v50 }
 0x627   : > { %v1039_v51 = vmul.f32 %v1037_v49, %v1037_v49 }
 0x629   : > { %v1043_v4 = vsel %vm610_vm1, %v1039_v51, 0.0  ;;  %v2496_v51 = vld [vmem:[#allocation4 + $0x28] sm:$0xff]  }
 0x62a   : > { %1044 = vadd.xlane.f32.xlu1 %v1043_v4 }
 0x63b   : > { %1077 = vperm.xlu1 %2482, %v585_v52  }
 0x63c   : > { %1072 = vperm.xlu0 %2481, %v584_v53  }
 0x6af   : > { %v1042_v58 = vpop.xlane.xlu0 %1041 }
 0x6b0   : > { %v1046_v59 = vmul.f32 0.03125, %v1042_v58  ;;  %v2986_v58 = vld [vmem:[#allocation3 + $0x10] ss:$0 sps:$4 sm:$0x11]  }
 0x6b2   : > { %v1048_v60 = vadd.f32 1e-05, %v1046_v59  ;;  %v2500_v59 = vld [vmem:[#allocation4 + $0x20] sm:$0xff]  }
 0x6b3   : > { %v1045_v61 = vpop.xlane.xlu1 %1044 }
 0x6b4   : > { %2537 = vrsqrt.f32 %v1048_v60  ;;  %v1047_v62 = vmul.f32 0.03125, %v1045_v61  ;;  %v2989_v61 = vld [vmem:[#allocation3 + $0x10] ss:$0 sps:$4 sm:$0x33]  }
 0x6b6   : > { %v1049_v63 = vadd.f32 1e-05, %v1047_v62 }
 0x6b7   : > { %v2945_v9 = vpop.permute.xlu0 %1072  ;;  %v2950_v14 = vpop.permute.xlu1 %1077 }
 0x6b8   : > { %2539 = vrsqrt.f32 %v1049_v63 }
 0x6c1   : > { %v2538_v1 = vpop.eup %2537 }
 0x6c2   : > { %v1052_v5 = vmul.f32 %v2538_v1, %v1036_v46  ;;  %v2497_v46 = vld [vmem:[#allocation4 + $0x30] sm:$0xff]   ;;  %v1502_v1 = vshll.u32 %v2986_v58, 16 }
 0x6c4   : > { %v1060_v7 = vmul.f32 %v2157_v2, %v1052_v5 }
 0x6c5   : > { %v2540_v8 = vpop.eup %2539 }
 0x6c6   : > { %v1068_v10 = vadd.f32 %v2158_v6, %v1060_v7  ;;  %v1053_v11 = vmul.f32 %v2540_v8, %v1037_v49 }
 0x6c8   : > { %v2948_v12 = vmul.f32 %v2945_v9, %v1068_v10  ;;  %v1061_v13 = vmul.f32 %v2157_v2, %v1053_v11  ;;  %v2502_v10 = vld [vmem:[#allocation4 + $0x48] sm:$0xff]   ;;  %v1654_v11 = vshrl.u32 %v2989_v61, 16 }
 0x6ca   : > { %v2226_v15 = vpack.c.bf16 %v2948_v12, %v2948_v12  ;;  %v1069_v16 = vadd.f32 %v2158_v6, %v1061_v13  ;;  %v2503_v6 = vld [vmem:[#allocation4 + $0x50] sm:$0xff]   ;;  %v1657_v13 = vshll.u32 %v2989_v61, 16 }
 0x6cc   : > { %1097 = vst.msk [vmem:[#allocation3 + $0x8] sm:$0xf] %vm1082_vm5, %v2226_v15  ;;  %v2956_v17 = vmul.f32 %v2950_v14, %v1069_v16  ;;  %v1504_v16 = vrot.slane %v1502_v1, 1 }
 0x6ce   : > { %v2227_v18 = vpack.c.bf16 %v2956_v17, %v2956_v17 }
 0x6d0   : > { %1098 = vst.msk [vmem:[#allocation3 + $0xc] sm:$0xf] %vm1082_vm5, %v2227_v18 }
 0x6d3   : > { %v2961_v21 = vld [vmem:[#allocation3 + $0x8] sm:$0xf] }
 0x6d4   : > { %v2161_v22 = vcombine.low %v1099_v19, %v2961_v21  ;;  %v2965_v23 = vcombine.low %v1257_v20, %v2961_v21  ;;  %v1477_v45 = vld [vmem:[#allocation3 + $0x8] sm:$0xf] }
 0x6d5   : > { %v1564_v60 = vld [vmem:[#allocation3 + $0x8] sm:$0xe] }
 0x6d6   : > { %v1122_v24 = vshrl.u32 %v2161_v22, 16  ;;  %v1125_v25 = vshll.u32 %v2161_v22, 16  ;;  %v1198_v28 = vrot.slane %v2161_v22, 2  ;;  %v1339_v33 = vshrl.u32 %v2965_v23, 16  ;;  %v2507_v22 = vld [vmem:[#allocation4 + $0x78] sm:$0xff]  }
 0x6d7   : > { %v2492_v26 = vld [vmem:[#allocation3 + $0xc] ss:$0 sps:$4 sm:$0x33]   ;;  %v1342_v34 = vshll.u32 %v2965_v23, 16  ;;  %v1267_v8 = vrot.slane %v2965_v23, 3  ;;  %v2506_v23 = vld [vmem:[#allocation4 + $0x40] sm:$0xff]  }
 0x6d8   : > { %v2967_v29 = vld [vmem:[#allocation3 + $0xc] ss:$0 sps:$4 sm:$0x77]   ;;  %v1199_v30 = vrot.slane %v2492_v26, 2  ;;  %v1124_v31 = vrot.slane %v1122_v24, 2  ;;  %v1127_v35 = vrot.slane %v1125_v25, 3 }
 0x6d9   : > { %v2969_v32 = vld [vmem:[#allocation3 + $0xc] sm:$0xf]  ;;  %v1130_v36 = vshrl.u32 %v2967_v29, 16  ;;  %v1133_v37 = vshll.u32 %v2967_v29, 16  ;;  %v1341_v47 = vrot.slane %v1339_v33, 3  ;;  %v1344_v3 = vrot.slane %v1342_v34, 4 }
 0x6da   : > { %v2174_v38 = vcombine.low %v2969_v32, %v2969_v32  ;;  %v2977_v39 = vld [vmem:[#allocation3 + $0xc] sm:$0xf]  ;;  %v1200_v40 = vsel %vm1197_vm6, %v1198_v28, %v1199_v30  ;;  %v1128_v49 = vor.u32 %v1127_v35, %v1124_v31  ;;  %v1268_v5 = vrot.slane %v2967_v29, 3  ;;  %v2509_v30 = vld [vmem:[#allocation4 + $0x68] sm:$0xff]   ;;  %v2513_v35 = vld [vmem:[#allocation4 + $0x60] sm:$0xff]  }
 0x6db   : > { %2329 = vmatmul.mubr.msk.bf16.vlgmr.msra.gmra.mxu1 %vm610_vm1, %v1200_v40  ;;  %v1132_v41 = vrot.slane %v1130_v36, 2  ;;  %v1135_v42 = vrot.slane %v1133_v37, 3  ;;  %v2182_v48 = vcombine.low %v1477_v45, %v2977_v39  ;;  %v1345_v56 = vor.u32 %v1344_v3, %v1341_v47  ;;  %v2510_v29 = vld [vmem:[#allocation4 + $0x70] sm:$0xff]   ;;  %v2514_v37 = vld [vmem:[#allocation4 + $0x88] sm:$0xff]   ;;  %v2520_v3 = vld [vmem:[%s3158_s11] sm:$0xff]  }
 0x6dc   : > { %v1347_v43 = vshrl.u32 %v2174_v38, 16  ;;  %v1350_v44 = vshll.u32 %v2174_v38, 16  ;;  %2341 = vmatpush3.bf16.msra.mxu1 %v2494_v27  ;;  %2344 = vmatprep.mubr.msk.bf16.mxu1 %vm2645_vm0, %v2644_v0  ;;  %v2996_v2 = vcombine.low %v1564_v60, %v2977_v39  ;;  %v1269_v20 = vsel %vm1266_vm9, %v1267_v8, %v1268_v5  ;;  %v1720_v38 = vld [vmem:[#allocation3 + $0x8] sm:$0xc]  ;;  %v2519_v47 = vld [vmem:[%s3158_s11 + $0x8] sm:$0xff]  }
 0x6dd   : > { %v1136_v50 = vor.u32 %v1135_v42, %v1132_v41  ;;  %2342 = vmatprep.subr.bf16.mxu1 %v2644_v0  ;;  %v1497_v53 = vshll.u32 %v2182_v48, 16  ;;  %v1495_v7 = vshrl.u32 %v2182_v48, 16  ;;  %v1656_v24 = vrot.slane %v1654_v11, 1  ;;  %v2515_v42 = vld [vmem:[#allocation4 + $0x80] sm:$0xff]  }
 0x6de   : > { %v1349_v4 = vrot.slane %v1347_v43, 3  ;;  %v1352_v52 = vrot.slane %v1350_v44, 4  ;;  %v1646_v18 = vshrl.u32 %v2996_v2, 16  ;;  %v1649_v19 = vshll.u32 %v2996_v2, 16 }
 0x6df   : > { %v1137_v54 = vsel %vm1120_vm7, %v1128_v49, %v1136_v50  ;;  %v1499_v63 = vrot.slane %v1497_v53, 1  ;;  %v1659_v28 = vrot.slane %v1657_v13, 2  ;;  %v2178_v31 = vcombine.low %v2961_v21, %v2969_v32 }
 0x6e0   : > { %v1353_v55 = vor.u32 %v1352_v52, %v1349_v4  ;;  %2321 = vmatmul.mubr.msk.bf16.vlgmr.msra.gmra.mxu0 %vm610_vm1, %v1137_v54  ;;  %2343 = vmatpush3.bf16.msra.mxu1 %v2497_v46  ;;  %v1648_v26 = vrot.slane %v1646_v18, 1  ;;  %v1651_v27 = vrot.slane %v1649_v19, 2  ;;  %v1574_v21 = vrot.slane %v2996_v2, 1  ;;  %v2518_v46 = vld [vmem:[%s3158_s11 + $0x10] sm:$0xff]  }
 0x6e1   : > { %2333 = vmatpush3.bf16.msra.mxu0 %v2496_v51  ;;  %2356 = vmatprep.subr.bf16.mxu1 %v2644_v0  ;;  %v1500_v15 = vor.u32 %v1499_v63, %v1495_v7  ;;  %v1660_v34 = vor.u32 %v1659_v28, %v1656_v24  ;;  %v1575_v32 = vrot.slane %v2986_v58, 1  ;;  %v2195_v41 = vcombine.low %v1720_v38, %v2977_v39  ;;  %v2517_v39 = vld [vmem:[%s3158_s11 + $0x18] sm:$0xff]  }
 0x6e2   : > { %2334 = vmatprep.subr.bf16.mxu0 %v2644_v0  ;;  %v1354_v62 = vsel %vm1337_vm8, %v1345_v56, %v1353_v55  ;;  %2336 = vmatprep.mubr.msk.bf16.mxu0 %vm2645_vm0, %v2644_v0  ;;  %v1652_v33 = vor.u32 %v1651_v27, %v1648_v26  ;;  %v1730_v44 = vrot.slane %v2989_v61, 2 }
 0x6e3   : > { %2345 = vmatmul.mubr.msk.bf16.vlgmr.msra.gmra.mxu1 %vm610_vm1, %v1354_v62  ;;  %v1505_v25 = vsel %vm1493_vm10, %v1500_v15, %v1504_v16  ;;  %v1576_v40 = vsel %vm1573_vm12, %v1574_v21, %v1575_v32  ;;  %v1729_v43 = vrot.slane %v2195_v41, 2  ;;  %v2199_v32 = vld [vmem:[%s3157_s10] ss:$0 sm:$0xff] }
 0x6e4   : > { %2357 = vmatpush3.bf16.msra.mxu1 %v2501_v57  ;;  %2360 = vmatprep.mubr.msk.bf16.mxu1 %vm2645_vm0, %v2644_v0  ;;  %v1661_v36 = vsel %vm1644_vm11, %v1652_v33, %v1660_v34 }
 0x6e5   : > { %2335 = vmatpush3.bf16.msra.mxu0 %v2500_v59  ;;  %2358 = vmatprep.subr.bf16.mxu1 %v2644_v0  ;;  %v1731_v45 = vsel %vm1197_vm6, %v1729_v43, %v1730_v44 }
 0x6e6   : > { %2348 = vmatprep.subr.bf16.mxu0 %v2644_v0 }
 0x6e8   : > { %2337 = vmatmul.mubr.msk.bf16.vlgmr.msra.gmra.mxu0 %vm610_vm1, %v1269_v20  ;;  %2359 = vmatpush3.bf16.msra.mxu1 %v2503_v6 }
 0x6e9   : > { %2349 = vmatpush3.bf16.msra.mxu0 %v2502_v10  ;;  %2372 = vmatprep.subr.bf16.mxu1 %v2644_v0 }
 0x6ea   : > { %2350 = vmatprep.subr.bf16.mxu0 %v2644_v0  ;;  %2352 = vmatprep.mubr.msk.bf16.mxu0 %vm2645_vm0, %v2644_v0 }
 0x6eb   : > { %2361 = vmatmul.mubr.msk.bf16.vlgmr.msra.gmra.mxu1 %vm610_vm1, %v1505_v25 }
 0x6ec   : > { %2373 = vmatpush3.bf16.msra.mxu1 %v2507_v22  ;;  %2376 = vmatprep.mubr.msk.bf16.mxu1 %vm2645_vm0, %v2644_v0 }
 0x6ed   : > { %2351 = vmatpush3.bf16.msra.mxu0 %v2506_v23  ;;  %2374 = vmatprep.subr.bf16.mxu1 %v2644_v0 }
 0x6ee   : > { %2364 = vmatprep.subr.bf16.mxu0 %v2644_v0 }
 0x6f0   : > { %2353 = vmatmul.mubr.msk.bf16.vlgmr.msra.gmra.mxu0 %vm610_vm1, %v2178_v31  ;;  %2375 = vmatpush3.bf16.msra.mxu1 %v2510_v29 }
 0x6f1   : > { %2365 = vmatpush3.bf16.msra.mxu0 %v2509_v30  ;;  %2368 = vmatprep.mubr.msk.bf16.mxu0 %vm2645_vm0, %v2644_v0 }
 0x6f2   : > { %2366 = vmatprep.subr.bf16.mxu0 %v2644_v0  ;;  %2388 = vmatprep.subr.bf16.mxu1 %v2644_v0 }
 0x6f3   : > { %2377 = vmatmul.mubr.msk.bf16.vlgmr.msra.gmra.mxu1 %vm610_vm1, %v1661_v36 }
 0x6f4   : > { %2396 = vmatprep.mubr.msk.bf16.mxu1 %vm2645_vm0, %v2644_v0  ;;  %2389 = vmatpush3.bf16.msra.mxu1 %v2517_v39 }
 0x6f5   : > { %2367 = vmatpush3.bf16.msra.mxu0 %v2513_v35  ;;  %2390 = vmatprep.subr.bf16.mxu1 %v2644_v0 }
 0x6f6   : > { %2380 = vmatprep.subr.bf16.mxu0 %v2644_v0 }
 0x6f8   : > { %2369 = vmatmul.mubr.msk.bf16.vlgmr.msra.gmra.mxu0 %vm610_vm1, %v1576_v40  ;;  %2391 = vmatpush3.bf16.msra.mxu1 %v2518_v46 }
 0x6f9   : > { %2381 = vmatpush3.bf16.msra.mxu0 %v2514_v37  ;;  %2384 = vmatprep.mubr.msk.bf16.mxu0 %vm2645_vm0, %v2644_v0 }
 0x6fa   : > { %2382 = vmatprep.subr.bf16.mxu0 %v2644_v0  ;;  %2392 = vmatprep.subr.bf16.mxu1 %v2644_v0 }
 0x6fc   : > { %2393 = vmatpush3.bf16.msra.mxu1 %v2519_v47  ;;  %v2200_v47 = vld [vmem:[%s3159_s12] ss:$0 sm:$0xff] }
 0x6fd   : > { %2383 = vmatpush3.bf16.msra.mxu0 %v2515_v42  ;;  %2394 = vmatprep.subr.bf16.mxu1 %v2644_v0 }
 0x700   : > { %2385 = vmatmul.mubr.msk.bf16.vlgmr.msra.gmra.mxu0 %vm610_vm1, %v1731_v45  ;;  %2395 = vmatpush3.bf16.msra.mxu1 %v2520_v3 }
 0x79b   : > { %v1250_v48 = vpop.f32.mrf.mxu1 }
 0x79d   : > { %v2330_v49 = vpop.f32.mrf.mxu1 }
 0x79f   : > { %v1253_v50 = vpop.f32.mrf.mxu1 }
 0x7a0   : > { %v1187_v51 = vpop.f32.mrf.mxu0 }
 0x7a1   : > { %v2331_v4 = vpop.f32.mrf.mxu1  ;;  %v1251_v63 = vadd.f32 %v1250_v48, %v1187_v51 }
 0x7a2   : > { %v2322_v52 = vpop.f32.mrf.mxu0 }
 0x7a3   : > { %v1404_v53 = vpop.f32.mrf.mxu1 }
 0x7a4   : > { %v1190_v54 = vpop.f32.mrf.mxu0 }
 0x7a5   : > { %v2346_v55 = vpop.f32.mrf.mxu1  ;;  %v1254_v7 = vadd.f32 %v1253_v50, %v1190_v54 }
 0x7a6   : > { %v2323_v56 = vpop.f32.mrf.mxu0 }
 0x7a7   : > { %v1407_v57 = vpop.f32.mrf.mxu1 }
 0x7a8   : > { %v1319_v58 = vpop.f32.mrf.mxu0 }
 0x7a9   : > { %v2347_v59 = vpop.f32.mrf.mxu1  ;;  %v1326_v2 = vadd.f32 %v1319_v58, %v1251_v63 }
 0x7aa   : > { %v2338_v60 = vpop.f32.mrf.mxu0 }
 0x7ab   : > { %v1555_v61 = vpop.f32.mrf.mxu1  ;;  %v1411_v13 = vadd.f32 %v1404_v53, %v1326_v2 }
 0x7ac   : > { %v1322_v62 = vpop.f32.mrf.mxu0 }
 0x7ad   : > { %v2362_v1 = vpop.f32.mrf.mxu1  ;;  %v1327_v11 = vadd.f32 %v1322_v62, %v1254_v7 }
 0x7ae   : > { %v2339_v0 = vpop.f32.mrf.mxu0 }
 0x7af   : > { %v1558_v5 = vpop.f32.mrf.mxu1  ;;  %v1412_v22 = vadd.f32 %v1407_v57, %v1327_v11 }
 0x7b0   : > { %v1468_v6 = vpop.f32.mrf.mxu0 }
 0x7b1   : > { %v2363_v8 = vpop.f32.mrf.mxu1  ;;  %v1475_v18 = vadd.f32 %v1468_v6, %v1411_v13  ;;  %v2207_v13 = vld [vmem:[%s3161_s14] ss:$0 sm:$0xff] }
 0x7b2   : > { %v2354_v10 = vpop.f32.mrf.mxu0 }
 0x7b3   : > { %v1711_v15 = vpop.f32.mrf.mxu1  ;;  %v1562_v26 = vadd.f32 %v1555_v61, %v1475_v18  ;;  %v2206_v10 = vld [vmem:[%s3160_s13] ss:$0 sm:$0xff] }
 0x7b4   : > { %v1471_v16 = vpop.f32.mrf.mxu0 }
 0x7b5   : > { %v2378_v19 = vpop.f32.mrf.mxu1  ;;  %v1476_v25 = vadd.f32 %v1471_v16, %v1412_v22 }
 0x7b6   : > { %v2355_v20 = vpop.f32.mrf.mxu0 }
 0x7b7   : > { %v1714_v23 = vpop.f32.mrf.mxu1  ;;  %v1563_v31 = vadd.f32 %v1558_v5, %v1476_v25 }
 0x7b8   : > { %v1626_v24 = vpop.f32.mrf.mxu0 }
 0x7b9   : > { %v2379_v27 = vpop.f32.mrf.mxu1  ;;  %v1633_v29 = vadd.f32 %v1626_v24, %v1562_v26 }
 0x7ba   : > { %v2370_v28 = vpop.f32.mrf.mxu0 }
 0x7bb   : > { %v1718_v35 = vadd.f32 %v1711_v15, %v1633_v29 }
 0x7bc   : > { %v1629_v30 = vpop.f32.mrf.mxu0 }
 0x7bd   : > { %v1634_v34 = vadd.f32 %v1629_v30, %v1563_v31 }
 0x7be   : > { %v2371_v33 = vpop.f32.mrf.mxu0 }
 0x7bf   : > { %v1719_v38 = vadd.f32 %v1714_v23, %v1634_v34 }
 0x7c0   : > { %v1781_v36 = vpop.f32.mrf.mxu0 }
 0x7c1   : > { %v1788_v21 = vadd.f32 %v1781_v36, %v1718_v35 }
 0x7c2   : > { %v2386_v37 = vpop.f32.mrf.mxu0 }
 0x7c3   : > { %v1797_v41 = vadd.f32 %v2199_v32, %v1788_v21 }
 0x7c4   : > { %v1784_v40 = vpop.f32.mrf.mxu0 }
 0x7c5   : > { %v1789_v42 = vadd.f32 %v1784_v40, %v1719_v38  ;;  %v1799_v45 = vmax.f32 %v1797_v41, 0.0 }
 0x7c6   : > { %v2387_v43 = vpop.f32.mrf.mxu0 }
 0x7c7   : > { %v1798_v44 = vadd.f32 %v2199_v32, %v1789_v42 }
 0x7c9   : > { %v1800_v39 = vmax.f32 %v1798_v44, 0.0 }
 0x7cb   : > { %v1801_v46 = vpack.c.bf16 %v1800_v39, %v1799_v45 }
 0x7cd   : > { %2397 = vmatmul.mubr.msk.bf16.vlgmr.msra.gmra.mxu1 %vm1841_vm13, %v1801_v46 }
 0x88d   : > { %v1879_v3 = vpop.f32.mrf.mxu1 }
 0x88e   : > { %v1880_v48 = vadd.f32 %v2200_v47, %v1879_v3 }
 0x88f   : > { %v2398_v49 = vpop.f32.mrf.mxu1 }
 0x890   : > { %v1886_v50 = vadd.f32 %v1880_v48, %v2948_v12 }
 0x891   : > { %v1882_v51 = vpop.f32.mrf.mxu1 }
 0x892   : > { %v1883_v4 = vadd.f32 %v2200_v47, %v1882_v51  ;;  %v1890_v52 = vsel %vm610_vm1, %v1886_v50, 0.0 }
 0x893   : > { %1891 = vadd.xlane.f32.xlu1 %v1890_v52  ;;  %v2399_v53 = vpop.f32.mrf.mxu1 }
 0x894   : > { %v1887_v54 = vadd.f32 %v1883_v4, %v2956_v17 }
 0x896   : > { %v1893_v55 = vsel %vm610_vm1, %v1887_v54, 0.0 }
 0x897   : > { %1894 = vadd.xlane.f32.xlu0 %v1893_v55 }
 0x91c   : > { %v1892_v56 = vpop.xlane.xlu1 %1891 }
 0x91d   : > { %v1896_v57 = vmul.f32 0.03125, %v1892_v56 }
 0x91f   : > { %v1898_v58 = vsub.f32 %v1886_v50, %v1896_v57 }
 0x920   : > { %v1895_v59 = vpop.xlane.xlu0 %1894 }
 0x921   : > { %v1897_v60 = vmul.f32 0.03125, %v1895_v59  ;;  %v1900_v61 = vmul.f32 %v1898_v58, %v1898_v58 }
 0x923   : > { %v1899_v62 = vsub.f32 %v1887_v54, %v1897_v60  ;;  %v1902_v12 = vsel %vm610_vm1, %v1900_v61, 0.0 }
 0x924   : > { %1903 = vadd.xlane.f32.xlu1 %v1902_v12 }
 0x925   : > { %v1901_v63 = vmul.f32 %v1899_v62, %v1899_v62 }
 0x927   : > { %v1905_v1 = vsel %vm610_vm1, %v1901_v63, 0.0 }
 0x928   : > { %1906 = vadd.xlane.f32.xlu1 %v1905_v1 }
 0x9ad   : > { %v1904_v0 = vpop.xlane.xlu1 %1903 }
 0x9ae   : > { %v1908_v2 = vmul.f32 0.03125, %v1904_v0 }
 0x9b0   : > { %v1910_v17 = vadd.f32 1e-05, %v1908_v2 }
 0x9b1   : > { %v1907_v5 = vpop.xlane.xlu1 %1906 }
 0x9b2   : > { %2541 = vrsqrt.f32 %v1910_v17  ;;  %v1909_v6 = vmul.f32 0.03125, %v1907_v5 }
 0x9b4   : > { %v1911_v7 = vadd.f32 1e-05, %v1909_v6 }
 0x9b6   : > { %2543 = vrsqrt.f32 %v1911_v7 }
 0x9bf   : > { %v2542_v8 = vpop.eup %2541 }
 0x9c0   : > { %v1914_v11 = vmul.f32 %v2542_v8, %v1898_v58 }
 0x9c2   : > { %v1922_v15 = vmul.f32 %v2206_v10, %v1914_v11 }
 0x9c3   : > { %v2544_v16 = vpop.eup %2543 }
 0x9c4   : > { %v1930_v18 = vadd.f32 %v2207_v13, %v1922_v15  ;;  %v1915_v19 = vmul.f32 %v2544_v16, %v1899_v62 }
 0x9c6   : > { %v1932_v20 = vmul.f32 %v1930_v18, %v2945_v9  ;;  %v1923_v22 = vmul.f32 %v2206_v10, %v1915_v19 }
 0x9c8   : > { %v1931_v23 = vadd.f32 %v2207_v13, %v1923_v22  ;;  %1934 = vst.msk [vmem:[%s559_s9] sm:$0xff] %vm610_vm1, %v1932_v20 }
 0x9ca   : > { %v1933_v9 = vmul.f32 %v1931_v23, %v2950_v14 }
 0x9cc   : > { %1935 = vst.msk [vmem:[%s559_s9 + $0x8] sm:$0xff] %vm610_vm1, %v1933_v9 }
 0x9cd   : > { %2584 = shalt.err (!%p2581_p0)
}
 0x9ce   : > { %s2585_s9 = scalar_lea.hbm %s3081_s26, 256  ;;  %s2589_s1 = scalar_lea.hbm %s3162_s15, 512 }
 0x9cf   : > { %p2586_p1 = scmp.ne.s32.totalorder %s3081_s26, %s2585_s9  ;;  %p2590_p4 = scmp.lt.s32.totalorder %s3081_s26, %s3162_s15 }
 0x9d0   : > { %p2591_p7 = scmp.lt.s32.totalorder %s2589_s1, %s2585_s9 }
 0x9d1   : > { %p2587_p2 = pnand %p2586_p1, %p2786_p5 }
 0x9d2   : > { %p2592_p8 = por %p2591_p7, %p2590_p4 }
 0x9d3   : > { %p2588_p3 = pneg %p2587_p2 }
 0x9d5   : > { %p2593_p6 = pnand %p2592_p8, %p2588_p3 }
 0x9d7   : > { %2596 = shalt.err (!%p2593_p6)
}
 0x9d8   : > { %s2654_s2 = smov 128   ;;  %s2655_s29 = smov 8  }
 0x9d9   : > { %s3187_s19 = scalar_lea.sflag [#allocation6], %s2881_s18  ;;  %s1942_s23 = scalar_lea.sflag [#allocation9], %s2881_s18 }
 0x9da   : > { %2404 = dma.vmem_to_hbm [thread:$0]  (%p2786_p5), %s3083_s27, 256, %s3081_s26, %s3187_s19, %s2654_s2, %s2654_s2, %s2655_s29  }
 0x9db   : > { %s2229_s3 = sshll.u32 %s2769_s25, 7  ;;  %s1981_s28 = sshll.u32 %s2887_s20, 4  ;;  %s1982_s28 = int_to_ptr.vmem [resolvable:$true] %s1981_s28 }
 0x9dc   : > { %s1970_s1 = scalar_lea.hbm %s3163_s16, %s2229_s3  ;;  %s2656_s4 = smov 128  }
 0x9dd   : > { %2405 = sst [smem:[#allocation11]] (%p2786_p5), %s2656_s4  ;;  %s2657_s18 = smov 256  }
 0x9de   : > { %2406 = sst [smem:[#allocation11 + $0x1]] (%p2786_p5), %s2657_s18  ;;  %s2658_s27 = smov 2  }
 0x9df   : > { %2407 = sst [smem:[#allocation11 + $0x2]] (%p2786_p5), %s2658_s27  ;;  %s2659_s26 = smov 64  }
 0x9e0   : > { %2408 = sst [smem:[#allocation11 + $0x3]] (%p2786_p5), %s2659_s26  ;;  %s2660_s25 = smov 4  }
 0x9e1   : > { %2409 = sst [smem:[#allocation11 + $0x4]] (%p2786_p5), %s2659_s26  ;;  %s2661_s20 = smov 131072  }
 0x9e2   : > { %2410 = sst [smem:[#allocation11 + $0x5]] (%p2786_p5), %s2660_s25  ;;  %s2662_s2 = smov 0  }
 0x9e3   : > { %2411 = dma.general (%p2786_p5), %s1982_s28, 256, %s1970_s1, %s1942_s23, %s2661_s20, [#allocation11], %s2662_s2, 0  }
 0x9e4 PF: > { %p2427_p9 = scmp.ge.s32.totalorder %s2639_s24, 2  ;;  %s2009_s4 = sand.u32 1, %s2627_s21  }
 0x9e5   : > { %p3188_p10 = scmp.ne.s32.totalorder %s3178_s17, 0  ;;  %s2010_s29 = scalar_lea.sflag [#allocation6], %s2009_s4 }
 0x9e7   : > { %p2419_p11 = pnand %p2427_p9, %p3188_p10 }
 0x9e9   : > { %p2420_p12 = pneg %p2419_p11 }
 0x9eb   : > { %2618 = dma.done.wait (%p2420_p12), %s2010_s29, 256  }
 0x9ec   : > { %2620 = vsyncadd (%p2420_p12), %s2010_s29, 4294967040  ;;  %s2019_s19 = scalar_lea.sflag [#allocation9], %s2009_s4 }
 0x9ed   : > { %2622 = dma.done.wait (%p2420_p12), %s2019_s19, 256  }
 0x9ee   : > { %2624 = vsyncadd (%p2420_p12), %s2019_s19, 4294967040  ;;  %s3189_s24 = sld [smem:[#allocation16_spill]]  ;;  %s3192_s21 = smov %s2631_s22 }
 0x9ef   : > { %s3190_s3 = sld [smem:[#allocation15_spill]] }
 0x9f0   : > { %s3191_s23 = sld [smem:[#allocation17_spill]] }
 0x9f4   : > { %p31_p5 = scmp.ge.s32.totalorder %s3189_s24, 4  }
 0x9f5   : > { %s3193_s22 = smov %s3190_s3 }
 0x9f6   :  { %33 = sbr.rel (!%p31_p5) target bundleno = 13 (0xd), region = 157 }
 0x9fb   :  { %2024 = vsyncpa [#allocation5], 1 }
 0x9fc   :  { %2026 = vsyncpa [#allocation5 + $0x1], 1 }
 0x9fd   :  { %2027 = vsyncpa [#allocation6], 1 }
 0x9fe   :  { %2029 = vsyncpa [#allocation6 + $0x1], 1 }
 0x9ff   :  { %2030 = vsyncpa [#allocation9], 1 }
 0xa00   :  { %2032 = vsyncpa [#allocation9 + $0x1], 1 }

// kernel: tpu_custom_call.1
= control target key start
LH: loop header
LB: loop body
LE: loop exit
PB: predicated region body
PF: predicated region fallthrough
CT: control target
= control target key end

     0   :  { %s3147_s0 = inlined_call_operand.vmem [shape: f32[2,16,32], index: 0, kind: input, shape index: {}]   ;;  %s3148_s1 = inlined_call_operand.vmem [shape: f32[2,1,16], index: 1, kind: input, shape index: {}]   ;;  %s3149_s2 = inlined_call_operand.vmem [shape: f32[2,16,1], index: 2, kind: input, shape index: {}]   ;;  %s3150_s3 = inlined_call_operand.vmem [shape: bf16[32,96], index: 3, kind: input, shape index: {}]   ;;  %s3151_s4 = inlined_call_operand.vmem [shape: f32[1,96], index: 4, kind: input, shape index: {}]   ;;  %s3152_s5 = inlined_call_operand.vmem [shape: bf16[32,32], index: 5, kind: input, shape index: {}]   ;;  %s3153_s6 = inlined_call_operand.vmem [shape: f32[1,32], index: 6, kind: input, shape index: {}]   ;;  %s3154_s7 = inlined_call_operand.vmem [shape: f32[1,32], index: 7, kind: input, shape index: {}]   ;;  %s3155_s8 = inlined_call_operand.vmem [shape: f32[1,32], index: 8, kind: input, shape index: {}]   ;;  %s3156_s9 = inlined_call_operand.hbm [shape: bf16[9,32,64], index: 9, kind: input, shape index: {}]   ;;  %s3157_s10 = inlined_call_operand.vmem [shape: f32[1,64], index: 10, kind: input, shape index: {}]   ;;  %s3158_s11 = inlined_call_operand.vmem [shape: bf16[1,64,32], index: 11, kind: input, shape index: {}]   ;;  %s3159_s12 = inlined_call_operand.vmem [shape: f32[1,32], index: 12, kind: input, shape index: {}]   ;;  %s3160_s13 = inlined_call_operand.vmem [shape: f32[1,32], index: 13, kind: input, shape index: {}]   ;;  %s3161_s14 = inlined_call_operand.vmem [shape: f32[1,32], index: 14, kind: input, shape index: {}]   ;;  %s3162_s15 = inlined_call_operand.hbm [shape: f32[2,16,32], index: 15, kind: output, shape index: {0}]   ;;  %s3163_s16 = inlined_call_operand.hbm [shape: bf16[2,2,16,16], index: 16, kind: output, shape index: {1}]  }
   0x1   :  { %3168 = sst [smem:[#allocation18_spill]] %s3147_s0 }
   0x2   :  { %3169 = sst [smem:[#allocation19_spill]] %s3148_s1 }
   0x3   :  { %3170 = sst [smem:[#allocation20_spill]] %s3149_s2 }
   0x4   :  { %3171 = sst [smem:[#allocation21_spill]] %s3150_s3 }
   0x5   :  { %3172 = sst [smem:[#allocation22_spill]] %s3151_s4 }
   0x6   :  { %3173 = sst [smem:[#allocation23_spill]] %s3156_s9 }
   0x7   :  { %22 = vsyncpa [#allocation5], 0 }
   0x8   :  { %23 = vsyncpa [#allocation6], 0 }
   0x9   :  { %25 = vsyncpa [#allocation6 + $0x1], 0 }
   0xa   :  { %26 = vsyncpa [#allocation9], 0 }
   0xb   :  { %28 = vsyncpa [#allocation9 + $0x1], 0  ;;  %s2748_s21 = smov 0   ;;  %s2750_s22 = smov 0  }
   0xc   :  { %s2752_s23 = smov 0   ;;  %s2754_s24 = smov 0  }
   0xd LB: > { %3174 = sst [smem:[#allocation15_spill]] %s2635_s23  ;;  %s2769_s25 = sadd.s32 4294967295, %s2639_s24   ;;  %s2639_s24 = sphi %s2754_s24, %s3189_s24   ;;  %s2635_s23 = sphi %s2752_s23, %s3191_s23   ;;  %s2631_s22 = sphi %s2750_s22, %s3193_s22   ;;  %s2627_s21 = sphi %s2748_s21, %s3192_s21  }
   0xe   : > { %s2121_s26 = sadd.s32 4294967294, %s2639_s24   ;;  %s2773_s27 = sadd.s32 1, %s2639_s24  }
   0xf   : > { %3175 = sst [smem:[#allocation16_spill]] %s2773_s27  ;;  %s371_s28 = sadd.s32 1, %s2635_s23 }
  0x10   : > { %s368_s29 = ssub.s32 %s2639_s24, %s2773_s27  ;;  %p381_p0 = scmp.ne.s32.totalorder %s2635_s23, %s2631_s22 }
  0x11   : > { %p369_p1 = scmp.eq.s32.totalorder %s368_s29, 0  ;;  %p382_p2 = scmp.eq.s32.totalorder %s2769_s25, 1 }
  0x12   : > { %p387_p3 = scmp.ne.s32.totalorder %s2631_s22, %s2627_s21  ;;  %p388_p4 = scmp.eq.s32.totalorder %s2121_s26, 1 }
  0x13   : > { %s2784_s30 = scalar_select %p369_p1, %s2635_s23, %s371_s28  }
  0x14   : > { %p2786_p5 = por %p382_p2, %p381_p0  ;;  %p2790_p6 = por %p388_p4, %p387_p3 }
  0x15   : > { %3176 = sst [smem:[#allocation17_spill]] %s2784_s30  ;;  %p2122_p7 = scmp.ge.s32.totalorder %s2639_s24, 1 }
  0x16   : > { %s3178_s17 = scalar_select %p2790_p6, 1, 0 }
  0x17   : > { %p421_p8 = scmp.lt.s32.totalorder %s2639_s24, 3  ;;  %p2425_p9 = scmp.eq.s32.totalorder %s2769_s25, 0 }
  0x18   : > { %s2641_s19 = smov [#allocation4]  }
  0x19   : > { %p2797_p10 = pnand %p2122_p7, %p421_p8  ;;  %s451_s20 = sshll.u32 %s2641_s19, 4  ;;  %s452_s20 = int_to_ptr.vmem [resolvable:$true] %s451_s20 }
  0x1a   : > { %s2556_s26 = scalar_lea.vmem %s452_s20, 2304  ;;  %p2564_p3 = scmp.lt.s32.totalorder %s452_s20, %s452_s20 }
  0x1b   : > { %p2414_p11 = pneg %p2797_p10  ;;  %p2557_p0 = scmp.ne.s32.totalorder %s452_s20, %s2556_s26 }
  0x1c   : > { %p2565_p4 = scmp.lt.s32.totalorder %s2556_s26, %s2556_s26 }
  0x1d   : > { %p2415_p12 = pnand %p2425_p9, %p2414_p11 }
  0x1e   : > { %p2566_p6 = por %p2565_p4, %p2564_p3 }
  0x1f   : > { %p2547_p13 = pneg %p2415_p12 }
  0x21   : > { %p2559_p1 = pnand %p2557_p0, %p2547_p13 }
  0x23   : > { %p2560_p2 = pneg %p2559_p1 }
  0x25   : > { %p2567_p7 = pnand %p2566_p6, %p2560_p2 }
  0x27   : > { %2570 = shalt.err (!%p2567_p7)
}
  0x28   : > { %s2642_s28 = smov 64   ;;  %s2643_s29 = smov 4  }
  0x29   : > { %s3180_s9 = sld [smem:[#allocation23_spill]] }
  0x2b   : > { %504 = sbr.rel (%p2797_p10) target bundleno = 2532 (0x9e4), region = 80 }
  0x2f   : > { %2417 = dma.hbm_to_vmem [thread:$0]  (!%p2415_p12), %s3180_s9, 2304, %s452_s20, [#allocation5], %s2642_s28, %s2642_s28, %s2643_s29  }
  0x30   : > { %2614 = dma.done.wait (%p2425_p9), [#allocation5], 2304  }
  0x31   : > { %2616 = vsyncadd (%p2425_p9), [#allocation5], 4294964992  ;;  %p567_p8 = scmp.lt.s32.totalorder %s2769_s25, 1  ;;  %v2644_v0 = vmov 0.0   ;;  %vm2645_vm0 = vmmov 0   ;;  %s3181_s20 = sld [smem:[#allocation18_spill]] }
  0x32   : > { %2276 = vmatprep.subr.bf16.mxu0 %v2644_v0  ;;  %2280 = vmatprep.mubr.msk.bf16.mxu0 %vm2645_vm0, %v2644_v0  ;;  %s3182_s3 = sld [smem:[#allocation21_spill]]  ;;  %vm610_vm1 = vcmask 261120   ;;  %s2646_s18 = smov 112   ;;  %vm665_vm2 = vcmask 130048   ;;  %vm743_vm3 = vcmask 125952   ;;  %vm946_vm4 = vcmask 257152  }
  0x33   : > { %s2819_s23 = scalar_select %p567_p8, %s2769_s25, 1  ;;  %2284 = vmatprep.subr.bf16.mxu1 %v2644_v0  ;;  %2286 = vmatprep.mubr.msk.bf16.mxu1 %vm2645_vm0, %v2644_v0  ;;  %vm1082_vm5 = vcmask 257024   ;;  %vm1197_vm6 = vcmask 1045504   ;;  %vm1120_vm7 = vsmask.f32 5376  ;;  %vm1266_vm9 = vcmask 1044480  }
  0x34   : > { %s3183_s4 = sld [smem:[#allocation22_spill]]  ;;  %s2647_s19 = smov 96   ;;  %vm1337_vm8 = vsmask.f32 4352  ;;  %vm1493_vm10 = vsmask.f32 7424 }
  0x35   : > { %s2216_s30 = sshll.u32 %s2819_s23, 4  ;;  %s3184_s1 = sld [smem:[#allocation19_spill]]  ;;  %vm1644_vm11 = vsmask.f32 6400  ;;  %vm1573_vm12 = vcmask 1046528   ;;  %vm1841_vm13 = vcmask 523264  }
  0x36   : > { %s2649_s9 = smov 48   ;;  %s2650_s27 = smov 64  }
  0x37   : > { %s571_s26 = scalar_lea.vmem %s3181_s20, %s2216_s30  ;;  %s2648_s20 = smov 80  }
  0x38   : > { %v2483_v1 = vld [vmem:[%s3182_s3 + $0x8] sm:$0xff]   ;;  %v2484_v2 = vld [vmem:[%s3182_s3] sm:$0xff]   ;;  %s3185_s2 = sld [smem:[#allocation20_spill]] }
  0x39   : > { %2277 = vmatpush3.bf16.msra.mxu0 %v2483_v1  ;;  %v2836_v3 = vld [vmem:[%s571_s26] sm:$0xff]  ;;  %v2838_v4 = vld [vmem:[%s571_s26 + $0x8] sm:$0xff] }
  0x3a   : > { %2278 = vmatprep.subr.bf16.mxu0 %v2644_v0  ;;  %v586_v5 = vpack.c.bf16 %v2838_v4, %v2836_v3  ;;  %v2133_v7 = vld [vmem:[%s3183_s4] ss:$0 sm:$0xff] }
  0x3b   : > { %s574_s29 = scalar_lea.vmem %s3184_s1, %s2819_s23  ;;  %s2653_s1 = smov [#allocation7]  }
  0x3c   : > { %v2137_v19 = vld [vmem:[%s574_s29] ss:$0 sm:$0xff] }
  0x3d   : > { %2279 = vmatpush3.bf16.msra.mxu0 %v2484_v2 }
  0x3e   : > { %2290 = vmatprep.subr.bf16.mxu0 %v2644_v0 }
  0x40   : > { %2281 = vmatmul.mubr.msk.bf16.vlgmr.msra.gmra.mxu0 %vm610_vm1, %v586_v5 }
  0x41   : > { %2292 = vmatprep.mubr.msk.bf16.mxu0 %vm2645_vm0, %v2644_v0 }
 0x100   : > { %v648_v6 = vpop.f32.mrf.mxu0 }
 0x101   : > { %v649_v10 = vadd.f32 %v2133_v7, %v648_v6 }
 0x102   : > { %v2282_v8 = vpop.f32.mrf.mxu0 }
 0x104   : > { %v651_v9 = vpop.f32.mrf.mxu0 }
 0x105   : > { %v652_v11 = vadd.f32 %v2133_v7, %v651_v9 }
 0x106   : > { %v2283_v12 = vpop.f32.mrf.mxu0 }
 0x107   : > { %v2850_v13 = vpack.c.bf16 %v652_v11, %v649_v10 }
 0x109   : > { %803 = vrot.lane.b32.xlu1 %v2850_v13, %s2646_s18  ;;  %663 = vrot.lane.b32.xlu0 %v2850_v13, %s2647_s19  ;;  %s2881_s18 = sand.u32 1, %s2631_s22  }
 0x10a   : > { %s3167_s19 = sshll.u32 %s2881_s18, 4  ;;  %s3186_s29 = sshll.u32 %s2881_s18, 4 }
 0x10d   : > { %805 = vrot.lane.b32.xlu0 %v2850_v13, %s2648_s20  ;;  %s2887_s20 = scalar_lea.vmem [#allocation8], %s3167_s19  ;;  %s2228_s19 = sshll.u32 %s2769_s25, 8 }
 0x10e   : > { %s3081_s26 = scalar_lea.hbm %s3162_s15, %s2228_s19 }
 0x17b   : > { %v664_v14 = vpop.permute.xlu0 %663  ;;  %v804_v18 = vpop.permute.xlu1 %803 }
 0x17c   : > { %v670_v15 = vsel %vm665_vm2, %v664_v14, 0 }
 0x17d   : > { %2285 = vmatpush3.bf16.xpose.msra.mxu1 %v670_v15 }
 0x17e   : > { %2296 = vmatprep.subr.bf16.mxu1 %v2644_v0 }
 0x17f   : > { %v806_v16 = vpop.permute.xlu0 %805 }
 0x180   : > { %v811_v17 = vsel %vm665_vm2, %v806_v16, 0 }
 0x184   : > { %2287 = vmatmul.mubr.msk.bf16.vlgmr.msra.gmra.mxu1 %vm665_vm2, %v2850_v13 }
 0x185   : > { %2297 = vmatpush3.bf16.xpose.msra.mxu1 %v811_v17  ;;  %2298 = vmatprep.mubr.msk.bf16.mxu1 %vm2645_vm0, %v2644_v0 }
 0x186   : > { %2308 = vmatprep.subr.bf16.mxu1 %v2644_v0 }
 0x18c   : > { %2299 = vmatmul.mubr.msk.bf16.vlgmr.msra.gmra.mxu1 %vm665_vm2, %v804_v18  ;;  %v2485_v18 = vld [vmem:[%s3152_s5 + $0x8] sm:$0xff]  }
 0x18d   : > { %2312 = vmatprep.mubr.msk.bf16.mxu1 %vm2645_vm0, %v2644_v0  ;;  %2309 = vmatpush3.bf16.msra.mxu1 %v2485_v18 }
 0x18e   : > { %2310 = vmatprep.subr.bf16.mxu1 %v2644_v0 }
 0x244   : > { %v706_v20 = vpop.f32.mrf.mxu1 }
 0x245   : > { %v707_v21 = vadd.f32 %v2137_v19, %v706_v20  ;;  %v2486_v20 = vld [vmem:[%s3152_s5] sm:$0xff]  }
 0x246   : > { %v2288_v22 = vpop.f32.mrf.mxu1  ;;  %2311 = vmatpush3.bf16.msra.mxu1 %v2486_v20 }
 0x247   : > { %v713_v23 = vsel %vm665_vm2, %v707_v21, -inf  ;;  %2324 = vmatprep.subr.bf16.mxu1 %v2644_v0 }
 0x248   : > { %714 = vmax.xlane.f32.xlu1 %v713_v23  ;;  %v709_v24 = vpop.f32.mrf.mxu1 }
 0x249   : > { %v710_v25 = vadd.f32 %v2137_v19, %v709_v24 }
 0x24a   : > { %v2289_v26 = vpop.f32.mrf.mxu1 }
 0x24b   : > { %v716_v27 = vsel %vm665_vm2, %v710_v25, -inf }
 0x24c   : > { %717 = vmax.xlane.f32.xlu0 %v716_v27  ;;  %v847_v28 = vpop.f32.mrf.mxu1 }
 0x24d   : > { %v848_v29 = vadd.f32 %v2137_v19, %v847_v28 }
 0x24e   : > { %v2300_v30 = vpop.f32.mrf.mxu1 }
 0x24f   : > { %v854_v31 = vsel %vm665_vm2, %v848_v29, -inf }
 0x250   : > { %855 = vmax.xlane.f32.xlu0 %v854_v31  ;;  %v850_v32 = vpop.f32.mrf.mxu1 }
 0x251   : > { %v851_v33 = vadd.f32 %v2137_v19, %v850_v32  ;;  %v2152_v32 = vld [vmem:[%s3153_s6] ss:$0 sm:$0xff] }
 0x252   : > { %v2301_v34 = vpop.f32.mrf.mxu1 }
 0x253   : > { %v857_v35 = vsel %vm665_vm2, %v851_v33, -inf }
 0x254   : > { %858 = vmax.xlane.f32.xlu1 %v857_v35 }
 0x2d1   : > { %v715_v36 = vpop.xlane.xlu1 %714 }
 0x2d2   : > { %v719_v37 = vsub.f32 %v707_v21, %v715_v36 }
 0x2d4   : > { %v721_v38 = vmul.f32 1.442695, %v719_v37 }
 0x2d5   : > { %v718_v39 = vpop.xlane.xlu0 %717 }
 0x2d6   : > { %2521 = vpow2.f32 %v721_v38  ;;  %v720_v40 = vsub.f32 %v710_v25, %v718_v39 }
 0x2d8   : > { %v723_v41 = vmul.f32 1.442695, %v720_v40 }
 0x2d9   : > { %v856_v42 = vpop.xlane.xlu0 %855 }
 0x2da   : > { %2523 = vpow2.f32 %v723_v41  ;;  %v860_v43 = vsub.f32 %v848_v29, %v856_v42 }
 0x2dc   : > { %v862_v44 = vmul.f32 1.442695, %v860_v43  ;;  %v2652_v43 = vmov 0  }
 0x2dd   : > { %v859_v45 = vpop.xlane.xlu1 %858  ;;  %2481 = vset.pattern.permute.xlu0 %v2652_v43  ;;  %2482 = vset.pattern.permute.xlu1 %v2652_v43  ;;  %1084 = vst.msk [vmem:[#allocation3 + $0x4] sm:$0xf] %vm1082_vm5, %v2652_v43  ;;  %1085 = vst.msk [vmem:[#allocation3 + $0x8] sm:$0xf] %vm1082_vm5, %v2652_v43 }
 0x2de   : > { %2525 = vpow2.f32 %v862_v44  ;;  %v861_v46 = vsub.f32 %v851_v33, %v859_v45  ;;  %1087 = vst.msk [vmem:[#allocation3 + $0x10] sm:$0xf] %vm1082_vm5, %v2652_v43  ;;  %1086 = vst.msk [vmem:[#allocation3 + $0xc] sm:$0xf] %vm1082_vm5, %v2652_v43 }
 0x2e0   : > { %v864_v47 = vmul.f32 1.442695, %v861_v46 }
 0x2e2   : > { %2527 = vpow2.f32 %v864_v47 }
 0x2e3   : > { %v2522_v48 = vpop.eup %2521 }
 0x2e4   : > { %v725_v49 = vsel %vm665_vm2, %v2522_v48, 0.0  ;;  %v1257_v20 = vld [vmem:[#allocation3 + $0x4] sm:$0x8] }
 0x2e5   : > { %726 = vadd.xlane.f32.xlu0 %v725_v49 }
 0x2e7   : > { %v2524_v50 = vpop.eup %2523 }
 0x2e8   : > { %v728_v51 = vsel %vm665_vm2, %v2524_v50, 0.0 }
 0x2e9   : > { %729 = vadd.xlane.f32.xlu1 %v728_v51 }
 0x2eb   : > { %v2526_v52 = vpop.eup %2525 }
 0x2ec   : > { %v866_v53 = vsel %vm665_vm2, %v2526_v52, 0.0 }
 0x2ed   : > { %867 = vadd.xlane.f32.xlu0 %v866_v53 }
 0x2ef   : > { %v2528_v54 = vpop.eup %2527 }
 0x2f0   : > { %v869_v55 = vsel %vm665_vm2, %v2528_v54, 0.0 }
 0x2f1   : > { %870 = vadd.xlane.f32.xlu1 %v869_v55  ;;  %v2489_v55 = vld [vmem:[#allocation4 + $0x18] sm:$0xff]  }
 0x302   : > { %887 = vrot.lane.b32.xlu1 %v2850_v13, %s2649_s9  ;;  %s559_s9 = scalar_lea.vmem [#allocation7], %s3186_s29 }
 0x303   : > { %746 = vrot.lane.b32.xlu0 %v2850_v13, %s2650_s27  ;;  %s2651_s27 = smov 16  }
 0x36e   : > { %v727_v56 = vpop.xlane.xlu0 %726 }
 0x36f   : > { %2529 = vrcp.f32 %v727_v56  ;;  %v2490_v56 = vld [vmem:[#allocation4] sm:$0xff]  }
 0x372   : > { %v730_v57 = vpop.xlane.xlu1 %729 }
 0x373   : > { %2531 = vrcp.f32 %v730_v57  ;;  %v2493_v57 = vld [vmem:[#allocation4 + $0x10] sm:$0xff]  }
 0x376   : > { %v868_v58 = vpop.xlane.xlu0 %867 }
 0x377   : > { %2533 = vrcp.f32 %v868_v58 }
 0x37a   : > { %v871_v59 = vpop.xlane.xlu1 %870  ;;  %v747_v60 = vpop.permute.xlu0 %746 }
 0x37b   : > { %2535 = vrcp.f32 %v871_v59  ;;  %2291 = vmatpush3.bf16.msra.mxu0 %v747_v60 }
 0x37c   : > { %v2530_v61 = vpop.eup %2529  ;;  %2302 = vmatprep.subr.bf16.mxu0 %v2644_v0 }
 0x37d   : > { %v733_v62 = vmul.f32 %v2530_v61, %v2522_v48 }
 0x37e   : > { %v888_v8 = vpop.permute.xlu1 %887 }
 0x37f   : > { %v2218_v63 = vpack.c.bf16 %v733_v62, %v733_v62 }
 0x380   : > { %v2532_v1 = vpop.eup %2531 }
 0x381   : > { %v734_v2 = vmul.f32 %v2532_v1, %v2524_v50  ;;  %744 = vst.msk [vmem:[%s2887_s20] sm:$0xf] %vm743_vm3, %v2218_v63 }
 0x383   : > { %v735_v5 = vpack.c.bf16 %v734_v2, %v733_v62  ;;  %v2219_v6 = vpack.c.bf16 %v734_v2, %v734_v2  ;;  %v2157_v2 = vld [vmem:[%s3154_s7] ss:$0 sm:$0xff] }
 0x384   : > { %v2534_v7 = vpop.eup %2533 }
 0x385   : > { %2293 = vmatmul.mubr.msk.bf16.vlgmr.msra.gmra.mxu0 %vm665_vm2, %v735_v5  ;;  %v874_v9 = vmul.f32 %v2534_v7, %v2526_v52  ;;  %745 = vst.msk [vmem:[%s2887_s20 + $0x4] sm:$0xf] %vm743_vm3, %v2219_v6  ;;  %v2158_v6 = vld [vmem:[%s3155_s8] ss:$0 sm:$0xff] }
 0x386   : > { %2303 = vmatpush3.bf16.msra.mxu0 %v888_v8  ;;  %2304 = vmatprep.mubr.msk.bf16.mxu0 %vm2645_vm0, %v2644_v0 }
 0x387   : > { %v2222_v10 = vpack.c.bf16 %v874_v9, %v874_v9  ;;  %2316 = vmatprep.subr.bf16.mxu0 %v2644_v0 }
 0x388   : > { %v2536_v11 = vpop.eup %2535 }
 0x389   : > { %v875_v12 = vmul.f32 %v2536_v11, %v2528_v54  ;;  %2147 = vst.msk [vmem:[%s2887_s20 + $0x8] sm:$0xf] %vm743_vm3, %v2222_v10  ;;  %v2488_v54 = vld [vmem:[#allocation4 + $0x8] sm:$0xff]  }
 0x38b   : > { %v876_v13 = vpack.c.bf16 %v875_v12, %v874_v9  ;;  %v2223_v14 = vpack.c.bf16 %v875_v12, %v875_v12 }
 0x38d   : > { %2305 = vmatmul.mubr.msk.bf16.vlgmr.msra.gmra.mxu0 %vm665_vm2, %v876_v13  ;;  %2148 = vst.msk [vmem:[%s2887_s20 + $0xc] sm:$0xf] %vm743_vm3, %v2223_v14 }
 0x38e   : > { %2320 = vmatprep.mubr.msk.bf16.mxu0 %vm2645_vm0, %v2644_v0  ;;  %2317 = vmatpush3.bf16.msra.mxu0 %v2489_v55 }
 0x38f   : > { %2318 = vmatprep.subr.bf16.mxu0 %v2644_v0 }
 0x392   : > { %2319 = vmatpush3.bf16.msra.mxu0 %v2493_v57  ;;  %v2501_v57 = vld [vmem:[#allocation4 + $0x58] sm:$0xff]  }
 0x393   : > { %2332 = vmatprep.subr.bf16.mxu0 %v2644_v0 }
 0x445   : > { %v786_v15 = vpop.f32.mrf.mxu0 }
 0x446   : > { %v2220_v16 = vpack.c.bf16 %v786_v15, %v786_v15 }
 0x447   : > { %v2294_v17 = vpop.f32.mrf.mxu0 }
 0x448   : > { %801 = vst.msk [vmem:[#allocation2] sm:$0xf] %vm743_vm3, %v2220_v16 }
 0x449   : > { %v789_v19 = vpop.f32.mrf.mxu0 }
 0x44a   : > { %v2221_v21 = vpack.c.bf16 %v789_v19, %v789_v19  ;;  %v1099_v19 = vld [vmem:[#allocation3 + $0x4] sm:$0xc] }
 0x44b   : > { %v2295_v22 = vpop.f32.mrf.mxu0 }
 0x44c   : > { %802 = vst.msk [vmem:[#allocation2 + $0x4] sm:$0xf] %vm743_vm3, %v2221_v21 }
 0x44d   : > { %v927_v23 = vpop.f32.mrf.mxu0 }
 0x44e   : > { %v2224_v24 = vpack.c.bf16 %v927_v23, %v927_v23 }
 0x44f   : > { %v2306_v25 = vpop.f32.mrf.mxu0 }
 0x450   : > { %940 = vrot.lane.b32.xlu1 %v2224_v24, %s2651_s27 }
 0x451   : > { %v930_v26 = vpop.f32.mrf.mxu0 }
 0x452   : > { %v2225_v27 = vpack.c.bf16 %v930_v26, %v930_v26 }
 0x453   : > { %v2307_v28 = vpop.f32.mrf.mxu0 }
 0x454   : > { %942 = vrot.lane.b32.xlu0 %v2225_v27, %s2651_s27  ;;  %s579_s27 = scalar_lea.vmem %s3185_s2, %s2216_s30  ;;  %v2494_v27 = vld [vmem:[#allocation4 + $0x38] sm:$0xff]   ;;  %s2575_s2 = sshll.u32 %s2653_s1, 4  ;;  %s2576_s2 = int_to_ptr.vmem [resolvable:$false] %s2575_s2 }
 0x455   : > { %v585_v52 = vld [vmem:[%s579_s27 + $0x8] sm:$0xff]  ;;  %v584_v53 = vld [vmem:[%s579_s27] sm:$0xff]  ;;  %s1955_s27 = sshll.u32 %s559_s9, 4  ;;  %s2577_s19 = scalar_lea.vmem %s2576_s2, 512  ;;  %s3083_s27 = int_to_ptr.vmem [resolvable:$true] %s1955_s27 }
 0x456   : > { %s2571_s29 = scalar_lea.vmem %s3083_s27, 256  ;;  %p2578_p11 = scmp.lt.s32.totalorder %s3083_s27, %s2576_s2 }
 0x457   : > { %p2572_p6 = scmp.ne.s32.totalorder %s3083_s27, %s2571_s29  ;;  %p2579_p12 = scmp.lt.s32.totalorder %s2577_s19, %s2571_s29 }
 0x459   : > { %p2573_p9 = pnand %p2572_p6, %p2786_p5  ;;  %p2580_p13 = por %p2579_p12, %p2578_p11 }
 0x45b   : > { %p2574_p10 = pneg %p2573_p9 }
 0x45d   : > { %p2581_p0 = pnand %p2580_p13, %p2574_p10 }
 0x4c2   : > { %v941_v29 = vpop.permute.xlu1 %940 }
 0x4c3   : > { %947 = vst.msk [vmem:[#allocation2] sm:$0xf] %vm946_vm4, %v941_v29 }
 0x4c6   : > { %v943_v30 = vpop.permute.xlu0 %942 }
 0x4c7   : > { %948 = vst.msk [vmem:[#allocation2 + $0x4] sm:$0xf] %vm946_vm4, %v943_v30 }
 0x4ce   : > { %v2487_v31 = vld [vmem:[#allocation2] sm:$0xff]  }
 0x4cf   : > { %2313 = vmatmul.mubr.msk.bf16.vlgmr.msra.gmra.mxu1 %vm610_vm1, %v2487_v31 }
 0x4d0   : > { %2328 = vmatprep.mubr.msk.bf16.mxu1 %vm2645_vm0, %v2644_v0  ;;  %2325 = vmatpush3.bf16.msra.mxu1 %v2488_v54 }
 0x4d1   : > { %2326 = vmatprep.subr.bf16.mxu1 %v2644_v0 }
 0x4d4   : > { %2327 = vmatpush3.bf16.msra.mxu1 %v2490_v56 }
 0x4d5   : > { %2340 = vmatprep.subr.bf16.mxu1 %v2644_v0 }
 0x58f   : > { %v1016_v33 = vpop.f32.mrf.mxu1 }
 0x590   : > { %v1017_v34 = vadd.f32 %v2152_v32, %v1016_v33 }
 0x591   : > { %v2314_v35 = vpop.f32.mrf.mxu1 }
 0x592   : > { %v1023_v36 = vadd.f32 %v1017_v34, %v2836_v3 }
 0x593   : > { %v1019_v37 = vpop.f32.mrf.mxu1 }
 0x594   : > { %v1020_v38 = vadd.f32 %v2152_v32, %v1019_v37  ;;  %v1027_v39 = vsel %vm610_vm1, %v1023_v36, 0.0 }
 0x595   : > { %1028 = vadd.xlane.f32.xlu1 %v1027_v39  ;;  %v2315_v40 = vpop.f32.mrf.mxu1 }
 0x596   : > { %v1024_v41 = vadd.f32 %v1020_v38, %v2838_v4 }
 0x598   : > { %v1030_v42 = vsel %vm610_vm1, %v1024_v41, 0.0 }
 0x599   : > { %1031 = vadd.xlane.f32.xlu0 %v1030_v42 }
 0x61e   : > { %v1029_v44 = vpop.xlane.xlu1 %1028 }
 0x61f   : > { %v1034_v45 = vmul.f32 0.03125, %v1029_v44 }
 0x621   : > { %v1036_v46 = vsub.f32 %v1023_v36, %v1034_v45 }
 0x622   : > { %v1032_v47 = vpop.xlane.xlu0 %1031 }
 0x623   : > { %v1035_v3 = vmul.f32 0.03125, %v1032_v47  ;;  %v1038_v48 = vmul.f32 %v1036_v46, %v1036_v46 }
 0x625   : > { %v1037_v49 = vsub.f32 %v1024_v41, %v1035_v3  ;;  %v1040_v50 = vsel %vm610_vm1, %v1038_v48, 0.0 }
 0x626   : > { %1041 = vadd.xlane.f32.xlu0 %v1040_v50 }
 0x627   : > { %v1039_v51 = vmul.f32 %v1037_v49, %v1037_v49 }
 0x629   : > { %v1043_v4 = vsel %vm610_vm1, %v1039_v51, 0.0  ;;  %v2496_v51 = vld [vmem:[#allocation4 + $0x28] sm:$0xff]  }
 0x62a   : > { %1044 = vadd.xlane.f32.xlu1 %v1043_v4 }
 0x63b   : > { %1077 = vperm.xlu1 %2482, %v585_v52  }
 0x63c   : > { %1072 = vperm.xlu0 %2481, %v584_v53  }
 0x6af   : > { %v1042_v58 = vpop.xlane.xlu0 %1041 }
 0x6b0   : > { %v1046_v59 = vmul.f32 0.03125, %v1042_v58  ;;  %v2986_v58 = vld [vmem:[#allocation3 + $0x10] ss:$0 sps:$4 sm:$0x11]  }
 0x6b2   : > { %v1048_v60 = vadd.f32 1e-05, %v1046_v59  ;;  %v2500_v59 = vld [vmem:[#allocation4 + $0x20] sm:$0xff]  }
 0x6b3   : > { %v1045_v61 = vpop.xlane.xlu1 %1044 }
 0x6b4   : > { %2537 = vrsqrt.f32 %v1048_v60  ;;  %v1047_v62 = vmul.f32 0.03125, %v1045_v61  ;;  %v2989_v61 = vld [vmem:[#allocation3 + $0x10] ss:$0 sps:$4 sm:$0x33]  }
 0x6b6   : > { %v1049_v63 = vadd.f32 1e-05, %v1047_v62 }
 0x6b7   : > { %v2945_v9 = vpop.permute.xlu0 %1072  ;;  %v2950_v14 = vpop.permute.xlu1 %1077 }
 0x6b8   : > { %2539 = vrsqrt.f32 %v1049_v63 }
 0x6c1   : > { %v2538_v1 = vpop.eup %2537 }
 0x6c2   : > { %v1052_v5 = vmul.f32 %v2538_v1, %v1036_v46  ;;  %v2497_v46 = vld [vmem:[#allocation4 + $0x30] sm:$0xff]   ;;  %v1502_v1 = vshll.u32 %v2986_v58, 16 }
 0x6c4   : > { %v1060_v7 = vmul.f32 %v2157_v2, %v1052_v5 }
 0x6c5   : > { %v2540_v8 = vpop.eup %2539 }
 0x6c6   : > { %v1068_v10 = vadd.f32 %v2158_v6, %v1060_v7  ;;  %v1053_v11 = vmul.f32 %v2540_v8, %v1037_v49 }
 0x6c8   : > { %v2948_v12 = vmul.f32 %v2945_v9, %v1068_v10  ;;  %v1061_v13 = vmul.f32 %v2157_v2, %v1053_v11  ;;  %v2502_v10 = vld [vmem:[#allocation4 + $0x48] sm:$0xff]   ;;  %v1654_v11 = vshrl.u32 %v2989_v61, 16 }
 0x6ca   : > { %v2226_v15 = vpack.c.bf16 %v2948_v12, %v2948_v12  ;;  %v1069_v16 = vadd.f32 %v2158_v6, %v1061_v13  ;;  %v2503_v6 = vld [vmem:[#allocation4 + $0x50] sm:$0xff]   ;;  %v1657_v13 = vshll.u32 %v2989_v61, 16 }
 0x6cc   : > { %1097 = vst.msk [vmem:[#allocation3 + $0x8] sm:$0xf] %vm1082_vm5, %v2226_v15  ;;  %v2956_v17 = vmul.f32 %v2950_v14, %v1069_v16  ;;  %v1504_v16 = vrot.slane %v1502_v1, 1 }
 0x6ce   : > { %v2227_v18 = vpack.c.bf16 %v2956_v17, %v2956_v17 }
 0x6d0   : > { %1098 = vst.msk [vmem:[#allocation3 + $0xc] sm:$0xf] %vm1082_vm5, %v2227_v18 }
 0x6d3   : > { %v2961_v21 = vld [vmem:[#allocation3 + $0x8] sm:$0xf] }
 0x6d4   : > { %v2161_v22 = vcombine.low %v1099_v19, %v2961_v21  ;;  %v2965_v23 = vcombine.low %v1257_v20, %v2961_v21  ;;  %v1477_v45 = vld [vmem:[#allocation3 + $0x8] sm:$0xf] }
 0x6d5   : > { %v1564_v60 = vld [vmem:[#allocation3 + $0x8] sm:$0xe] }
 0x6d6   : > { %v1122_v24 = vshrl.u32 %v2161_v22, 16  ;;  %v1125_v25 = vshll.u32 %v2161_v22, 16  ;;  %v1198_v28 = vrot.slane %v2161_v22, 2  ;;  %v1339_v33 = vshrl.u32 %v2965_v23, 16  ;;  %v2507_v22 = vld [vmem:[#allocation4 + $0x78] sm:$0xff]  }
 0x6d7   : > { %v2492_v26 = vld [vmem:[#allocation3 + $0xc] ss:$0 sps:$4 sm:$0x33]   ;;  %v1342_v34 = vshll.u32 %v2965_v23, 16  ;;  %v1267_v8 = vrot.slane %v2965_v23, 3  ;;  %v2506_v23 = vld [vmem:[#allocation4 + $0x40] sm:$0xff]  }
 0x6d8   : > { %v2967_v29 = vld [vmem:[#allocation3 + $0xc] ss:$0 sps:$4 sm:$0x77]   ;;  %v1199_v30 = vrot.slane %v2492_v26, 2  ;;  %v1124_v31 = vrot.slane %v1122_v24, 2  ;;  %v1127_v35 = vrot.slane %v1125_v25, 3 }
 0x6d9   : > { %v2969_v32 = vld [vmem:[#allocation3 + $0xc] sm:$0xf]  ;;  %v1130_v36 = vshrl.u32 %v2967_v29, 16  ;;  %v1133_v37 = vshll.u32 %v2967_v29, 16  ;;  %v1341_v47 = vrot.slane %v1339_v33, 3  ;;  %v1344_v3 = vrot.slane %v1342_v34, 4 }
 0x6da   : > { %v2174_v38 = vcombine.low %v2969_v32, %v2969_v32  ;;  %v2977_v39 = vld [vmem:[#allocation3 + $0xc] sm:$0xf]  ;;  %v1200_v40 = vsel %vm1197_vm6, %v1198_v28, %v1199_v30  ;;  %v1128_v49 = vor.u32 %v1127_v35, %v1124_v31  ;;  %v1268_v5 = vrot.slane %v2967_v29, 3  ;;  %v2509_v30 = vld [vmem:[#allocation4 + $0x68] sm:$0xff]   ;;  %v2513_v35 = vld [vmem:[#allocation4 + $0x60] sm:$0xff]  }
 0x6db   : > { %2329 = vmatmul.mubr.msk.bf16.vlgmr.msra.gmra.mxu1 %vm610_vm1, %v1200_v40  ;;  %v1132_v41 = vrot.slane %v1130_v36, 2  ;;  %v1135_v42 = vrot.slane %v1133_v37, 3  ;;  %v2182_v48 = vcombine.low %v1477_v45, %v2977_v39  ;;  %v1345_v56 = vor.u32 %v1344_v3, %v1341_v47  ;;  %v2510_v29 = vld [vmem:[#allocation4 + $0x70] sm:$0xff]   ;;  %v2514_v37 = vld [vmem:[#allocation4 + $0x88] sm:$0xff]   ;;  %v2520_v3 = vld [vmem:[%s3158_s11] sm:$0xff]  }
 0x6dc   : > { %v1347_v43 = vshrl.u32 %v2174_v38, 16  ;;  %v1350_v44 = vshll.u32 %v2174_v38, 16  ;;  %2341 = vmatpush3.bf16.msra.mxu1 %v2494_v27  ;;  %2344 = vmatprep.mubr.msk.bf16.mxu1 %vm2645_vm0, %v2644_v0  ;;  %v2996_v2 = vcombine.low %v1564_v60, %v2977_v39  ;;  %v1269_v20 = vsel %vm1266_vm9, %v1267_v8, %v1268_v5  ;;  %v1720_v38 = vld [vmem:[#allocation3 + $0x8] sm:$0xc]  ;;  %v2519_v47 = vld [vmem:[%s3158_s11 + $0x8] sm:$0xff]  }
 0x6dd   : > { %v1136_v50 = vor.u32 %v1135_v42, %v1132_v41  ;;  %2342 = vmatprep.subr.bf16.mxu1 %v2644_v0  ;;  %v1497_v53 = vshll.u32 %v2182_v48, 16  ;;  %v1495_v7 = vshrl.u32 %v2182_v48, 16  ;;  %v1656_v24 = vrot.slane %v1654_v11, 1  ;;  %v2515_v42 = vld [vmem:[#allocation4 + $0x80] sm:$0xff]  }
 0x6de   : > { %v1349_v4 = vrot.slane %v1347_v43, 3  ;;  %v1352_v52 = vrot.slane %v1350_v44, 4  ;;  %v1646_v18 = vshrl.u32 %v2996_v2, 16  ;;  %v1649_v19 = vshll.u32 %v2996_v2, 16 }
 0x6df   : > { %v1137_v54 = vsel %vm1120_vm7, %v1128_v49, %v1136_v50  ;;  %v1499_v63 = vrot.slane %v1497_v53, 1  ;;  %v1659_v28 = vrot.slane %v1657_v13, 2  ;;  %v2178_v31 = vcombine.low %v2961_v21, %v2969_v32 }
 0x6e0   : > { %v1353_v55 = vor.u32 %v1352_v52, %v1349_v4  ;;  %2321 = vmatmul.mubr.msk.bf16.vlgmr.msra.gmra.mxu0 %vm610_vm1, %v1137_v54  ;;  %2343 = vmatpush3.bf16.msra.mxu1 %v2497_v46  ;;  %v1648_v26 = vrot.slane %v1646_v18, 1  ;;  %v1651_v27 = vrot.slane %v1649_v19, 2  ;;  %v1574_v21 = vrot.slane %v2996_v2, 1  ;;  %v2518_v46 = vld [vmem:[%s3158_s11 + $0x10] sm:$0xff]  }
 0x6e1   : > { %2333 = vmatpush3.bf16.msra.mxu0 %v2496_v51  ;;  %2356 = vmatprep.subr.bf16.mxu1 %v2644_v0  ;;  %v1500_v15 = vor.u32 %v1499_v63, %v1495_v7  ;;  %v1660_v34 = vor.u32 %v1659_v28, %v1656_v24  ;;  %v1575_v32 = vrot.slane %v2986_v58, 1  ;;  %v2195_v41 = vcombine.low %v1720_v38, %v2977_v39  ;;  %v2517_v39 = vld [vmem:[%s3158_s11 + $0x18] sm:$0xff]  }
 0x6e2   : > { %2334 = vmatprep.subr.bf16.mxu0 %v2644_v0  ;;  %v1354_v62 = vsel %vm1337_vm8, %v1345_v56, %v1353_v55  ;;  %2336 = vmatprep.mubr.msk.bf16.mxu0 %vm2645_vm0, %v2644_v0  ;;  %v1652_v33 = vor.u32 %v1651_v27, %v1648_v26  ;;  %v1730_v44 = vrot.slane %v2989_v61, 2 }
 0x6e3   : > { %2345 = vmatmul.mubr.msk.bf16.vlgmr.msra.gmra.mxu1 %vm610_vm1, %v1354_v62  ;;  %v1505_v25 = vsel %vm1493_vm10, %v1500_v15, %v1504_v16  ;;  %v1576_v40 = vsel %vm1573_vm12, %v1574_v21, %v1575_v32  ;;  %v1729_v43 = vrot.slane %v2195_v41, 2  ;;  %v2199_v32 = vld [vmem:[%s3157_s10] ss:$0 sm:$0xff] }
 0x6e4   : > { %2357 = vmatpush3.bf16.msra.mxu1 %v2501_v57  ;;  %2360 = vmatprep.mubr.msk.bf16.mxu1 %vm2645_vm0, %v2644_v0  ;;  %v1661_v36 = vsel %vm1644_vm11, %v1652_v33, %v1660_v34 }
 0x6e5   : > { %2335 = vmatpush3.bf16.msra.mxu0 %v2500_v59  ;;  %2358 = vmatprep.subr.bf16.mxu1 %v2644_v0  ;;  %v1731_v45 = vsel %vm1197_vm6, %v1729_v43, %v1730_v44 }
 0x6e6   : > { %2348 = vmatprep.subr.bf16.mxu0 %v2644_v0 }
 0x6e8   : > { %2337 = vmatmul.mubr.msk.bf16.vlgmr.msra.gmra.mxu0 %vm610_vm1, %v1269_v20  ;;  %2359 = vmatpush3.bf16.msra.mxu1 %v2503_v6 }
 0x6e9   : > { %2349 = vmatpush3.bf16.msra.mxu0 %v2502_v10  ;;  %2372 = vmatprep.subr.bf16.mxu1 %v2644_v0 }
 0x6ea   : > { %2350 = vmatprep.subr.bf16.mxu0 %v2644_v0  ;;  %2352 = vmatprep.mubr.msk.bf16.mxu0 %vm2645_vm0, %v2644_v0 }
 0x6eb   : > { %2361 = vmatmul.mubr.msk.bf16.vlgmr.msra.gmra.mxu1 %vm610_vm1, %v1505_v25 }
 0x6ec   : > { %2373 = vmatpush3.bf16.msra.mxu1 %v2507_v22  ;;  %2376 = vmatprep.mubr.msk.bf16.mxu1 %vm2645_vm0, %v2644_v0 }
 0x6ed   : > { %2351 = vmatpush3.bf16.msra.mxu0 %v2506_v23  ;;  %2374 = vmatprep.subr.bf16.mxu1 %v2644_v0 }
 0x6ee   : > { %2364 = vmatprep.subr.bf16.mxu0 %v2644_v0 }
 0x6f0   : > { %2353 = vmatmul.mubr.msk.bf16.vlgmr.msra.gmra.mxu0 %vm610_vm1, %v2178_v31  ;;  %2375 = vmatpush3.bf16.msra.mxu1 %v2510_v29 }
 0x6f1   : > { %2365 = vmatpush3.bf16.msra.mxu0 %v2509_v30  ;;  %2368 = vmatprep.mubr.msk.bf16.mxu0 %vm2645_vm0, %v2644_v0 }
 0x6f2   : > { %2366 = vmatprep.subr.bf16.mxu0 %v2644_v0  ;;  %2388 = vmatprep.subr.bf16.mxu1 %v2644_v0 }
 0x6f3   : > { %2377 = vmatmul.mubr.msk.bf16.vlgmr.msra.gmra.mxu1 %vm610_vm1, %v1661_v36 }
 0x6f4   : > { %2396 = vmatprep.mubr.msk.bf16.mxu1 %vm2645_vm0, %v2644_v0  ;;  %2389 = vmatpush3.bf16.msra.mxu1 %v2517_v39 }
 0x6f5   : > { %2367 = vmatpush3.bf16.msra.mxu0 %v2513_v35  ;;  %2390 = vmatprep.subr.bf16.mxu1 %v2644_v0 }
 0x6f6   : > { %2380 = vmatprep.subr.bf16.mxu0 %v2644_v0 }
 0x6f8   : > { %2369 = vmatmul.mubr.msk.bf16.vlgmr.msra.gmra.mxu0 %vm610_vm1, %v1576_v40  ;;  %2391 = vmatpush3.bf16.msra.mxu1 %v2518_v46 }
 0x6f9   : > { %2381 = vmatpush3.bf16.msra.mxu0 %v2514_v37  ;;  %2384 = vmatprep.mubr.msk.bf16.mxu0 %vm2645_vm0, %v2644_v0 }
 0x6fa   : > { %2382 = vmatprep.subr.bf16.mxu0 %v2644_v0  ;;  %2392 = vmatprep.subr.bf16.mxu1 %v2644_v0 }
 0x6fc   : > { %2393 = vmatpush3.bf16.msra.mxu1 %v2519_v47  ;;  %v2200_v47 = vld [vmem:[%s3159_s12] ss:$0 sm:$0xff] }
 0x6fd   : > { %2383 = vmatpush3.bf16.msra.mxu0 %v2515_v42  ;;  %2394 = vmatprep.subr.bf16.mxu1 %v2644_v0 }
 0x700   : > { %2385 = vmatmul.mubr.msk.bf16.vlgmr.msra.gmra.mxu0 %vm610_vm1, %v1731_v45  ;;  %2395 = vmatpush3.bf16.msra.mxu1 %v2520_v3 }
 0x79b   : > { %v1250_v48 = vpop.f32.mrf.mxu1 }
 0x79d   : > { %v2330_v49 = vpop.f32.mrf.mxu1 }
 0x79f   : > { %v1253_v50 = vpop.f32.mrf.mxu1 }
 0x7a0   : > { %v1187_v51 = vpop.f32.mrf.mxu0 }
 0x7a1   : > { %v2331_v4 = vpop.f32.mrf.mxu1  ;;  %v1251_v63 = vadd.f32 %v1250_v48, %v1187_v51 }
 0x7a2   : > { %v2322_v52 = vpop.f32.mrf.mxu0 }
 0x7a3   : > { %v1404_v53 = vpop.f32.mrf.mxu1 }
 0x7a4   : > { %v1190_v54 = vpop.f32.mrf.mxu0 }
 0x7a5   : > { %v2346_v55 = vpop.f32.mrf.mxu1  ;;  %v1254_v7 = vadd.f32 %v1253_v50, %v1190_v54 }
 0x7a6   : > { %v2323_v56 = vpop.f32.mrf.mxu0 }
 0x7a7   : > { %v1407_v57 = vpop.f32.mrf.mxu1 }
 0x7a8   : > { %v1319_v58 = vpop.f32.mrf.mxu0 }
 0x7a9   : > { %v2347_v59 = vpop.f32.mrf.mxu1  ;;  %v1326_v2 = vadd.f32 %v1319_v58, %v1251_v63 }
 0x7aa   : > { %v2338_v60 = vpop.f32.mrf.mxu0 }
 0x7ab   : > { %v1555_v61 = vpop.f32.mrf.mxu1  ;;  %v1411_v13 = vadd.f32 %v1404_v53, %v1326_v2 }
 0x7ac   : > { %v1322_v62 = vpop.f32.mrf.mxu0 }
 0x7ad   : > { %v2362_v1 = vpop.f32.mrf.mxu1  ;;  %v1327_v11 = vadd.f32 %v1322_v62, %v1254_v7 }
 0x7ae   : > { %v2339_v0 = vpop.f32.mrf.mxu0 }
 0x7af   : > { %v1558_v5 = vpop.f32.mrf.mxu1  ;;  %v1412_v22 = vadd.f32 %v1407_v57, %v1327_v11 }
 0x7b0   : > { %v1468_v6 = vpop.f32.mrf.mxu0 }
 0x7b1   : > { %v2363_v8 = vpop.f32.mrf.mxu1  ;;  %v1475_v18 = vadd.f32 %v1468_v6, %v1411_v13  ;;  %v2207_v13 = vld [vmem:[%s3161_s14] ss:$0 sm:$0xff] }
 0x7b2   : > { %v2354_v10 = vpop.f32.mrf.mxu0 }
 0x7b3   : > { %v1711_v15 = vpop.f32.mrf.mxu1  ;;  %v1562_v26 = vadd.f32 %v1555_v61, %v1475_v18  ;;  %v2206_v10 = vld [vmem:[%s3160_s13] ss:$0 sm:$0xff] }
 0x7b4   : > { %v1471_v16 = vpop.f32.mrf.mxu0 }
 0x7b5   : > { %v2378_v19 = vpop.f32.mrf.mxu1  ;;  %v1476_v25 = vadd.f32 %v1471_v16, %v1412_v22 }
 0x7b6   : > { %v2355_v20 = vpop.f32.mrf.mxu0 }
 0x7b7   : > { %v1714_v23 = vpop.f32.mrf.mxu1  ;;  %v1563_v31 = vadd.f32 %v1558_v5, %v1476_v25 }
 0x7b8   : > { %v1626_v24 = vpop.f32.mrf.mxu0 }
 0x7b9   : > { %v2379_v27 = vpop.f32.mrf.mxu1  ;;  %v1633_v29 = vadd.f32 %v1626_v24, %v1562_v26 }
 0x7ba   : > { %v2370_v28 = vpop.f32.mrf.mxu0 }
 0x7bb   : > { %v1718_v35 = vadd.f32 %v1711_v15, %v1633_v29 }
 0x7bc   : > { %v1629_v30 = vpop.f32.mrf.mxu0 }
 0x7bd   : > { %v1634_v34 = vadd.f32 %v1629_v30, %v1563_v31 }
 0x7be   : > { %v2371_v33 = vpop.f32.mrf.mxu0 }
 0x7bf   : > { %v1719_v38 = vadd.f32 %v1714_v23, %v1634_v34 }
 0x7c0   : > { %v1781_v36 = vpop.f32.mrf.mxu0 }
 0x7c1   : > { %v1788_v21 = vadd.f32 %v1781_v36, %v1718_v35 }
 0x7c2   : > { %v2386_v37 = vpop.f32.mrf.mxu0 }
 0x7c3   : > { %v1797_v41 = vadd.f32 %v2199_v32, %v1788_v21 }
 0x7c4   : > { %v1784_v40 = vpop.f32.mrf.mxu0 }
 0x7c5   : > { %v1789_v42 = vadd.f32 %v1784_v40, %v1719_v38  ;;  %v1799_v45 = vmax.f32 %v1797_v41, 0.0 }
 0x7c6   : > { %v2387_v43 = vpop.f32.mrf.mxu0 }
 0x7c7   : > { %v1798_v44 = vadd.f32 %v2199_v32, %v1789_v42 }
 0x7c9   : > { %v1800_v39 = vmax.f32 %v1798_v44, 0.0 }
 0x7cb   : > { %v1801_v46 = vpack.c.bf16 %v1800_v39, %v1799_v45 }
 0x7cd   : > { %2397 = vmatmul.mubr.msk.bf16.vlgmr.msra.gmra.mxu1 %vm1841_vm13, %v1801_v46 }
 0x88d   : > { %v1879_v3 = vpop.f32.mrf.mxu1 }
 0x88e   : > { %v1880_v48 = vadd.f32 %v2200_v47, %v1879_v3 }
 0x88f   : > { %v2398_v49 = vpop.f32.mrf.mxu1 }
 0x890   : > { %v1886_v50 = vadd.f32 %v1880_v48, %v2948_v12 }
 0x891   : > { %v1882_v51 = vpop.f32.mrf.mxu1 }
 0x892   : > { %v1883_v4 = vadd.f32 %v2200_v47, %v1882_v51  ;;  %v1890_v52 = vsel %vm610_vm1, %v1886_v50, 0.0 }
 0x893   : > { %1891 = vadd.xlane.f32.xlu1 %v1890_v52  ;;  %v2399_v53 = vpop.f32.mrf.mxu1 }
 0x894   : > { %v1887_v54 = vadd.f32 %v1883_v4, %v2956_v17 }
 0x896   : > { %v1893_v55 = vsel %vm610_vm1, %v1887_v54, 0.0 }
 0x897   : > { %1894 = vadd.xlane.f32.xlu0 %v1893_v55 }
 0x91c   : > { %v1892_v56 = vpop.xlane.xlu1 %1891 }
 0x91d   : > { %v1896_v57 = vmul.f32 0.03125, %v1892_v56 }
 0x91f   : > { %v1898_v58 = vsub.f32 %v1886_v50, %v1896_v57 }
 0x920   : > { %v1895_v59 = vpop.xlane.xlu0 %1894 }
 0x921   : > { %v1897_v60 = vmul.f32 0.03125, %v1895_v59  ;;  %v1900_v61 = vmul.f32 %v1898_v58, %v1898_v58 }
 0x923   : > { %v1899_v62 = vsub.f32 %v1887_v54, %v1897_v60  ;;  %v1902_v12 = vsel %vm610_vm1, %v1900_v61, 0.0 }
 0x924   : > { %1903 = vadd.xlane.f32.xlu1 %v1902_v12 }
 0x925   : > { %v1901_v63 = vmul.f32 %v1899_v62, %v1899_v62 }
 0x927   : > { %v1905_v1 = vsel %vm610_vm1, %v1901_v63, 0.0 }
 0x928   : > { %1906 = vadd.xlane.f32.xlu1 %v1905_v1 }
 0x9ad   : > { %v1904_v0 = vpop.xlane.xlu1 %1903 }
 0x9ae   : > { %v1908_v2 = vmul.f32 0.03125, %v1904_v0 }
 0x9b0   : > { %v1910_v17 = vadd.f32 1e-05, %v1908_v2 }
 0x9b1   : > { %v1907_v5 = vpop.xlane.xlu1 %1906 }
 0x9b2   : > { %2541 = vrsqrt.f32 %v1910_v17  ;;  %v1909_v6 = vmul.f32 0.03125, %v1907_v5 }
 0x9b4   : > { %v1911_v7 = vadd.f32 1e-05, %v1909_v6 }
 0x9b6   : > { %2543 = vrsqrt.f32 %v1911_v7 }
 0x9bf   : > { %v2542_v8 = vpop.eup %2541 }
 0x9c0   : > { %v1914_v11 = vmul.f32 %v2542_v8, %v1898_v58 }
 0x9c2   : > { %v1922_v15 = vmul.f32 %v2206_v10, %v1914_v11 }
 0x9c3   : > { %v2544_v16 = vpop.eup %2543 }
 0x9c4   : > { %v1930_v18 = vadd.f32 %v2207_v13, %v1922_v15  ;;  %v1915_v19 = vmul.f32 %v2544_v16, %v1899_v62 }
 0x9c6   : > { %v1932_v20 = vmul.f32 %v1930_v18, %v2945_v9  ;;  %v1923_v22 = vmul.f32 %v2206_v10, %v1915_v19 }
 0x9c8   : > { %v1931_v23 = vadd.f32 %v2207_v13, %v1923_v22  ;;  %1934 = vst.msk [vmem:[%s559_s9] sm:$0xff] %vm610_vm1, %v1932_v20 }
 0x9ca   : > { %v1933_v9 = vmul.f32 %v1931_v23, %v2950_v14 }
 0x9cc   : > { %1935 = vst.msk [vmem:[%s559_s9 + $0x8] sm:$0xff] %vm610_vm1, %v1933_v9 }
 0x9cd   : > { %2584 = shalt.err (!%p2581_p0)
}
 0x9ce   : > { %s2585_s9 = scalar_lea.hbm %s3081_s26, 256  ;;  %s2589_s1 = scalar_lea.hbm %s3162_s15, 512 }
 0x9cf   : > { %p2586_p1 = scmp.ne.s32.totalorder %s3081_s26, %s2585_s9  ;;  %p2590_p4 = scmp.lt.s32.totalorder %s3081_s26, %s3162_s15 }
 0x9d0   : > { %p2591_p7 = scmp.lt.s32.totalorder %s2589_s1, %s2585_s9 }
 0x9d1   : > { %p2587_p2 = pnand %p2586_p1, %p2786_p5 }
 0x9d2   : > { %p2592_p8 = por %p2591_p7, %p2590_p4 }
 0x9d3   : > { %p2588_p3 = pneg %p2587_p2 }
 0x9d5   : > { %p2593_p6 = pnand %p2592_p8, %p2588_p3 }
 0x9d7   : > { %2596 = shalt.err (!%p2593_p6)
}
 0x9d8   : > { %s2654_s2 = smov 128   ;;  %s2655_s29 = smov 8  }
 0x9d9   : > { %s3187_s19 = scalar_lea.sflag [#allocation6], %s2881_s18  ;;  %s1942_s23 = scalar_lea.sflag [#allocation9], %s2881_s18 }
 0x9da   : > { %2404 = dma.vmem_to_hbm [thread:$0]  (%p2786_p5), %s3083_s27, 256, %s3081_s26, %s3187_s19, %s2654_s2, %s2654_s2, %s2655_s29  }
 0x9db   : > { %s2229_s3 = sshll.u32 %s2769_s25, 7  ;;  %s1981_s28 = sshll.u32 %s2887_s20, 4  ;;  %s1982_s28 = int_to_ptr.vmem [resolvable:$true] %s1981_s28 }
 0x9dc   : > { %s1970_s1 = scalar_lea.hbm %s3163_s16, %s2229_s3  ;;  %s2656_s4 = smov 128  }
 0x9dd   : > { %2405 = sst [smem:[#allocation11]] (%p2786_p5), %s2656_s4  ;;  %s2657_s18 = smov 256  }
 0x9de   : > { %2406 = sst [smem:[#allocation11 + $0x1]] (%p2786_p5), %s2657_s18  ;;  %s2658_s27 = smov 2  }
 0x9df   : > { %2407 = sst [smem:[#allocation11 + $0x2]] (%p2786_p5), %s2658_s27  ;;  %s2659_s26 = smov 64  }
 0x9e0   : > { %2408 = sst [smem:[#allocation11 + $0x3]] (%p2786_p5), %s2659_s26  ;;  %s2660_s25 = smov 4  }
 0x9e1   : > { %2409 = sst [smem:[#allocation11 + $0x4]] (%p2786_p5), %s2659_s26  ;;  %s2661_s20 = smov 131072  }
 0x9e2   : > { %2410 = sst [smem:[#allocation11 + $0x5]] (%p2786_p5), %s2660_s25  ;;  %s2662_s2 = smov 0  }
 0x9e3   : > { %2411 = dma.general (%p2786_p5), %s1982_s28, 256, %s1970_s1, %s1942_s23, %s2661_s20, [#allocation11], %s2662_s2, 0  }
 0x9e4 PF: > { %p2427_p9 = scmp.ge.s32.totalorder %s2639_s24, 2  ;;  %s2009_s4 = sand.u32 1, %s2627_s21  }
 0x9e5   : > { %p3188_p10 = scmp.ne.s32.totalorder %s3178_s17, 0  ;;  %s2010_s29 = scalar_lea.sflag [#allocation6], %s2009_s4 }
 0x9e7   : > { %p2419_p11 = pnand %p2427_p9, %p3188_p10 }
 0x9e9   : > { %p2420_p12 = pneg %p2419_p11 }
 0x9eb   : > { %2618 = dma.done.wait (%p2420_p12), %s2010_s29, 256  }
 0x9ec   : > { %2620 = vsyncadd (%p2420_p12), %s2010_s29, 4294967040  ;;  %s2019_s19 = scalar_lea.sflag [#allocation9], %s2009_s4 }
 0x9ed   : > { %2622 = dma.done.wait (%p2420_p12), %s2019_s19, 256  }
 0x9ee   : > { %2624 = vsyncadd (%p2420_p12), %s2019_s19, 4294967040  ;;  %s3189_s24 = sld [smem:[#allocation16_spill]]  ;;  %s3192_s21 = smov %s2631_s22 }
 0x9ef   : > { %s3190_s3 = sld [smem:[#allocation15_spill]] }
 0x9f0   : > { %s3191_s23 = sld [smem:[#allocation17_spill]] }
 0x9f4   : > { %p31_p5 = scmp.ge.s32.totalorder %s3189_s24, 4  }
 0x9f5   : > { %s3193_s22 = smov %s3190_s3 }
 0x9f6   :  { %33 = sbr.rel (!%p31_p5) target bundleno = 13 (0xd), region = 157 }
 0x9fb   :  { %2024 = vsyncpa [#allocation5], 1 }
 0x9fc   :  { %2026 = vsyncpa [#allocation5 + $0x1], 1 }
 0x9fd   :  { %2027 = vsyncpa [#allocation6], 1 }
 0x9fe   :  { %2029 = vsyncpa [#allocation6 + $0x1], 1 }
 0x9ff   :  { %2030 = vsyncpa [#allocation9], 1 }
 0xa00   :  { %2032 = vsyncpa [#allocation9 + $0x1], 1 }

</bundles_post_ra>
